<compile_context>
chip_gen: v6e
topology: v6e:2x2x1
jax: 0.10.0
libtpu: 0.0.40
codegen_flags: <defaults>
</compile_context>

<pallas_src>
import functools
import math

import jax
import jax.numpy as jnp
import numpy as np
from jax.experimental import pallas as pl
from jax.experimental.pallas import tpu as pltpu

# ----------------------------- model dimensions ------------------------------
IMG = 16                         # input spatial size
HW1 = IMG * IMG                  # 256
HW2 = HW1 // 4                   # 64   (after first 2x2 maxpool)
HW3 = HW2 // 4                   # 16   (after second 2x2 maxpool)
CIN0 = 8                         # RGB padded 3 -> 8 zero channels (sublane alignment)
KERNEL = 2                       # AdaptiveAvgPool2d(kernel)
C1, C2 = 16, 32                  # mini-backbone channels (stand-in for VGG16's 512)
FEAT = C2 * KERNEL * KERNEL      # 128   (stand-in for 2048)
ATT_HIDDEN = 64                  # stand-in for AttentionPool hidden=2048
FC1_OUT = 128                    # stand-in for 2*1024
FC2_OUT = 64                     # stand-in for 2*512
N_CLASSES = 16
ARC_S, ARC_M = 64.0, 0.5


# --------------------- constant matrices / masks (host-side) -----------------
def _conv_masks(h, w):
    """(9, h*w) float mask: 1.0 where tap (dy,dx) stays inside the image."""
    m = np.zeros((9, h * w), np.float32)
    k = 0
    for dy in (-1, 0, 1):
        for dx in (-1, 0, 1):
            for hh in range(h):
                for ww in range(w):
                    if 0 <= hh + dy < h and 0 <= ww + dx < w:
                        m[k, hh * w + ww] = 1.0
            k += 1
    return m


def _pool_select(h, w):
    """(h*w, h*w/4) 0/1 matrix selecting the top-left element of each 2x2 window."""
    hd, wd = h // 2, w // 2
    s = np.zeros((h * w, hd * wd), np.float32)
    for qh in range(hd):
        for qw in range(wd):
            s[(2 * qh) * w + 2 * qw, qh * wd + qw] = 1.0
    return s


def _pool_avg(h, w):
    """(h*w, h*w/4) averaging matrix for a 2x2 average pool (AdaptiveAvgPool2d(2) on 4x4)."""
    hd, wd = h // 2, w // 2
    s = np.zeros((h * w, hd * wd), np.float32)
    for qh in range(hd):
        for qw in range(wd):
            for i in range(2):
                for j in range(2):
                    s[(2 * qh + i) * w + 2 * qw + j, qh * wd + qw] = 0.25
    return s


def _block_diag(m, reps):
    """Block-diagonal tiling of m, `reps` times (per-sample pooling with folded lanes)."""
    r, c = m.shape
    out = np.zeros((reps * r, reps * c), np.float32)
    for i in range(reps):
        out[i * r:(i + 1) * r, i * c:(i + 1) * c] = m
    return out


# ----------------------------- in-kernel helpers ------------------------------
def _shift(x, off):
    """result[:, p] = x[:, (p + off) % L]  -- XLU lane rotation (frees vld/vst/VALU)."""
    if off == 0:
        return x
    return pltpu.roll(x, shift=(-off) % x.shape[-1], axis=1)


def _conv3x3_relu(x, w2d, b, masks, width):
    """3x3 SAME conv + relu on a (sample-folded) flattened-spatial activation.

    x: (Cin, L) f32, w2d: (Cout, 9*Cin) bf16, b: (Cout, 1) f32, masks: (9, L) f32,
    width: W (row stride in the flat layout).  The 9 taps are stacked along the
    contraction axis -> a single MXU matmul (K = 9*Cin).  The border masks also
    zero every tap that would cross a sample boundary, so folding several samples
    into the lane axis is exact.
    """
    taps = []
    k = 0
    for dy in (-1, 0, 1):
        for dx in (-1, 0, 1):
            taps.append(_shift(x, dy * width + dx) * masks[k:k + 1, :])
            k += 1
    stacked = jnp.concatenate(taps, axis=0).astype(jnp.bfloat16)         # (9*Cin, L)
    acc = jnp.dot(w2d, stacked, preferred_element_type=jnp.float32) + b  # (Cout, L)
    return jnp.maximum(acc, 0.0)


def _maxpool2x2(x, sel, width):
    """2x2/stride-2 max pool: shift+max (XLU rolls) then a 0/1 selection matmul."""
    m = jnp.maximum(jnp.maximum(x, _shift(x, 1)),
                    jnp.maximum(_shift(x, width), _shift(x, width + 1)))
    return jnp.dot(m, sel, preferred_element_type=jnp.float32)


# ----------------------------- fused backbone kernel --------------------------
def _backbone_kernel(wid_ref, x_ref, w1, b1, w2, b2, w3, b3, w4, b4,
                     m16_ref, m8_ref, s16_ref, s8_ref, av_ref, o_ref):
    # One grid step = TB samples (folded into lanes); all intermediates stay in VMEM.
    del wid_ref  # only consumed by the index_maps (weight-set selection)
    x = x_ref[...]                                                       # (CIN0, TB*256)
    m16 = m16_ref[...]
    m8 = m8_ref[...]
    h = _conv3x3_relu(x, w1[...], b1[...], m16, IMG)                     # (C1, TB*256)
    h = _conv3x3_relu(h, w2[...], b2[...], m16, IMG)                     # (C1, TB*256)
    h = _maxpool2x2(h, s16_ref[...], IMG)                                # (C1, TB*64)
    h = _conv3x3_relu(h, w3[...], b3[...], m8, IMG // 2)                 # (C2, TB*64)
    h = _conv3x3_relu(h, w4[...], b4[...], m8, IMG // 2)                 # (C2, TB*64)
    h = _maxpool2x2(h, s8_ref[...], IMG // 2)                            # (C2, TB*16)
    h = jnp.dot(h, av_ref[...], preferred_element_type=jnp.float32)      # (C2, TB*4)
    # TODO(synk): output stays in the natural (C2, TB*4) layout (lane dim < 128); at
    # real 512-channel sizes restructure the last stage for a lane-dense store.
    o_ref[...] = h.astype(o_ref.dtype)


def backbone_all(x_folded, wid, prep, *, tb, nblocks):
    """x_folded: (nblocks, CIN0, tb*HW1), wid: (nblocks,) weight-set id (0=holistic,
    1=patch).  Returns (nblocks, C2, tb*4) pooled features."""
    m16 = jnp.asarray(np.tile(_conv_masks(IMG, IMG), (1, tb)))           # (9, tb*256)
    m8 = jnp.asarray(np.tile(_conv_masks(IMG // 2, IMG // 2), (1, tb)))  # (9, tb*64)
    s16 = jnp.asarray(_block_diag(_pool_select(IMG, IMG), tb))           # (tb*256, tb*64)
    s8 = jnp.asarray(_block_diag(_pool_select(IMG // 2, IMG // 2), tb))  # (tb*64, tb*16)
    av = jnp.asarray(_block_diag(_pool_avg(IMG // 4, IMG // 4), tb))     # (tb*16, tb*4)

    cw, cb = prep["conv_w"], prep["conv_b"]
    args = (x_folded, cw["c1"], cb["c1"], cw["c2"], cb["c2"], cw["c3"], cb["c3"],
            cw["c4"], cb["c4"], m16, m8, s16, s8, av)

    def widx(i, w):        # pick the weight set for this block from SMEM
        return (w[i], 0, 0)

    def bcast2(i, w):      # shared constants: same block every step
        return (0, 0)

    grid_spec = pltpu.PrefetchScalarGridSpec(
        num_scalar_prefetch=1,
        grid=(nblocks,),
        in_specs=[
            pl.BlockSpec((None, CIN0, tb * HW1), lambda i, w: (i, 0, 0)),
            pl.BlockSpec((None, C1, 9 * CIN0), widx),
            pl.BlockSpec((None, C1, 1), widx),
            pl.BlockSpec((None, C1, 9 * C1), widx),
            pl.BlockSpec((None, C1, 1), widx),
            pl.BlockSpec((None, C2, 9 * C1), widx),
            pl.BlockSpec((None, C2, 1), widx),
            pl.BlockSpec((None, C2, 9 * C2), widx),
            pl.BlockSpec((None, C2, 1), widx),
            pl.BlockSpec((9, tb * HW1), bcast2),
            pl.BlockSpec((9, tb * HW2), bcast2),
            pl.BlockSpec((tb * HW1, tb * HW2), bcast2),
            pl.BlockSpec((tb * HW2, tb * HW3), bcast2),
            pl.BlockSpec((tb * HW3, tb * KERNEL * KERNEL), bcast2),
        ],
        out_specs=pl.BlockSpec((None, C2, tb * KERNEL * KERNEL), lambda i, w: (i, 0, 0)),
    )
    return pl.pallas_call(
        _backbone_kernel,
        out_shape=jax.ShapeDtypeStruct((nblocks, C2, tb * KERNEL * KERNEL), jnp.float32),
        grid_spec=grid_spec,
        compiler_params=pltpu.CompilerParams(dimension_semantics=("parallel",)),
    )(wid, *args)


# ----------------------------- fused head kernel ------------------------------
def _head_kernel(fm_ref, hol_ref, esegT_ref, aw1_ref, ab1_ref, aw2_ref, ab2_ref,
                 fw1a_ref, fw1b_ref, fb1_ref, fw2_ref, fb2_ref, wn_ref, lab_ref,
                 logits_ref, feats_ref, *, s, m, inv_batch):
    bf = jnp.bfloat16
    fm = fm_ref[...]                                   # (P*B, D) f32, patch-major rows
    esegT = esegT_ref[...]                             # (P, P*B) patch-membership 0/1

    # AttentionPool: Linear(D,H)->ReLU->Linear(H,1); softmax over the batch axis
    # within each patch (dim=1 of the (P,B,D) stack); reduction='mean' -> /B.
    hid = jnp.maximum(
        jnp.dot(fm.astype(bf), aw1_ref[...], preferred_element_type=jnp.float32)
        + ab1_ref[...], 0.0)                                                  # (P*B, H)
    score = jnp.sum(hid * aw2_ref[...], axis=1, keepdims=True) + ab2_ref[...]  # (P*B, 1)
    score = score - jnp.max(score, axis=0, keepdims=True)   # global shift (softmax-invariant)
    e = jnp.exp(score)                                                        # (P*B, 1)
    num = jnp.dot(esegT, fm * e, preferred_element_type=jnp.float32)          # (P, D)
    den = jnp.dot(esegT, jnp.broadcast_to(e, fm.shape),
                  preferred_element_type=jnp.float32)                         # (P, D)
    # approx reciprocal (EUP slot): ~1e-3 rel. error vs the exact softmax denominator.
    local = num * pl.reciprocal(den, approx=True) * inv_batch                 # (P, D)

    # concat([holistic, local]) @ fc1 == holistic @ fw1a + local @ fw1b (fc1 split at
    # prepare_params; bn1/bn2 eval statistics are folded in). Dropout(0.3)=identity (eval).
    h1 = jnp.maximum(
        jnp.dot(hol_ref[...].astype(bf), fw1a_ref[...], preferred_element_type=jnp.float32)
        + jnp.dot(local.astype(bf), fw1b_ref[...], preferred_element_type=jnp.float32)
        + fb1_ref[...], 0.0)                                                  # (B, FC1)
    y = (jnp.dot(h1.astype(bf), fw2_ref[...], preferred_element_type=jnp.float32)
         + fb2_ref[...])                                                      # (B, FC2)
    feats = y * jax.lax.rsqrt(jnp.maximum(jnp.sum(y * y, axis=1, keepdims=True), 1e-24))
    feats_ref[...] = feats.astype(feats_ref.dtype)

    # TODO(synk): ArcMarginProduct source not provided; canonical ArcFace head
    # (s=64, m=0.5, easy_margin=False) is implemented; class weights are pre-normalized
    # and transposed at prepare_params time.
    cos = jnp.dot(feats.astype(bf), wn_ref[...], preferred_element_type=jnp.float32)
    cos = jnp.clip(cos, -1.0, 1.0)
    sin = jnp.sqrt(jnp.maximum(1.0 - cos * cos, 0.0))
    phi = cos * math.cos(m) - sin * math.sin(m)
    phi = jnp.where(cos > math.cos(math.pi - m), phi, cos - math.sin(math.pi - m) * m)
    cls = jax.lax.broadcasted_iota(jnp.int32, cos.shape, 1)
    one_hot = (cls == lab_ref[...]).astype(cos.dtype)
    logits_ref[...] = ((one_hot * phi + (1.0 - one_hot) * cos) * s).astype(logits_ref.dtype)


def head_and_margin(holistic, feature_matrix, labels, prep, *, n_patches, batch):
    # patch-membership matrix: esegT[p, p*B + b] = 1
    esegT = jnp.asarray(np.kron(np.eye(n_patches, dtype=np.float32),
                                np.ones((1, batch), np.float32)))
    lab = labels.reshape(batch, 1).astype(jnp.int32)
    args = (feature_matrix, holistic, esegT, prep["aw1"], prep["ab1"], prep["aw2"],
            prep["ab2"], prep["fw1a"], prep["fw1b"], prep["fb1"], prep["fw2"],
            prep["fb2"], prep["arc_wn"], lab)
    kernel = functools.partial(_head_kernel, s=ARC_S, m=ARC_M, inv_batch=1.0 / batch)
    # TODO(synk): at real sizes (fc1 4096x2048) tile fc1/fc2 over K with a grid axis +
    # VMEM accumulator and give the row-wise part a batch-parallel grid axis (v7x).
    return pl.pallas_call(
        kernel,
        out_shape=(jax.ShapeDtypeStruct((batch, N_CLASSES), jnp.float32),
                   jax.ShapeDtypeStruct((batch, FC2_OUT), jnp.float32)),
        grid=(1,),
        in_specs=[pl.BlockSpec(a.shape, lambda i, nd=a.ndim: (0,) * nd) for a in args],
        out_specs=(pl.BlockSpec((batch, N_CLASSES), lambda i: (0, 0)),
                   pl.BlockSpec((batch, FC2_OUT), lambda i: (0, 0))),
    )(*args)


# ----------------------------- parameters ------------------------------------
def init_params(key):
    kit = iter(jax.random.split(key, 64))

    def nrm(shape, scale=0.1):
        return (scale * jax.random.normal(next(kit), shape)).astype(jnp.float32)

    def backbone_params():
        # conv weights stored pre-fused as (Cout, 9*Cin); the columns belonging to the
        # zero-padded input channels of conv1 always see zero activations, so the op
        # equals a 3-channel conv.
        return {
            "c1w": nrm((C1, 9 * CIN0), 0.25), "c1b": nrm((C1, 1), 0.05),
            "c2w": nrm((C1, 9 * C1), 0.15),   "c2b": nrm((C1, 1), 0.05),
            "c3w": nrm((C2, 9 * C1), 0.15),   "c3b": nrm((C2, 1), 0.05),
            "c4w": nrm((C2, 9 * C2), 0.10),   "c4b": nrm((C2, 1), 0.05),
        }

    return {
        "holistic": backbone_params(),     # backbone_holistic (separate weights)
        "patch": backbone_params(),        # backbone_patch (separate weights)
        "att": {
            "w1": nrm((FEAT, ATT_HIDDEN)), "b1": nrm((1, ATT_HIDDEN), 0.05),
            "w2": nrm((1, ATT_HIDDEN)),    "b2": nrm((1, 1), 0.05),
        },
        "head": {
            "w1": nrm((2 * FEAT, FC1_OUT)), "b1": nrm((1, FC1_OUT), 0.05),
            "g1": 1.0 + nrm((1, FC1_OUT), 0.05), "be1": nrm((1, FC1_OUT), 0.05),
            "rm1": nrm((1, FC1_OUT), 0.05),
            "rv1": 0.75 + jnp.abs(nrm((1, FC1_OUT), 0.1)),
            "w2": nrm((FC1_OUT, FC2_OUT)), "b2": nrm((1, FC2_OUT), 0.05),
            "g2": 1.0 + nrm((1, FC2_OUT), 0.05), "be2": nrm((1, FC2_OUT), 0.05),
            "rm2": nrm((1, FC2_OUT), 0.05),
            "rv2": 0.75 + jnp.abs(nrm((1, FC2_OUT), 0.1)),
        },
        "arc_w": nrm((N_CLASSES, FC2_OUT), 0.2),
    }


def _fold_bn(w, b, g, be, rm, rv, eps=1e-5):
    # eval-mode BatchNorm folded into the preceding Linear: y*s + (be - rm*s)
    scale = g / jnp.sqrt(rv + eps)
    return w * scale, b * scale + be - rm * scale


def prepare_params(params):
    """One-time parameter prep (outside the per-forward path): stack the two backbone
    weight sets for per-block selection, pre-cast MXU operands to bf16, fold eval-mode
    BatchNorm into fc1/fc2, split fc1 at the concat boundary, and pre-normalize the
    ArcFace class weights (input-independent)."""
    bf = jnp.bfloat16
    hol, pat = params["holistic"], params["patch"]
    conv_w = {k: jnp.stack([hol[k + "w"], pat[k + "w"]]).astype(bf)
              for k in ("c1", "c2", "c3", "c4")}
    conv_b = {k: jnp.stack([hol[k + "b"], pat[k + "b"]]).astype(jnp.float32)
              for k in ("c1", "c2", "c3", "c4")}
    a = params["att"]
    hp = params["head"]
    w1f, b1f = _fold_bn(hp["w1"], hp["b1"], hp["g1"], hp["be1"], hp["rm1"], hp["rv1"])
    w2f, b2f = _fold_bn(hp["w2"], hp["b2"], hp["g2"], hp["be2"], hp["rm2"], hp["rv2"])
    wv = params["arc_w"]
    wn = wv * jax.lax.rsqrt(jnp.maximum(jnp.sum(wv * wv, axis=1, keepdims=True), 1e-24))
    return {
        "conv_w": conv_w, "conv_b": conv_b,
        "aw1": a["w1"].astype(bf), "ab1": a["b1"], "aw2": a["w2"], "ab2": a["b2"],
        "fw1a": w1f[:FEAT].astype(bf), "fw1b": w1f[FEAT:].astype(bf), "fb1": b1f,
        "fw2": w2f.astype(bf), "fb2": b2f,
        "arc_wn": wn.T.astype(bf),                     # (FC2_OUT, N_CLASSES)
    }


# ----------------------------- full forward ----------------------------------
def _prep_images(x):
    # (N, 3, H, W) NCHW -> (N, CIN0, H*W): zero-pad channels and flatten spatial
    # (free layout glue outside the kernels).
    n = x.shape[0]
    x = jnp.pad(x, ((0, 0), (0, CIN0 - x.shape[1]), (0, 0), (0, 0)))
    return x.reshape(n, CIN0, HW1)


@jax.jit
def forward(imgs, patches, labels, prep):
    # imgs: (B, 3, H, W) NCHW; patches: (P, B, 3, H, W); labels: (B,)
    B = imgs.shape[0]
    P = patches.shape[0]
    if P != B:
        # torch.cat((holistic (B,D), local (P,D)), dim=1) in the reference needs P == B.
        raise ValueError("reference model requires n_patches == batch")
    TB = B                                  # samples folded into the lane axis per step
    n_total = B + P * B
    nblocks = n_total // TB                 # 1 holistic block + P patch blocks (>=2 steps)

    x_all = jnp.concatenate(
        [_prep_images(imgs), _prep_images(patches.reshape((P * B, 3, IMG, IMG)))], axis=0)
    # fold TB samples into the lane axis: (nblocks, CIN0, TB*HW1)
    x_folded = (x_all.reshape(nblocks, TB, CIN0, HW1)
                .transpose(0, 2, 1, 3).reshape(nblocks, CIN0, TB * HW1))
    wid = jnp.concatenate([jnp.zeros((B // TB,), jnp.int32),
                           jnp.ones(((P * B) // TB,), jnp.int32)])

    bb = backbone_all(x_folded, wid, prep, tb=TB, nblocks=nblocks)   # (nblocks, C2, TB*4)
    # un-fold to per-sample, (c, kh, kw)-ordered feature rows (tiny XLA relayout).
    feats_all = (bb.reshape(nblocks, C2, TB, KERNEL * KERNEL)
                 .transpose(0, 2, 1, 3).reshape(n_total, FEAT))
    holistic = feats_all[:B]                 # (B, FEAT)
    feature_matrix = feats_all[B:]           # (P*B, FEAT), patch-major rows p*B + b
    # NOTE: the reference also builds per-patch torch.max(feat, 0) tensors that are never
    # used downstream; omitted.
    return head_and_margin(holistic, feature_matrix, labels, prep,
                           n_patches=P, batch=B)


# ----------------------------- main -------------------------------------------
if __name__ == "__main__":
    B, P = 2, 2            # n_patches == batch (required by the reference concat)
    key = jax.random.PRNGKey(0)
    k_imgs, k_pat, k_lab, k_par = jax.random.split(key, 4)
    imgs = jax.random.normal(k_imgs, (B, 3, IMG, IMG), jnp.float32)          # NCHW
    patches = jax.random.normal(k_pat, (P, B, 3, IMG, IMG), jnp.float32)
    labels = jax.random.randint(k_lab, (B,), 0, N_CLASSES, dtype=jnp.int32)
    prep = prepare_params(init_params(k_par))

    logits, feats = forward(imgs, patches, labels, prep)
    jax.block_until_ready((logits, feats))
    assert logits.shape == (B, N_CLASSES)
    assert feats.shape == (B, FC2_OUT)
    assert bool(jnp.all(jnp.isfinite(logits))) and bool(jnp.all(jnp.isfinite(feats)))
    print("KERNEL_OK")
</pallas_src>

<mosaic_0001>
module attributes {stable_mosaic.version = 11 : i64} {
  func.func @_backbone_kernel(%arg0: i32, %arg1: memref<3xi32, #tpu.memory_space<smem>>, %arg2: memref<1x8x512xf32, #tpu.memory_space<vmem>>, %arg3: memref<1x16x72xbf16, #tpu.memory_space<vmem>>, %arg4: memref<1x16x1xf32, #tpu.memory_space<vmem>>, %arg5: memref<1x16x144xbf16, #tpu.memory_space<vmem>>, %arg6: memref<1x16x1xf32, #tpu.memory_space<vmem>>, %arg7: memref<1x32x144xbf16, #tpu.memory_space<vmem>>, %arg8: memref<1x32x1xf32, #tpu.memory_space<vmem>>, %arg9: memref<1x32x288xbf16, #tpu.memory_space<vmem>>, %arg10: memref<1x32x1xf32, #tpu.memory_space<vmem>>, %arg11: memref<9x512xf32, #tpu.memory_space<vmem>>, %arg12: memref<9x128xf32, #tpu.memory_space<vmem>>, %arg13: memref<512x128xf32, #tpu.memory_space<vmem>>, %arg14: memref<128x32xf32, #tpu.memory_space<vmem>>, %arg15: memref<32x8xf32, #tpu.memory_space<vmem>>, %arg16: memref<1x32x8xf32, #tpu.memory_space<vmem>>) attributes {dimension_semantics = [#tpu.dimension_semantics<parallel>], iteration_bounds = array<i64: 3>, scalar_prefetch = 1 : i64, scratch_operands = 0 : i64, tpu.core_type = #tpu.core_type<tc>, window_params = [{transform_indices = @transform_0, window_bounds = array<i64: 1, 8, 512>}, {transform_indices = @transform_1, window_bounds = array<i64: 1, 16, 72>}, {transform_indices = @transform_2, window_bounds = array<i64: 1, 16, 1>}, {transform_indices = @transform_3, window_bounds = array<i64: 1, 16, 144>}, {transform_indices = @transform_4, window_bounds = array<i64: 1, 16, 1>}, {transform_indices = @transform_5, window_bounds = array<i64: 1, 32, 144>}, {transform_indices = @transform_6, window_bounds = array<i64: 1, 32, 1>}, {transform_indices = @transform_7, window_bounds = array<i64: 1, 32, 288>}, {transform_indices = @transform_8, window_bounds = array<i64: 1, 32, 1>}, {pipeline_mode = #tpu.pipeline_mode<synchronous>, transform_indices = @transform_9, window_bounds = array<i64: 9, 512>}, {pipeline_mode = #tpu.pipeline_mode<synchronous>, transform_indices = @transform_10, window_bounds = array<i64: 9, 128>}, {pipeline_mode = #tpu.pipeline_mode<synchronous>, transform_indices = @transform_11, window_bounds = array<i64: 512, 128>}, {pipeline_mode = #tpu.pipeline_mode<synchronous>, transform_indices = @transform_12, window_bounds = array<i64: 128, 32>}, {pipeline_mode = #tpu.pipeline_mode<synchronous>, transform_indices = @transform_13, window_bounds = array<i64: 32, 8>}, {transform_indices = @transform_14, window_bounds = array<i64: 1, 32, 8>}]} {
    %c0 = arith.constant 0 : index
    %c0_0 = arith.constant 0 : index
    %c0_1 = arith.constant 0 : index
    %0 = vector.load %arg2[%c0, %c0_0, %c0_1] : memref<1x8x512xf32, #tpu.memory_space<vmem>>, vector<1x8x512xf32>
    %1 = vector.shape_cast %0 : vector<1x8x512xf32> to vector<8x512xf32>
    %c0_2 = arith.constant 0 : index
    %c0_3 = arith.constant 0 : index
    %2 = vector.load %arg11[%c0_2, %c0_3] : memref<9x512xf32, #tpu.memory_space<vmem>>, vector<9x512xf32>
    %c0_4 = arith.constant 0 : index
    %c0_5 = arith.constant 0 : index
    %3 = vector.load %arg12[%c0_4, %c0_5] : memref<9x128xf32, #tpu.memory_space<vmem>>, vector<9x128xf32>
    %c0_6 = arith.constant 0 : index
    %c0_7 = arith.constant 0 : index
    %c0_8 = arith.constant 0 : index
    %4 = vector.load %arg3[%c0_6, %c0_7, %c0_8] : memref<1x16x72xbf16, #tpu.memory_space<vmem>>, vector<1x16x72xbf16>
    %5 = vector.shape_cast %4 : vector<1x16x72xbf16> to vector<16x72xbf16>
    %c0_9 = arith.constant 0 : index
    %c0_10 = arith.constant 0 : index
    %c0_11 = arith.constant 0 : index
    %6 = vector.load %arg4[%c0_9, %c0_10, %c0_11] : memref<1x16x1xf32, #tpu.memory_space<vmem>>, vector<1x16x1xf32>
    %7 = vector.shape_cast %6 : vector<1x16x1xf32> to vector<16x1xf32>
    %c17_i32 = arith.constant 17 : i32
    %8 = tpu.dynamic_rotate %1 by %c17_i32 dim 1 : vector<8x512xf32>, i32 -> vector<8x512xf32>
    %9 = vector.extract_strided_slice %2 {offsets = [0, 0], sizes = [1, 512], strides = [1, 1]} : vector<9x512xf32> to vector<1x512xf32>
    %10 = vector.broadcast %9 : vector<1x512xf32> to vector<8x512xf32>
    %11 = arith.mulf %8, %10 : vector<8x512xf32>
    %c16_i32 = arith.constant 16 : i32
    %12 = tpu.dynamic_rotate %1 by %c16_i32 dim 1 : vector<8x512xf32>, i32 -> vector<8x512xf32>
    %13 = vector.extract_strided_slice %2 {offsets = [1, 0], sizes = [1, 512], strides = [1, 1]} : vector<9x512xf32> to vector<1x512xf32>
    %14 = vector.broadcast %13 : vector<1x512xf32> to vector<8x512xf32>
    %15 = arith.mulf %12, %14 : vector<8x512xf32>
    %c15_i32 = arith.constant 15 : i32
    %16 = tpu.dynamic_rotate %1 by %c15_i32 dim 1 : vector<8x512xf32>, i32 -> vector<8x512xf32>
    %17 = vector.extract_strided_slice %2 {offsets = [2, 0], sizes = [1, 512], strides = [1, 1]} : vector<9x512xf32> to vector<1x512xf32>
    %18 = vector.broadcast %17 : vector<1x512xf32> to vector<8x512xf32>
    %19 = arith.mulf %16, %18 : vector<8x512xf32>
    %c1_i32 = arith.constant 1 : i32
    %20 = tpu.dynamic_rotate %1 by %c1_i32 dim 1 : vector<8x512xf32>, i32 -> vector<8x512xf32>
    %21 = vector.extract_strided_slice %2 {offsets = [3, 0], sizes = [1, 512], strides = [1, 1]} : vector<9x512xf32> to vector<1x512xf32>
    %22 = vector.broadcast %21 : vector<1x512xf32> to vector<8x512xf32>
    %23 = arith.mulf %20, %22 : vector<8x512xf32>
    %24 = vector.extract_strided_slice %2 {offsets = [4, 0], sizes = [1, 512], strides = [1, 1]} : vector<9x512xf32> to vector<1x512xf32>
    %25 = vector.broadcast %24 : vector<1x512xf32> to vector<8x512xf32>
    %26 = arith.mulf %1, %25 : vector<8x512xf32>
    %c511_i32 = arith.constant 511 : i32
    %27 = tpu.dynamic_rotate %1 by %c511_i32 dim 1 : vector<8x512xf32>, i32 -> vector<8x512xf32>
    %28 = vector.extract_strided_slice %2 {offsets = [5, 0], sizes = [1, 512], strides = [1, 1]} : vector<9x512xf32> to vector<1x512xf32>
    %29 = vector.broadcast %28 : vector<1x512xf32> to vector<8x512xf32>
    %30 = arith.mulf %27, %29 : vector<8x512xf32>
    %c497_i32 = arith.constant 497 : i32
    %31 = tpu.dynamic_rotate %1 by %c497_i32 dim 1 : vector<8x512xf32>, i32 -> vector<8x512xf32>
    %32 = vector.extract_strided_slice %2 {offsets = [6, 0], sizes = [1, 512], strides = [1, 1]} : vector<9x512xf32> to vector<1x512xf32>
    %33 = vector.broadcast %32 : vector<1x512xf32> to vector<8x512xf32>
    %34 = arith.mulf %31, %33 : vector<8x512xf32>
    %c496_i32 = arith.constant 496 : i32
    %35 = tpu.dynamic_rotate %1 by %c496_i32 dim 1 : vector<8x512xf32>, i32 -> vector<8x512xf32>
    %36 = vector.extract_strided_slice %2 {offsets = [7, 0], sizes = [1, 512], strides = [1, 1]} : vector<9x512xf32> to vector<1x512xf32>
    %37 = vector.broadcast %36 : vector<1x512xf32> to vector<8x512xf32>
    %38 = arith.mulf %35, %37 : vector<8x512xf32>
    %c495_i32 = arith.constant 495 : i32
    %39 = tpu.dynamic_rotate %1 by %c495_i32 dim 1 : vector<8x512xf32>, i32 -> vector<8x512xf32>
    %40 = vector.extract_strided_slice %2 {offsets = [8, 0], sizes = [1, 512], strides = [1, 1]} : vector<9x512xf32> to vector<1x512xf32>
    %41 = vector.broadcast %40 : vector<1x512xf32> to vector<8x512xf32>
    %42 = arith.mulf %39, %41 : vector<8x512xf32>
    %43 = tpu.concatenate %11, %15, %19, %23, %26, %30, %34, %38, %42 in 0 : vector<8x512xf32>, vector<8x512xf32>, vector<8x512xf32>, vector<8x512xf32>, vector<8x512xf32>, vector<8x512xf32>, vector<8x512xf32>, vector<8x512xf32>, vector<8x512xf32> -> vector<72x512xf32>
    %44 = arith.truncf %43 : vector<72x512xf32> to vector<72x512xbf16>
    %cst = arith.constant dense<0.000000e+00> : vector<16x512xf32>
    %45 = tpu.matmul %5, %44, %cst {dimension_numbers = #tpu.dot_dimension_numbers<[1], [0], [0], [1], [0, 0, 1, 1], [], []>} : vector<16x72xbf16>, vector<72x512xbf16>, vector<16x512xf32> -> vector<16x512xf32>
    %46 = vector.broadcast %7 : vector<16x1xf32> to vector<16x512xf32>
    %47 = arith.addf %45, %46 : vector<16x512xf32>
    %cst_12 = arith.constant 0.000000e+00 : f32
    %48 = vector.broadcast %cst_12 : f32 to vector<16x512xf32>
    %49 = arith.maximumf %47, %48 : vector<16x512xf32>
    %c0_13 = arith.constant 0 : index
    %c0_14 = arith.constant 0 : index
    %c0_15 = arith.constant 0 : index
    %50 = vector.load %arg5[%c0_13, %c0_14, %c0_15] : memref<1x16x144xbf16, #tpu.memory_space<vmem>>, vector<1x16x144xbf16>
    %51 = vector.shape_cast %50 : vector<1x16x144xbf16> to vector<16x144xbf16>
    %c0_16 = arith.constant 0 : index
    %c0_17 = arith.constant 0 : index
    %c0_18 = arith.constant 0 : index
    %52 = vector.load %arg6[%c0_16, %c0_17, %c0_18] : memref<1x16x1xf32, #tpu.memory_space<vmem>>, vector<1x16x1xf32>
    %53 = vector.shape_cast %52 : vector<1x16x1xf32> to vector<16x1xf32>
    %c17_i32_19 = arith.constant 17 : i32
    %54 = tpu.dynamic_rotate %49 by %c17_i32_19 dim 1 : vector<16x512xf32>, i32 -> vector<16x512xf32>
    %55 = vector.extract_strided_slice %2 {offsets = [0, 0], sizes = [1, 512], strides = [1, 1]} : vector<9x512xf32> to vector<1x512xf32>
    %56 = vector.broadcast %55 : vector<1x512xf32> to vector<16x512xf32>
    %57 = arith.mulf %54, %56 : vector<16x512xf32>
    %c16_i32_20 = arith.constant 16 : i32
    %58 = tpu.dynamic_rotate %49 by %c16_i32_20 dim 1 : vector<16x512xf32>, i32 -> vector<16x512xf32>
    %59 = vector.extract_strided_slice %2 {offsets = [1, 0], sizes = [1, 512], strides = [1, 1]} : vector<9x512xf32> to vector<1x512xf32>
    %60 = vector.broadcast %59 : vector<1x512xf32> to vector<16x512xf32>
    %61 = arith.mulf %58, %60 : vector<16x512xf32>
    %c15_i32_21 = arith.constant 15 : i32
    %62 = tpu.dynamic_rotate %49 by %c15_i32_21 dim 1 : vector<16x512xf32>, i32 -> vector<16x512xf32>
    %63 = vector.extract_strided_slice %2 {offsets = [2, 0], sizes = [1, 512], strides = [1, 1]} : vector<9x512xf32> to vector<1x512xf32>
    %64 = vector.broadcast %63 : vector<1x512xf32> to vector<16x512xf32>
    %65 = arith.mulf %62, %64 : vector<16x512xf32>
    %c1_i32_22 = arith.constant 1 : i32
    %66 = tpu.dynamic_rotate %49 by %c1_i32_22 dim 1 : vector<16x512xf32>, i32 -> vector<16x512xf32>
    %67 = vector.extract_strided_slice %2 {offsets = [3, 0], sizes = [1, 512], strides = [1, 1]} : vector<9x512xf32> to vector<1x512xf32>
    %68 = vector.broadcast %67 : vector<1x512xf32> to vector<16x512xf32>
    %69 = arith.mulf %66, %68 : vector<16x512xf32>
    %70 = vector.extract_strided_slice %2 {offsets = [4, 0], sizes = [1, 512], strides = [1, 1]} : vector<9x512xf32> to vector<1x512xf32>
    %71 = vector.broadcast %70 : vector<1x512xf32> to vector<16x512xf32>
    %72 = arith.mulf %49, %71 : vector<16x512xf32>
    %c511_i32_23 = arith.constant 511 : i32
    %73 = tpu.dynamic_rotate %49 by %c511_i32_23 dim 1 : vector<16x512xf32>, i32 -> vector<16x512xf32>
    %74 = vector.extract_strided_slice %2 {offsets = [5, 0], sizes = [1, 512], strides = [1, 1]} : vector<9x512xf32> to vector<1x512xf32>
    %75 = vector.broadcast %74 : vector<1x512xf32> to vector<16x512xf32>
    %76 = arith.mulf %73, %75 : vector<16x512xf32>
    %c497_i32_24 = arith.constant 497 : i32
    %77 = tpu.dynamic_rotate %49 by %c497_i32_24 dim 1 : vector<16x512xf32>, i32 -> vector<16x512xf32>
    %78 = vector.extract_strided_slice %2 {offsets = [6, 0], sizes = [1, 512], strides = [1, 1]} : vector<9x512xf32> to vector<1x512xf32>
    %79 = vector.broadcast %78 : vector<1x512xf32> to vector<16x512xf32>
    %80 = arith.mulf %77, %79 : vector<16x512xf32>
    %c496_i32_25 = arith.constant 496 : i32
    %81 = tpu.dynamic_rotate %49 by %c496_i32_25 dim 1 : vector<16x512xf32>, i32 -> vector<16x512xf32>
    %82 = vector.extract_strided_slice %2 {offsets = [7, 0], sizes = [1, 512], strides = [1, 1]} : vector<9x512xf32> to vector<1x512xf32>
    %83 = vector.broadcast %82 : vector<1x512xf32> to vector<16x512xf32>
    %84 = arith.mulf %81, %83 : vector<16x512xf32>
    %c495_i32_26 = arith.constant 495 : i32
    %85 = tpu.dynamic_rotate %49 by %c495_i32_26 dim 1 : vector<16x512xf32>, i32 -> vector<16x512xf32>
    %86 = vector.extract_strided_slice %2 {offsets = [8, 0], sizes = [1, 512], strides = [1, 1]} : vector<9x512xf32> to vector<1x512xf32>
    %87 = vector.broadcast %86 : vector<1x512xf32> to vector<16x512xf32>
    %88 = arith.mulf %85, %87 : vector<16x512xf32>
    %89 = tpu.concatenate %57, %61, %65, %69, %72, %76, %80, %84, %88 in 0 : vector<16x512xf32>, vector<16x512xf32>, vector<16x512xf32>, vector<16x512xf32>, vector<16x512xf32>, vector<16x512xf32>, vector<16x512xf32>, vector<16x512xf32>, vector<16x512xf32> -> vector<144x512xf32>
    %90 = arith.truncf %89 : vector<144x512xf32> to vector<144x512xbf16>
    %cst_27 = arith.constant dense<0.000000e+00> : vector<16x512xf32>
    %91 = tpu.matmul %51, %90, %cst_27 {dimension_numbers = #tpu.dot_dimension_numbers<[1], [0], [0], [1], [0, 0, 1, 1], [], []>} : vector<16x144xbf16>, vector<144x512xbf16>, vector<16x512xf32> -> vector<16x512xf32>
    %92 = vector.broadcast %53 : vector<16x1xf32> to vector<16x512xf32>
    %93 = arith.addf %91, %92 : vector<16x512xf32>
    %cst_28 = arith.constant 0.000000e+00 : f32
    %94 = vector.broadcast %cst_28 : f32 to vector<16x512xf32>
    %95 = arith.maximumf %93, %94 : vector<16x512xf32>
    %c0_29 = arith.constant 0 : index
    %c0_30 = arith.constant 0 : index
    %96 = vector.load %arg13[%c0_29, %c0_30] : memref<512x128xf32, #tpu.memory_space<vmem>>, vector<512x128xf32>
    %c511_i32_31 = arith.constant 511 : i32
    %97 = tpu.dynamic_rotate %95 by %c511_i32_31 dim 1 : vector<16x512xf32>, i32 -> vector<16x512xf32>
    %98 = arith.maximumf %95, %97 : vector<16x512xf32>
    %c496_i32_32 = arith.constant 496 : i32
    %99 = tpu.dynamic_rotate %95 by %c496_i32_32 dim 1 : vector<16x512xf32>, i32 -> vector<16x512xf32>
    %c495_i32_33 = arith.constant 495 : i32
    %100 = tpu.dynamic_rotate %95 by %c495_i32_33 dim 1 : vector<16x512xf32>, i32 -> vector<16x512xf32>
    %101 = arith.maximumf %99, %100 : vector<16x512xf32>
    %102 = arith.maximumf %98, %101 : vector<16x512xf32>
    %cst_34 = arith.constant dense<0.000000e+00> : vector<16x128xf32>
    %103 = tpu.matmul %102, %96, %cst_34 {dimension_numbers = #tpu.dot_dimension_numbers<[1], [0], [0], [1], [0, 0, 1, 1], [], []>} : vector<16x512xf32>, vector<512x128xf32>, vector<16x128xf32> -> vector<16x128xf32>
    %c0_35 = arith.constant 0 : index
    %c0_36 = arith.constant 0 : index
    %c0_37 = arith.constant 0 : index
    %104 = vector.load %arg7[%c0_35, %c0_36, %c0_37] : memref<1x32x144xbf16, #tpu.memory_space<vmem>>, vector<1x32x144xbf16>
    %105 = vector.shape_cast %104 : vector<1x32x144xbf16> to vector<32x144xbf16>
    %c0_38 = arith.constant 0 : index
    %c0_39 = arith.constant 0 : index
    %c0_40 = arith.constant 0 : index
    %106 = vector.load %arg8[%c0_38, %c0_39, %c0_40] : memref<1x32x1xf32, #tpu.memory_space<vmem>>, vector<1x32x1xf32>
    %107 = vector.shape_cast %106 : vector<1x32x1xf32> to vector<32x1xf32>
    %c9_i32 = arith.constant 9 : i32
    %108 = tpu.dynamic_rotate %103 by %c9_i32 dim 1 : vector<16x128xf32>, i32 -> vector<16x128xf32>
    %109 = vector.extract_strided_slice %3 {offsets = [0, 0], sizes = [1, 128], strides = [1, 1]} : vector<9x128xf32> to vector<1x128xf32>
    %110 = vector.broadcast %109 : vector<1x128xf32> to vector<16x128xf32>
    %111 = arith.mulf %108, %110 : vector<16x128xf32>
    %c8_i32 = arith.constant 8 : i32
    %112 = tpu.dynamic_rotate %103 by %c8_i32 dim 1 : vector<16x128xf32>, i32 -> vector<16x128xf32>
    %113 = vector.extract_strided_slice %3 {offsets = [1, 0], sizes = [1, 128], strides = [1, 1]} : vector<9x128xf32> to vector<1x128xf32>
    %114 = vector.broadcast %113 : vector<1x128xf32> to vector<16x128xf32>
    %115 = arith.mulf %112, %114 : vector<16x128xf32>
    %c7_i32 = arith.constant 7 : i32
    %116 = tpu.dynamic_rotate %103 by %c7_i32 dim 1 : vector<16x128xf32>, i32 -> vector<16x128xf32>
    %117 = vector.extract_strided_slice %3 {offsets = [2, 0], sizes = [1, 128], strides = [1, 1]} : vector<9x128xf32> to vector<1x128xf32>
    %118 = vector.broadcast %117 : vector<1x128xf32> to vector<16x128xf32>
    %119 = arith.mulf %116, %118 : vector<16x128xf32>
    %c1_i32_41 = arith.constant 1 : i32
    %120 = tpu.dynamic_rotate %103 by %c1_i32_41 dim 1 : vector<16x128xf32>, i32 -> vector<16x128xf32>
    %121 = vector.extract_strided_slice %3 {offsets = [3, 0], sizes = [1, 128], strides = [1, 1]} : vector<9x128xf32> to vector<1x128xf32>
    %122 = vector.broadcast %121 : vector<1x128xf32> to vector<16x128xf32>
    %123 = arith.mulf %120, %122 : vector<16x128xf32>
    %124 = vector.extract_strided_slice %3 {offsets = [4, 0], sizes = [1, 128], strides = [1, 1]} : vector<9x128xf32> to vector<1x128xf32>
    %125 = vector.broadcast %124 : vector<1x128xf32> to vector<16x128xf32>
    %126 = arith.mulf %103, %125 : vector<16x128xf32>
    %c127_i32 = arith.constant 127 : i32
    %127 = tpu.dynamic_rotate %103 by %c127_i32 dim 1 : vector<16x128xf32>, i32 -> vector<16x128xf32>
    %128 = vector.extract_strided_slice %3 {offsets = [5, 0], sizes = [1, 128], strides = [1, 1]} : vector<9x128xf32> to vector<1x128xf32>
    %129 = vector.broadcast %128 : vector<1x128xf32> to vector<16x128xf32>
    %130 = arith.mulf %127, %129 : vector<16x128xf32>
    %c121_i32 = arith.constant 121 : i32
    %131 = tpu.dynamic_rotate %103 by %c121_i32 dim 1 : vector<16x128xf32>, i32 -> vector<16x128xf32>
    %132 = vector.extract_strided_slice %3 {offsets = [6, 0], sizes = [1, 128], strides = [1, 1]} : vector<9x128xf32> to vector<1x128xf32>
    %133 = vector.broadcast %132 : vector<1x128xf32> to vector<16x128xf32>
    %134 = arith.mulf %131, %133 : vector<16x128xf32>
    %c120_i32 = arith.constant 120 : i32
    %135 = tpu.dynamic_rotate %103 by %c120_i32 dim 1 : vector<16x128xf32>, i32 -> vector<16x128xf32>
    %136 = vector.extract_strided_slice %3 {offsets = [7, 0], sizes = [1, 128], strides = [1, 1]} : vector<9x128xf32> to vector<1x128xf32>
    %137 = vector.broadcast %136 : vector<1x128xf32> to vector<16x128xf32>
    %138 = arith.mulf %135, %137 : vector<16x128xf32>
    %c119_i32 = arith.constant 119 : i32
    %139 = tpu.dynamic_rotate %103 by %c119_i32 dim 1 : vector<16x128xf32>, i32 -> vector<16x128xf32>
    %140 = vector.extract_strided_slice %3 {offsets = [8, 0], sizes = [1, 128], strides = [1, 1]} : vector<9x128xf32> to vector<1x128xf32>
    %141 = vector.broadcast %140 : vector<1x128xf32> to vector<16x128xf32>
    %142 = arith.mulf %139, %141 : vector<16x128xf32>
    %143 = tpu.concatenate %111, %115, %119, %123, %126, %130, %134, %138, %142 in 0 : vector<16x128xf32>, vector<16x128xf32>, vector<16x128xf32>, vector<16x128xf32>, vector<16x128xf32>, vector<16x128xf32>, vector<16x128xf32>, vector<16x128xf32>, vector<16x128xf32> -> vector<144x128xf32>
    %144 = arith.truncf %143 : vector<144x128xf32> to vector<144x128xbf16>
    %cst_42 = arith.constant dense<0.000000e+00> : vector<32x128xf32>
    %145 = tpu.matmul %105, %144, %cst_42 {dimension_numbers = #tpu.dot_dimension_numbers<[1], [0], [0], [1], [0, 0, 1, 1], [], []>} : vector<32x144xbf16>, vector<144x128xbf16>, vector<32x128xf32> -> vector<32x128xf32>
    %146 = vector.broadcast %107 : vector<32x1xf32> to vector<32x128xf32>
    %147 = arith.addf %145, %146 : vector<32x128xf32>
    %cst_43 = arith.constant 0.000000e+00 : f32
    %148 = vector.broadcast %cst_43 : f32 to vector<32x128xf32>
    %149 = arith.maximumf %147, %148 : vector<32x128xf32>
    %c0_44 = arith.constant 0 : index
    %c0_45 = arith.constant 0 : index
    %c0_46 = arith.constant 0 : index
    %150 = vector.load %arg9[%c0_44, %c0_45, %c0_46] : memref<1x32x288xbf16, #tpu.memory_space<vmem>>, vector<1x32x288xbf16>
    %151 = vector.shape_cast %150 : vector<1x32x288xbf16> to vector<32x288xbf16>
    %c0_47 = arith.constant 0 : index
    %c0_48 = arith.constant 0 : index
    %c0_49 = arith.constant 0 : index
    %152 = vector.load %arg10[%c0_47, %c0_48, %c0_49] : memref<1x32x1xf32, #tpu.memory_space<vmem>>, vector<1x32x1xf32>
    %153 = vector.shape_cast %152 : vector<1x32x1xf32> to vector<32x1xf32>
    %c9_i32_50 = arith.constant 9 : i32
    %154 = tpu.dynamic_rotate %149 by %c9_i32_50 dim 1 : vector<32x128xf32>, i32 -> vector<32x128xf32>
    %155 = vector.extract_strided_slice %3 {offsets = [0, 0], sizes = [1, 128], strides = [1, 1]} : vector<9x128xf32> to vector<1x128xf32>
    %156 = vector.broadcast %155 : vector<1x128xf32> to vector<32x128xf32>
    %157 = arith.mulf %154, %156 : vector<32x128xf32>
    %c8_i32_51 = arith.constant 8 : i32
    %158 = tpu.dynamic_rotate %149 by %c8_i32_51 dim 1 : vector<32x128xf32>, i32 -> vector<32x128xf32>
    %159 = vector.extract_strided_slice %3 {offsets = [1, 0], sizes = [1, 128], strides = [1, 1]} : vector<9x128xf32> to vector<1x128xf32>
    %160 = vector.broadcast %159 : vector<1x128xf32> to vector<32x128xf32>
    %161 = arith.mulf %158, %160 : vector<32x128xf32>
    %c7_i32_52 = arith.constant 7 : i32
    %162 = tpu.dynamic_rotate %149 by %c7_i32_52 dim 1 : vector<32x128xf32>, i32 -> vector<32x128xf32>
    %163 = vector.extract_strided_slice %3 {offsets = [2, 0], sizes = [1, 128], strides = [1, 1]} : vector<9x128xf32> to vector<1x128xf32>
    %164 = vector.broadcast %163 : vector<1x128xf32> to vector<32x128xf32>
    %165 = arith.mulf %162, %164 : vector<32x128xf32>
    %c1_i32_53 = arith.constant 1 : i32
    %166 = tpu.dynamic_rotate %149 by %c1_i32_53 dim 1 : vector<32x128xf32>, i32 -> vector<32x128xf32>
    %167 = vector.extract_strided_slice %3 {offsets = [3, 0], sizes = [1, 128], strides = [1, 1]} : vector<9x128xf32> to vector<1x128xf32>
    %168 = vector.broadcast %167 : vector<1x128xf32> to vector<32x128xf32>
    %169 = arith.mulf %166, %168 : vector<32x128xf32>
    %170 = vector.extract_strided_slice %3 {offsets = [4, 0], sizes = [1, 128], strides = [1, 1]} : vector<9x128xf32> to vector<1x128xf32>
    %171 = vector.broadcast %170 : vector<1x128xf32> to vector<32x128xf32>
    %172 = arith.mulf %149, %171 : vector<32x128xf32>
    %c127_i32_54 = arith.constant 127 : i32
    %173 = tpu.dynamic_rotate %149 by %c127_i32_54 dim 1 : vector<32x128xf32>, i32 -> vector<32x128xf32>
    %174 = vector.extract_strided_slice %3 {offsets = [5, 0], sizes = [1, 128], strides = [1, 1]} : vector<9x128xf32> to vector<1x128xf32>
    %175 = vector.broadcast %174 : vector<1x128xf32> to vector<32x128xf32>
    %176 = arith.mulf %173, %175 : vector<32x128xf32>
    %c121_i32_55 = arith.constant 121 : i32
    %177 = tpu.dynamic_rotate %149 by %c121_i32_55 dim 1 : vector<32x128xf32>, i32 -> vector<32x128xf32>
    %178 = vector.extract_strided_slice %3 {offsets = [6, 0], sizes = [1, 128], strides = [1, 1]} : vector<9x128xf32> to vector<1x128xf32>
    %179 = vector.broadcast %178 : vector<1x128xf32> to vector<32x128xf32>
    %180 = arith.mulf %177, %179 : vector<32x128xf32>
    %c120_i32_56 = arith.constant 120 : i32
    %181 = tpu.dynamic_rotate %149 by %c120_i32_56 dim 1 : vector<32x128xf32>, i32 -> vector<32x128xf32>
    %182 = vector.extract_strided_slice %3 {offsets = [7, 0], sizes = [1, 128], strides = [1, 1]} : vector<9x128xf32> to vector<1x128xf32>
    %183 = vector.broadcast %182 : vector<1x128xf32> to vector<32x128xf32>
    %184 = arith.mulf %181, %183 : vector<32x128xf32>
    %c119_i32_57 = arith.constant 119 : i32
    %185 = tpu.dynamic_rotate %149 by %c119_i32_57 dim 1 : vector<32x128xf32>, i32 -> vector<32x128xf32>
    %186 = vector.extract_strided_slice %3 {offsets = [8, 0], sizes = [1, 128], strides = [1, 1]} : vector<9x128xf32> to vector<1x128xf32>
    %187 = vector.broadcast %186 : vector<1x128xf32> to vector<32x128xf32>
    %188 = arith.mulf %185, %187 : vector<32x128xf32>
    %189 = tpu.concatenate %157, %161, %165, %169, %172, %176, %180, %184, %188 in 0 : vector<32x128xf32>, vector<32x128xf32>, vector<32x128xf32>, vector<32x128xf32>, vector<32x128xf32>, vector<32x128xf32>, vector<32x128xf32>, vector<32x128xf32>, vector<32x128xf32> -> vector<288x128xf32>
    %190 = arith.truncf %189 : vector<288x128xf32> to vector<288x128xbf16>
    %cst_58 = arith.constant dense<0.000000e+00> : vector<32x128xf32>
    %191 = tpu.matmul %151, %190, %cst_58 {dimension_numbers = #tpu.dot_dimension_numbers<[1], [0], [0], [1], [0, 0, 1, 1], [], []>} : vector<32x288xbf16>, vector<288x128xbf16>, vector<32x128xf32> -> vector<32x128xf32>
    %192 = vector.broadcast %153 : vector<32x1xf32> to vector<32x128xf32>
    %193 = arith.addf %191, %192 : vector<32x128xf32>
    %cst_59 = arith.constant 0.000000e+00 : f32
    %194 = vector.broadcast %cst_59 : f32 to vector<32x128xf32>
    %195 = arith.maximumf %193, %194 : vector<32x128xf32>
    %c0_60 = arith.constant 0 : index
    %c0_61 = arith.constant 0 : index
    %196 = vector.load %arg14[%c0_60, %c0_61] : memref<128x32xf32, #tpu.memory_space<vmem>>, vector<128x32xf32>
    %c127_i32_62 = arith.constant 127 : i32
    %197 = tpu.dynamic_rotate %195 by %c127_i32_62 dim 1 : vector<32x128xf32>, i32 -> vector<32x128xf32>
    %198 = arith.maximumf %195, %197 : vector<32x128xf32>
    %c120_i32_63 = arith.constant 120 : i32
    %199 = tpu.dynamic_rotate %195 by %c120_i32_63 dim 1 : vector<32x128xf32>, i32 -> vector<32x128xf32>
    %c119_i32_64 = arith.constant 119 : i32
    %200 = tpu.dynamic_rotate %195 by %c119_i32_64 dim 1 : vector<32x128xf32>, i32 -> vector<32x128xf32>
    %201 = arith.maximumf %199, %200 : vector<32x128xf32>
    %202 = arith.maximumf %198, %201 : vector<32x128xf32>
    %cst_65 = arith.constant dense<0.000000e+00> : vector<32x32xf32>
    %203 = tpu.matmul %202, %196, %cst_65 {dimension_numbers = #tpu.dot_dimension_numbers<[1], [0], [0], [1], [0, 0, 1, 1], [], []>} : vector<32x128xf32>, vector<128x32xf32>, vector<32x32xf32> -> vector<32x32xf32>
    %c0_66 = arith.constant 0 : index
    %c0_67 = arith.constant 0 : index
    %204 = vector.load %arg15[%c0_66, %c0_67] : memref<32x8xf32, #tpu.memory_space<vmem>>, vector<32x8xf32>
    %cst_68 = arith.constant dense<0.000000e+00> : vector<32x8xf32>
    %205 = tpu.matmul %203, %204, %cst_68 {dimension_numbers = #tpu.dot_dimension_numbers<[1], [0], [0], [1], [0, 0, 1, 1], [], []>} : vector<32x32xf32>, vector<32x8xf32>, vector<32x8xf32> -> vector<32x8xf32>
    %c0_69 = arith.constant 0 : index
    %c0_70 = arith.constant 0 : index
    %c0_71 = arith.constant 0 : index
    %206 = vector.load %arg16[%c0_69, %c0_70, %c0_71] : memref<1x32x8xf32, #tpu.memory_space<vmem>>, vector<1x32x8xf32>
    %207 = vector.shape_cast %206 : vector<1x32x8xf32> to vector<32x8xf32>
    %208 = vector.shape_cast %205 : vector<32x8xf32> to vector<1x32x8xf32>
    tpu.vector_store %arg16[%c0_69, %c0_70, %c0_71], %208 {strides = array<i32>} : memref<1x32x8xf32, #tpu.memory_space<vmem>>, vector<1x32x8xf32>,
    return
  }
  func.func @transform_0(%arg0: i32, %arg1: memref<3xi32, #tpu.memory_space<smem>>) -> (i32, i32, i32) {
    %c0_i32 = arith.constant 0 : i32
    %c0_i32_0 = arith.constant 0 : i32
    %c0_i32_1 = arith.constant 0 : i32
    return %arg0, %c0_i32, %c0_i32_0 : i32, i32, i32
  }
  func.func @transform_1(%arg0: i32, %arg1: memref<3xi32, #tpu.memory_space<smem>>) -> (i32, i32, i32) {
    %0 = arith.index_cast %arg0 : i32 to index
    %1 = memref.load %arg1[%0] : memref<3xi32, #tpu.memory_space<smem>>
    %c0_i32 = arith.constant 0 : i32
    %c0_i32_0 = arith.constant 0 : i32
    %c0_i32_1 = arith.constant 0 : i32
    return %1, %c0_i32, %c0_i32_0 : i32, i32, i32
  }
  func.func @transform_2(%arg0: i32, %arg1: memref<3xi32, #tpu.memory_space<smem>>) -> (i32, i32, i32) {
    %0 = arith.index_cast %arg0 : i32 to index
    %1 = memref.load %arg1[%0] : memref<3xi32, #tpu.memory_space<smem>>
    %c0_i32 = arith.constant 0 : i32
    %c0_i32_0 = arith.constant 0 : i32
    %c0_i32_1 = arith.constant 0 : i32
    return %1, %c0_i32, %c0_i32_0 : i32, i32, i32
  }
  func.func @transform_3(%arg0: i32, %arg1: memref<3xi32, #tpu.memory_space<smem>>) -> (i32, i32, i32) {
    %0 = arith.index_cast %arg0 : i32 to index
    %1 = memref.load %arg1[%0] : memref<3xi32, #tpu.memory_space<smem>>
    %c0_i32 = arith.constant 0 : i32
    %c0_i32_0 = arith.constant 0 : i32
    %c0_i32_1 = arith.constant 0 : i32
    return %1, %c0_i32, %c0_i32_0 : i32, i32, i32
  }
  func.func @transform_4(%arg0: i32, %arg1: memref<3xi32, #tpu.memory_space<smem>>) -> (i32, i32, i32) {
    %0 = arith.index_cast %arg0 : i32 to index
    %1 = memref.load %arg1[%0] : memref<3xi32, #tpu.memory_space<smem>>
    %c0_i32 = arith.constant 0 : i32
    %c0_i32_0 = arith.constant 0 : i32
    %c0_i32_1 = arith.constant 0 : i32
    return %1, %c0_i32, %c0_i32_0 : i32, i32, i32
  }
  func.func @transform_5(%arg0: i32, %arg1: memref<3xi32, #tpu.memory_space<smem>>) -> (i32, i32, i32) {
    %0 = arith.index_cast %arg0 : i32 to index
    %1 = memref.load %arg1[%0] : memref<3xi32, #tpu.memory_space<smem>>
    %c0_i32 = arith.constant 0 : i32
    %c0_i32_0 = arith.constant 0 : i32
    %c0_i32_1 = arith.constant 0 : i32
    return %1, %c0_i32, %c0_i32_0 : i32, i32, i32
  }
  func.func @transform_6(%arg0: i32, %arg1: memref<3xi32, #tpu.memory_space<smem>>) -> (i32, i32, i32) {
    %0 = arith.index_cast %arg0 : i32 to index
    %1 = memref.load %arg1[%0] : memref<3xi32, #tpu.memory_space<smem>>
    %c0_i32 = arith.constant 0 : i32
    %c0_i32_0 = arith.constant 0 : i32
    %c0_i32_1 = arith.constant 0 : i32
    return %1, %c0_i32, %c0_i32_0 : i32, i32, i32
  }
  func.func @transform_7(%arg0: i32, %arg1: memref<3xi32, #tpu.memory_space<smem>>) -> (i32, i32, i32) {
    %0 = arith.index_cast %arg0 : i32 to index
    %1 = memref.load %arg1[%0] : memref<3xi32, #tpu.memory_space<smem>>
    %c0_i32 = arith.constant 0 : i32
    %c0_i32_0 = arith.constant 0 : i32
    %c0_i32_1 = arith.constant 0 : i32
    return %1, %c0_i32, %c0_i32_0 : i32, i32, i32
  }
  func.func @transform_8(%arg0: i32, %arg1: memref<3xi32, #tpu.memory_space<smem>>) -> (i32, i32, i32) {
    %0 = arith.index_cast %arg0 : i32 to index
    %1 = memref.load %arg1[%0] : memref<3xi32, #tpu.memory_space<smem>>
    %c0_i32 = arith.constant 0 : i32
    %c0_i32_0 = arith.constant 0 : i32
    %c0_i32_1 = arith.constant 0 : i32
    return %1, %c0_i32, %c0_i32_0 : i32, i32, i32
  }
  func.func @transform_9(%arg0: i32, %arg1: memref<3xi32, #tpu.memory_space<smem>>) -> (i32, i32) {
    %c0_i32 = arith.constant 0 : i32
    %c0_i32_0 = arith.constant 0 : i32
    %c0_i32_1 = arith.constant 0 : i32
    return %c0_i32, %c0_i32_0 : i32, i32
  }
  func.func @transform_10(%arg0: i32, %arg1: memref<3xi32, #tpu.memory_space<smem>>) -> (i32, i32) {
    %c0_i32 = arith.constant 0 : i32
    %c0_i32_0 = arith.constant 0 : i32
    %c0_i32_1 = arith.constant 0 : i32
    return %c0_i32, %c0_i32_0 : i32, i32
  }
  func.func @transform_11(%arg0: i32, %arg1: memref<3xi32, #tpu.memory_space<smem>>) -> (i32, i32) {
    %c0_i32 = arith.constant 0 : i32
    %c0_i32_0 = arith.constant 0 : i32
    %c0_i32_1 = arith.constant 0 : i32
    return %c0_i32, %c0_i32_0 : i32, i32
  }
  func.func @transform_12(%arg0: i32, %arg1: memref<3xi32, #tpu.memory_space<smem>>) -> (i32, i32) {
    %c0_i32 = arith.constant 0 : i32
    %c0_i32_0 = arith.constant 0 : i32
    %c0_i32_1 = arith.constant 0 : i32
    return %c0_i32, %c0_i32_0 : i32, i32
  }
  func.func @transform_13(%arg0: i32, %arg1: memref<3xi32, #tpu.memory_space<smem>>) -> (i32, i32) {
    %c0_i32 = arith.constant 0 : i32
    %c0_i32_0 = arith.constant 0 : i32
    %c0_i32_1 = arith.constant 0 : i32
    return %c0_i32, %c0_i32_0 : i32, i32
  }
  func.func @transform_14(%arg0: i32, %arg1: memref<3xi32, #tpu.memory_space<smem>>) -> (i32, i32, i32) {
    %c0_i32 = arith.constant 0 : i32
    %c0_i32_0 = arith.constant 0 : i32
    %c0_i32_1 = arith.constant 0 : i32
    return %arg0, %c0_i32, %c0_i32_0 : i32, i32, i32
  }
}

module attributes {stable_mosaic.version = 11 : i64} {
  func.func @_head_kernel(%arg0: i32, %arg1: memref<4x128xf32, #tpu.memory_space<vmem>>, %arg2: memref<2x128xf32, #tpu.memory_space<vmem>>, %arg3: memref<2x4xf32, #tpu.memory_space<vmem>>, %arg4: memref<128x64xbf16, #tpu.memory_space<vmem>>, %arg5: memref<1x64xf32, #tpu.memory_space<vmem>>, %arg6: memref<1x64xf32, #tpu.memory_space<vmem>>, %arg7: memref<1x1xf32, #tpu.memory_space<vmem>>, %arg8: memref<128x128xbf16, #tpu.memory_space<vmem>>, %arg9: memref<128x128xbf16, #tpu.memory_space<vmem>>, %arg10: memref<1x128xf32, #tpu.memory_space<vmem>>, %arg11: memref<128x64xbf16, #tpu.memory_space<vmem>>, %arg12: memref<1x64xf32, #tpu.memory_space<vmem>>, %arg13: memref<64x16xbf16, #tpu.memory_space<vmem>>, %arg14: memref<2x1xi32, #tpu.memory_space<vmem>>, %arg15: memref<2x16xf32, #tpu.memory_space<vmem>>, %arg16: memref<2x64xf32, #tpu.memory_space<vmem>>) attributes {dimension_semantics = [#tpu.dimension_semantics<arbitrary>], iteration_bounds = array<i64: 1>, scalar_prefetch = 0 : i64, scratch_operands = 0 : i64, tpu.core_type = #tpu.core_type<tc>, window_params = [{pipeline_mode = #tpu.pipeline_mode<synchronous>, transform_indices = @transform_0, window_bounds = array<i64: 4, 128>}, {pipeline_mode = #tpu.pipeline_mode<synchronous>, transform_indices = @transform_1, window_bounds = array<i64: 2, 128>}, {pipeline_mode = #tpu.pipeline_mode<synchronous>, transform_indices = @transform_2, window_bounds = array<i64: 2, 4>}, {pipeline_mode = #tpu.pipeline_mode<synchronous>, transform_indices = @transform_3, window_bounds = array<i64: 128, 64>}, {pipeline_mode = #tpu.pipeline_mode<synchronous>, transform_indices = @transform_4, window_bounds = array<i64: 1, 64>}, {pipeline_mode = #tpu.pipeline_mode<synchronous>, transform_indices = @transform_5, window_bounds = array<i64: 1, 64>}, {pipeline_mode = #tpu.pipeline_mode<synchronous>, transform_indices = @transform_6, window_bounds = array<i64: 1, 1>}, {pipeline_mode = #tpu.pipeline_mode<synchronous>, transform_indices = @transform_7, window_bounds = array<i64: 128, 128>}, {pipeline_mode = #tpu.pipeline_mode<synchronous>, transform_indices = @transform_8, window_bounds = array<i64: 128, 128>}, {pipeline_mode = #tpu.pipeline_mode<synchronous>, transform_indices = @transform_9, window_bounds = array<i64: 1, 128>}, {pipeline_mode = #tpu.pipeline_mode<synchronous>, transform_indices = @transform_10, window_bounds = array<i64: 128, 64>}, {pipeline_mode = #tpu.pipeline_mode<synchronous>, transform_indices = @transform_11, window_bounds = array<i64: 1, 64>}, {pipeline_mode = #tpu.pipeline_mode<synchronous>, transform_indices = @transform_12, window_bounds = array<i64: 64, 16>}, {pipeline_mode = #tpu.pipeline_mode<synchronous>, transform_indices = @transform_13, window_bounds = array<i64: 2, 1>}, {pipeline_mode = #tpu.pipeline_mode<synchronous>, transform_indices = @transform_14, window_bounds = array<i64: 2, 16>}, {pipeline_mode = #tpu.pipeline_mode<synchronous>, transform_indices = @transform_15, window_bounds = array<i64: 2, 64>}]} {
    %c0 = arith.constant 0 : index
    %c0_0 = arith.constant 0 : index
    %0 = vector.load %arg1[%c0, %c0_0] : memref<4x128xf32, #tpu.memory_space<vmem>>, vector<4x128xf32>
    %c0_1 = arith.constant 0 : index
    %c0_2 = arith.constant 0 : index
    %1 = vector.load %arg3[%c0_1, %c0_2] : memref<2x4xf32, #tpu.memory_space<vmem>>, vector<2x4xf32>
    %2 = arith.truncf %0 : vector<4x128xf32> to vector<4x128xbf16>
    %c0_3 = arith.constant 0 : index
    %c0_4 = arith.constant 0 : index
    %3 = vector.load %arg4[%c0_3, %c0_4] : memref<128x64xbf16, #tpu.memory_space<vmem>>, vector<128x64xbf16>
    %cst = arith.constant dense<0.000000e+00> : vector<4x64xf32>
    %4 = tpu.matmul %2, %3, %cst {dimension_numbers = #tpu.dot_dimension_numbers<[1], [0], [0], [1], [0, 0, 1, 1], [], []>} : vector<4x128xbf16>, vector<128x64xbf16>, vector<4x64xf32> -> vector<4x64xf32>
    %c0_5 = arith.constant 0 : index
    %c0_6 = arith.constant 0 : index
    %5 = vector.load %arg5[%c0_5, %c0_6] : memref<1x64xf32, #tpu.memory_space<vmem>>, vector<1x64xf32>
    %6 = vector.broadcast %5 : vector<1x64xf32> to vector<4x64xf32>
    %7 = arith.addf %4, %6 : vector<4x64xf32>
    %cst_7 = arith.constant 0.000000e+00 : f32
    %8 = vector.broadcast %cst_7 : f32 to vector<4x64xf32>
    %9 = arith.maximumf %7, %8 : vector<4x64xf32>
    %c0_8 = arith.constant 0 : index
    %c0_9 = arith.constant 0 : index
    %10 = vector.load %arg6[%c0_8, %c0_9] : memref<1x64xf32, #tpu.memory_space<vmem>>, vector<1x64xf32>
    %11 = vector.broadcast %10 : vector<1x64xf32> to vector<4x64xf32>
    %12 = arith.mulf %9, %11 : vector<4x64xf32>
    %cst_10 = arith.constant dense<0.000000e+00> : vector<4xf32>
    %13 = vector.multi_reduction <add>, %12, %cst_10 [1] : vector<4x64xf32> to vector<4xf32>
    %14 = vector.shape_cast %13 : vector<4xf32> to vector<4x1xf32>
    %c0_11 = arith.constant 0 : index
    %c0_12 = arith.constant 0 : index
    %15 = vector.load %arg7[%c0_11, %c0_12] : memref<1x1xf32, #tpu.memory_space<vmem>>, vector<1x1xf32>
    %16 = vector.broadcast %15 : vector<1x1xf32> to vector<4x1xf32>
    %17 = arith.addf %14, %16 : vector<4x1xf32>
    %cst_13 = arith.constant dense<0xFF800000> : vector<1xf32>
    %18 = vector.multi_reduction <maximumf>, %17, %cst_13 [0] : vector<4x1xf32> to vector<1xf32>
    %19 = vector.shape_cast %18 : vector<1xf32> to vector<1x1xf32>
    %20 = vector.broadcast %19 : vector<1x1xf32> to vector<4x1xf32>
    %21 = arith.subf %17, %20 : vector<4x1xf32>
    %22 = math.exp %21 : vector<4x1xf32>
    %23 = vector.broadcast %22 : vector<4x1xf32> to vector<4x128xf32>
    %24 = arith.mulf %0, %23 : vector<4x128xf32>
    %cst_14 = arith.constant dense<0.000000e+00> : vector<2x128xf32>
    %25 = tpu.matmul %1, %24, %cst_14 {dimension_numbers = #tpu.dot_dimension_numbers<[1], [0], [0], [1], [0, 0, 1, 1], [], []>} : vector<2x4xf32>, vector<4x128xf32>, vector<2x128xf32> -> vector<2x128xf32>
    %26 = vector.shape_cast %22 : vector<4x1xf32> to vector<4x1xf32>
    %27 = vector.broadcast %26 : vector<4x1xf32> to vector<4x128xf32>
    %cst_15 = arith.constant dense<0.000000e+00> : vector<2x128xf32>
    %28 = tpu.matmul %1, %27, %cst_15 {dimension_numbers = #tpu.dot_dimension_numbers<[1], [0], [0], [1], [0, 0, 1, 1], [], []>} : vector<2x4xf32>, vector<4x128xf32>, vector<2x128xf32> -> vector<2x128xf32>
    %29 = tpu.reciprocal %28 {approx = true} : vector<2x128xf32> -> vector<2x128xf32>
    %30 = arith.mulf %25, %29 : vector<2x128xf32>
    %cst_16 = arith.constant 5.000000e-01 : f32
    %31 = vector.broadcast %cst_16 : f32 to vector<2x128xf32>
    %32 = arith.mulf %30, %31 : vector<2x128xf32>
    %c0_17 = arith.constant 0 : index
    %c0_18 = arith.constant 0 : index
    %33 = vector.load %arg2[%c0_17, %c0_18] : memref<2x128xf32, #tpu.memory_space<vmem>>, vector<2x128xf32>
    %34 = arith.truncf %33 : vector<2x128xf32> to vector<2x128xbf16>
    %c0_19 = arith.constant 0 : index
    %c0_20 = arith.constant 0 : index
    %35 = vector.load %arg8[%c0_19, %c0_20] : memref<128x128xbf16, #tpu.memory_space<vmem>>, vector<128x128xbf16>
    %cst_21 = arith.constant dense<0.000000e+00> : vector<2x128xf32>
    %36 = tpu.matmul %34, %35, %cst_21 {dimension_numbers = #tpu.dot_dimension_numbers<[1], [0], [0], [1], [0, 0, 1, 1], [], []>} : vector<2x128xbf16>, vector<128x128xbf16>, vector<2x128xf32> -> vector<2x128xf32>
    %37 = arith.truncf %32 : vector<2x128xf32> to vector<2x128xbf16>
    %c0_22 = arith.constant 0 : index
    %c0_23 = arith.constant 0 : index
    %38 = vector.load %arg9[%c0_22, %c0_23] : memref<128x128xbf16, #tpu.memory_space<vmem>>, vector<128x128xbf16>
    %cst_24 = arith.constant dense<0.000000e+00> : vector<2x128xf32>
    %39 = tpu.matmul %37, %38, %cst_24 {dimension_numbers = #tpu.dot_dimension_numbers<[1], [0], [0], [1], [0, 0, 1, 1], [], []>} : vector<2x128xbf16>, vector<128x128xbf16>, vector<2x128xf32> -> vector<2x128xf32>
    %40 = arith.addf %36, %39 : vector<2x128xf32>
    %c0_25 = arith.constant 0 : index
    %c0_26 = arith.constant 0 : index
    %41 = vector.load %arg10[%c0_25, %c0_26] : memref<1x128xf32, #tpu.memory_space<vmem>>, vector<1x128xf32>
    %42 = vector.broadcast %41 : vector<1x128xf32> to vector<2x128xf32>
    %43 = arith.addf %40, %42 : vector<2x128xf32>
    %cst_27 = arith.constant 0.000000e+00 : f32
    %44 = vector.broadcast %cst_27 : f32 to vector<2x128xf32>
    %45 = arith.maximumf %43, %44 : vector<2x128xf32>
    %46 = arith.truncf %45 : vector<2x128xf32> to vector<2x128xbf16>
    %c0_28 = arith.constant 0 : index
    %c0_29 = arith.constant 0 : index
    %47 = vector.load %arg11[%c0_28, %c0_29] : memref<128x64xbf16, #tpu.memory_space<vmem>>, vector<128x64xbf16>
    %cst_30 = arith.constant dense<0.000000e+00> : vector<2x64xf32>
    %48 = tpu.matmul %46, %47, %cst_30 {dimension_numbers = #tpu.dot_dimension_numbers<[1], [0], [0], [1], [0, 0, 1, 1], [], []>} : vector<2x128xbf16>, vector<128x64xbf16>, vector<2x64xf32> -> vector<2x64xf32>
    %c0_31 = arith.constant 0 : index
    %c0_32 = arith.constant 0 : index
    %49 = vector.load %arg12[%c0_31, %c0_32] : memref<1x64xf32, #tpu.memory_space<vmem>>, vector<1x64xf32>
    %50 = vector.broadcast %49 : vector<1x64xf32> to vector<2x64xf32>
    %51 = arith.addf %48, %50 : vector<2x64xf32>
    %52 = arith.mulf %51, %51 : vector<2x64xf32>
    %cst_33 = arith.constant dense<0.000000e+00> : vector<2xf32>
    %53 = vector.multi_reduction <add>, %52, %cst_33 [1] : vector<2x64xf32> to vector<2xf32>
    %54 = vector.shape_cast %53 : vector<2xf32> to vector<2x1xf32>
    %cst_34 = arith.constant 1.000000e-24 : f32
    %55 = vector.broadcast %cst_34 : f32 to vector<2x1xf32>
    %56 = arith.maximumf %54, %55 : vector<2x1xf32>
    %57 = math.rsqrt %56 : vector<2x1xf32>
    %58 = vector.broadcast %57 : vector<2x1xf32> to vector<2x64xf32>
    %59 = arith.mulf %51, %58 : vector<2x64xf32>
    %c0_35 = arith.constant 0 : index
    %c0_36 = arith.constant 0 : index
    %60 = vector.load %arg16[%c0_35, %c0_36] : memref<2x64xf32, #tpu.memory_space<vmem>>, vector<2x64xf32>
    tpu.vector_store %arg16[%c0_35, %c0_36], %59 {strides = array<i32>} : memref<2x64xf32, #tpu.memory_space<vmem>>, vector<2x64xf32>,
    %61 = arith.truncf %59 : vector<2x64xf32> to vector<2x64xbf16>
    %c0_37 = arith.constant 0 : index
    %c0_38 = arith.constant 0 : index
    %62 = vector.load %arg13[%c0_37, %c0_38] : memref<64x16xbf16, #tpu.memory_space<vmem>>, vector<64x16xbf16>
    %cst_39 = arith.constant dense<0.000000e+00> : vector<2x16xf32>
    %63 = tpu.matmul %61, %62, %cst_39 {dimension_numbers = #tpu.dot_dimension_numbers<[1], [0], [0], [1], [0, 0, 1, 1], [], []>} : vector<2x64xbf16>, vector<64x16xbf16>, vector<2x16xf32> -> vector<2x16xf32>
    %cst_40 = arith.constant -1.000000e+00 : f32
    %cst_41 = arith.constant 1.000000e+00 : f32
    %64 = vector.broadcast %cst_40 : f32 to vector<2x16xf32>
    %65 = arith.maximumf %64, %63 : vector<2x16xf32>
    %66 = vector.broadcast %cst_41 : f32 to vector<2x16xf32>
    %67 = arith.minimumf %66, %65 : vector<2x16xf32>
    %68 = arith.mulf %67, %67 : vector<2x16xf32>
    %cst_42 = arith.constant 1.000000e+00 : f32
    %69 = vector.broadcast %cst_42 : f32 to vector<2x16xf32>
    %70 = arith.subf %69, %68 : vector<2x16xf32>
    %cst_43 = arith.constant 0.000000e+00 : f32
    %71 = vector.broadcast %cst_43 : f32 to vector<2x16xf32>
    %72 = arith.maximumf %70, %71 : vector<2x16xf32>
    %73 = math.sqrt %72 : vector<2x16xf32>
    %cst_44 = arith.constant 0.87758255 : f32
    %74 = vector.broadcast %cst_44 : f32 to vector<2x16xf32>
    %75 = arith.mulf %67, %74 : vector<2x16xf32>
    %cst_45 = arith.constant 0.47942555 : f32
    %76 = vector.broadcast %cst_45 : f32 to vector<2x16xf32>
    %77 = arith.mulf %73, %76 : vector<2x16xf32>
    %78 = arith.subf %75, %77 : vector<2x16xf32>
    %cst_46 = arith.constant -0.87758255 : f32
    %79 = vector.broadcast %cst_46 : f32 to vector<2x16xf32>
    %80 = arith.cmpf ogt, %67, %79 : vector<2x16xf32>
    %cst_47 = arith.constant 0.239712775 : f32
    %81 = vector.broadcast %cst_47 : f32 to vector<2x16xf32>
    %82 = arith.subf %67, %81 : vector<2x16xf32>
    %83 = arith.select %80, %78, %82 : vector<2x16xi1>, vector<2x16xf32>
    %84 = tpu.iota {dimensions = array<i32: 1>} : vector<2x16xi32>
    %c0_48 = arith.constant 0 : index
    %c0_49 = arith.constant 0 : index
    %85 = vector.load %arg14[%c0_48, %c0_49] : memref<2x1xi32, #tpu.memory_space<vmem>>, vector<2x1xi32>
    %86 = vector.broadcast %85 : vector<2x1xi32> to vector<2x16xi32>
    %87 = arith.cmpi eq, %84, %86 : vector<2x16xi32>
    %88 = arith.extui %87 : vector<2x16xi1> to vector<2x16xi32>
    %89 = arith.sitofp %88 : vector<2x16xi32> to vector<2x16xf32>
    %90 = arith.mulf %89, %83 : vector<2x16xf32>
    %cst_50 = arith.constant 1.000000e+00 : f32
    %91 = vector.broadcast %cst_50 : f32 to vector<2x16xf32>
    %92 = arith.subf %91, %89 : vector<2x16xf32>
    %93 = arith.mulf %92, %67 : vector<2x16xf32>
    %94 = arith.addf %90, %93 : vector<2x16xf32>
    %cst_51 = arith.constant 6.400000e+01 : f32
    %95 = vector.broadcast %cst_51 : f32 to vector<2x16xf32>
    %96 = arith.mulf %94, %95 : vector<2x16xf32>
    %c0_52 = arith.constant 0 : index
    %c0_53 = arith.constant 0 : index
    %97 = vector.load %arg15[%c0_52, %c0_53] : memref<2x16xf32, #tpu.memory_space<vmem>>, vector<2x16xf32>
    tpu.vector_store %arg15[%c0_52, %c0_53], %96 {strides = array<i32>} : memref<2x16xf32, #tpu.memory_space<vmem>>, vector<2x16xf32>,
    return
  }
  func.func @transform_0(%arg0: i32) -> (i32, i32) {
    %c0_i32 = arith.constant 0 : i32
    %c0_i32_0 = arith.constant 0 : i32
    %c0_i32_1 = arith.constant 0 : i32
    return %c0_i32, %c0_i32_0 : i32, i32
  }
  func.func @transform_1(%arg0: i32) -> (i32, i32) {
    %c0_i32 = arith.constant 0 : i32
    %c0_i32_0 = arith.constant 0 : i32
    %c0_i32_1 = arith.constant 0 : i32
    return %c0_i32, %c0_i32_0 : i32, i32
  }
  func.func @transform_2(%arg0: i32) -> (i32, i32) {
    %c0_i32 = arith.constant 0 : i32
    %c0_i32_0 = arith.constant 0 : i32
    %c0_i32_1 = arith.constant 0 : i32
    return %c0_i32, %c0_i32_0 : i32, i32
  }
  func.func @transform_3(%arg0: i32) -> (i32, i32) {
    %c0_i32 = arith.constant 0 : i32
    %c0_i32_0 = arith.constant 0 : i32
    %c0_i32_1 = arith.constant 0 : i32
    return %c0_i32, %c0_i32_0 : i32, i32
  }
  func.func @transform_4(%arg0: i32) -> (i32, i32) {
    %c0_i32 = arith.constant 0 : i32
    %c0_i32_0 = arith.constant 0 : i32
    %c0_i32_1 = arith.constant 0 : i32
    return %c0_i32, %c0_i32_0 : i32, i32
  }
  func.func @transform_5(%arg0: i32) -> (i32, i32) {
    %c0_i32 = arith.constant 0 : i32
    %c0_i32_0 = arith.constant 0 : i32
    %c0_i32_1 = arith.constant 0 : i32
    return %c0_i32, %c0_i32_0 : i32, i32
  }
  func.func @transform_6(%arg0: i32) -> (i32, i32) {
    %c0_i32 = arith.constant 0 : i32
    %c0_i32_0 = arith.constant 0 : i32
    %c0_i32_1 = arith.constant 0 : i32
    return %c0_i32, %c0_i32_0 : i32, i32
  }
  func.func @transform_7(%arg0: i32) -> (i32, i32) {
    %c0_i32 = arith.constant 0 : i32
    %c0_i32_0 = arith.constant 0 : i32
    %c0_i32_1 = arith.constant 0 : i32
    return %c0_i32, %c0_i32_0 : i32, i32
  }
  func.func @transform_8(%arg0: i32) -> (i32, i32) {
    %c0_i32 = arith.constant 0 : i32
    %c0_i32_0 = arith.constant 0 : i32
    %c0_i32_1 = arith.constant 0 : i32
    return %c0_i32, %c0_i32_0 : i32, i32
  }
  func.func @transform_9(%arg0: i32) -> (i32, i32) {
    %c0_i32 = arith.constant 0 : i32
    %c0_i32_0 = arith.constant 0 : i32
    %c0_i32_1 = arith.constant 0 : i32
    return %c0_i32, %c0_i32_0 : i32, i32
  }
  func.func @transform_10(%arg0: i32) -> (i32, i32) {
    %c0_i32 = arith.constant 0 : i32
    %c0_i32_0 = arith.constant 0 : i32
    %c0_i32_1 = arith.constant 0 : i32
    return %c0_i32, %c0_i32_0 : i32, i32
  }
  func.func @transform_11(%arg0: i32) -> (i32, i32) {
    %c0_i32 = arith.constant 0 : i32
    %c0_i32_0 = arith.constant 0 : i32
    %c0_i32_1 = arith.constant 0 : i32
    return %c0_i32, %c0_i32_0 : i32, i32
  }
  func.func @transform_12(%arg0: i32) -> (i32, i32) {
    %c0_i32 = arith.constant 0 : i32
    %c0_i32_0 = arith.constant 0 : i32
    %c0_i32_1 = arith.constant 0 : i32
    return %c0_i32, %c0_i32_0 : i32, i32
  }
  func.func @transform_13(%arg0: i32) -> (i32, i32) {
    %c0_i32 = arith.constant 0 : i32
    %c0_i32_0 = arith.constant 0 : i32
    %c0_i32_1 = arith.constant 0 : i32
    return %c0_i32, %c0_i32_0 : i32, i32
  }
  func.func @transform_14(%arg0: i32) -> (i32, i32) {
    %c0_i32 = arith.constant 0 : i32
    %c0_i32_0 = arith.constant 0 : i32
    %c0_i32_1 = arith.constant 0 : i32
    return %c0_i32, %c0_i32_0 : i32, i32
  }
  func.func @transform_15(%arg0: i32) -> (i32, i32) {
    %c0_i32 = arith.constant 0 : i32
    %c0_i32_0 = arith.constant 0 : i32
    %c0_i32_1 = arith.constant 0 : i32
    return %c0_i32, %c0_i32_0 : i32, i32
  }
}

</mosaic_0001>

<bundles_post_ra>
// kernel: forward.3
= control target key start
LH: loop header
LB: loop body
LE: loop exit
PB: predicated region body
PF: predicated region fallthrough
CT: control target
= control target key end

     0   :  { %s1411_s0 = inlined_call_operand.vmem [shape: f32[4,128], index: 0, kind: input, shape index: {}]   ;;  %s1412_s1 = inlined_call_operand.vmem [shape: f32[2,128], index: 1, kind: input, shape index: {}]   ;;  %s1413_s2 = inlined_call_operand.vmem [shape: f32[2,4], index: 2, kind: input, shape index: {}]   ;;  %s1414_s3 = inlined_call_operand.vmem [shape: bf16[128,64], index: 3, kind: input, shape index: {}]   ;;  %s1415_s4 = inlined_call_operand.vmem [shape: f32[1,64], index: 4, kind: input, shape index: {}]   ;;  %s1416_s5 = inlined_call_operand.vmem [shape: f32[1,64], index: 5, kind: input, shape index: {}]   ;;  %s1417_s6 = inlined_call_operand.<no memory space> [shape: f32[1,1], index: 6, kind: input, shape index: {}]   ;;  %s1418_s7 = inlined_call_operand.vmem [shape: bf16[128,128], index: 7, kind: input, shape index: {}]   ;;  %s1419_s8 = inlined_call_operand.vmem [shape: bf16[128,128], index: 8, kind: input, shape index: {}]   ;;  %s1420_s9 = inlined_call_operand.vmem [shape: f32[1,128], index: 9, kind: input, shape index: {}]   ;;  %s1421_s10 = inlined_call_operand.vmem [shape: bf16[128,64], index: 10, kind: input, shape index: {}]   ;;  %s1422_s11 = inlined_call_operand.vmem [shape: f32[1,64], index: 11, kind: input, shape index: {}]   ;;  %s1423_s12 = inlined_call_operand.vmem [shape: bf16[64,16], index: 12, kind: input, shape index: {}]   ;;  %s1424_s13 = inlined_call_operand.vmem [shape: s32[2,1], index: 13, kind: input, shape index: {}]   ;;  %s1425_s14 = inlined_call_operand.hbm [shape: f32[2,16], index: 14, kind: output, shape index: {0}]   ;;  %s1426_s15 = inlined_call_operand.hbm [shape: f32[2,64], index: 15, kind: output, shape index: {1}]  }
   0x1   :  { %v21_v0 = vstv %s1417_s6 }
   0x2   :  { %22 = vst [vmem:[#allocation2] sm:$0x1] %v21_v0 }
   0x3   :  { %23 = vsyncpa [#allocation4], 0  ;;  %v1042_v1 = vld [vmem:[%s1414_s3 + $0x38] sm:$0xff]   ;;  %v1130_v2 = vmov 0.0   ;;  %v1043_v3 = vld [vmem:[%s1414_s3 + $0x30] sm:$0xff]   ;;  %vm1131_vm0 = vmmov 0  }
   0x4   :  { %933 = vmatprep.subr.bf16.mxu0 %v1130_v2  ;;  %953 = vmatprep.subr.mxu1 %v1130_v2  ;;  %v1044_v4 = vld [vmem:[%s1414_s3 + $0x28] sm:$0xff]   ;;  %v1045_v5 = vld [vmem:[%s1414_s3 + $0x20] sm:$0xff]   ;;  %v1046_v6 = vld [vmem:[%s1414_s3 + $0x18] sm:$0xff]  }
   0x5   :  { %934 = vmatpush3.bf16.msra.mxu0 %v1042_v1  ;;  %949 = vmatprep.mubr.msk.bf16.mxu0 %vm1131_vm0, %v1130_v2  ;;  %v1047_v7 = vld [vmem:[%s1414_s3 + $0x10] sm:$0xff]   ;;  %v1048_v8 = vld [vmem:[%s1414_s3 + $0x8] sm:$0xff]   ;;  %v1049_v9 = vld [vmem:[%s1414_s3] sm:$0xff]  }
   0x6   :  { %935 = vmatprep.subr.bf16.mxu0 %v1130_v2  ;;  %955 = vmatprep.mubr.msk.f32.mxu1 %vm1131_vm0, %v1130_v2  ;;  %v54_v10 = vld [vmem:[%s1411_s0] sm:$0xf] }
   0x9   :  { %936 = vmatpush3.bf16.msra.mxu0 %v1043_v3 }
   0xa   :  { %937 = vmatprep.subr.bf16.mxu0 %v1130_v2 }
   0xd   :  { %938 = vmatpush3.bf16.msra.mxu0 %v1044_v4 }
   0xe   :  { %939 = vmatprep.subr.bf16.mxu0 %v1130_v2 }
  0x11   :  { %940 = vmatpush3.bf16.msra.mxu0 %v1045_v5 }
  0x12   :  { %941 = vmatprep.subr.bf16.mxu0 %v1130_v2 }
  0x15   :  { %942 = vmatpush3.bf16.msra.mxu0 %v1046_v6 }
  0x16   :  { %943 = vmatprep.subr.bf16.mxu0 %v1130_v2 }
  0x19   :  { %944 = vmatpush3.bf16.msra.mxu0 %v1047_v7 }
  0x1a   :  { %945 = vmatprep.subr.bf16.mxu0 %v1130_v2 }
  0x1d   :  { %946 = vmatpush3.bf16.msra.mxu0 %v1048_v8 }
  0x1e   :  { %947 = vmatprep.subr.bf16.mxu0 %v1130_v2 }
  0x1f   :  { %24 = vsyncpa [#allocation6], 0  ;;  %v56_v11 = vpack.c.bf16 %v54_v10, %v54_v10  ;;  %v839_v12 = vld [vmem:[%s1415_s4] ss:$0 sm:$0xff]  ;;  %vm177_vm1 = vcmask 519168   ;;  %v1132_v22 = vmov 0  }
  0x20   :  { %v848_v16 = vld [vmem:[%s1416_s5] ss:$0 sm:$0xff]  ;;  %1040 = vset.pattern.permute.xlu0 %v1132_v22  ;;  %1041 = vset.pattern.permute.xlu1 %v1132_v22  ;;  %vm189_vm2 = vcmask 3072   ;;  %v1050_v36 = vld [vmem:[%s1418_s7 + $0x38] sm:$0xff]   ;;  %v1051_v37 = vld [vmem:[%s1418_s7 + $0x30] sm:$0xff]   ;;  %vm210_vm3 = vcmask 1043456  }
  0x21   :  { %948 = vmatpush3.bf16.msra.mxu0 %v1049_v9  ;;  %v849_v23 = vld [vmem:[#allocation2] ss:$0 sm:$0xff]  ;;  %v1053_v38 = vld [vmem:[%s1418_s7 + $0x28] sm:$0xff]   ;;  %vm206_vm4 = vcmask 31744   ;;  %v1052_v42 = vld [vmem:[%s1419_s8 + $0x38] sm:$0xff]   ;;  %vm692_vm5 = vcmask 517120  }
  0x22   :  { %983 = vmatprep.subr.bf16.mxu0 %v1130_v2  ;;  %v55_v41 = vld [vmem:[%s1413_s2] sm:$0x3]  ;;  %v1054_v43 = vld [vmem:[%s1419_s8 + $0x30] sm:$0xff]   ;;  %v1056_v45 = vld [vmem:[%s1419_s8 + $0x28] sm:$0xff]   ;;  %vm733_vm6 = vcmask 523264   ;;  %s1133_s20 = smov [#allocation5]  }
  0x23   :  { %v1055_v44 = vld [vmem:[%s1418_s7 + $0x20] sm:$0xff]   ;;  %v1057_v46 = vld [vmem:[%s1418_s7 + $0x18] sm:$0xff]   ;;  %v1059_v48 = vld [vmem:[%s1418_s7 + $0x10] sm:$0xff]  }
  0x24   :  { %950 = vmatmul.mubr.bf16.vlgmr.msra.gmra.mxu0 %v56_v11  ;;  %v1058_v47 = vld [vmem:[%s1419_s8 + $0x20] sm:$0xff]   ;;  %v1060_v49 = vld [vmem:[%s1419_s8 + $0x18] sm:$0xff]   ;;  %v1061_v50 = vld [vmem:[%s1418_s7 + $0x8] sm:$0xff]  }
  0x25   :  { %999 = vmatprep.mubr.msk.bf16.mxu0 %vm1131_vm0, %v1130_v2  ;;  %984 = vmatpush3.bf16.msra.mxu0 %v1050_v36  ;;  %v1062_v51 = vld [vmem:[%s1419_s8 + $0x10] sm:$0xff]   ;;  %v1063_v52 = vld [vmem:[%s1418_s7] sm:$0xff]   ;;  %v1064_v54 = vld [vmem:[%s1419_s8 + $0x8] sm:$0xff]  }
  0x26   :  { %985 = vmatprep.subr.bf16.mxu0 %v1130_v2  ;;  %v359_v53 = vld [vmem:[%s1412_s1] sm:$0x3]  ;;  %v1066_v0 = vld [vmem:[%s1421_s10 + $0x38] sm:$0xff]   ;;  %v1067_v3 = vld [vmem:[%s1421_s10 + $0x30] sm:$0xff]  }
  0x27   :  { %v360_v55 = vpack.c.bf16 %v359_v53, %v359_v53  ;;  %v1065_v56 = vld [vmem:[%s1419_s8] sm:$0xff]   ;;  %v1068_v4 = vld [vmem:[%s1421_s10 + $0x28] sm:$0xff]   ;;  %v1070_v6 = vld [vmem:[%s1421_s10 + $0x18] sm:$0xff]  }
  0x28   :  { %v1069_v5 = vld [vmem:[%s1421_s10 + $0x20] sm:$0xff]   ;;  %v1071_v7 = vld [vmem:[%s1421_s10 + $0x10] sm:$0xff]  }
  0x29   :  { %986 = vmatpush3.bf16.msra.mxu0 %v1051_v37 }
  0x2a   :  { %987 = vmatprep.subr.bf16.mxu0 %v1130_v2 }
  0x2d   :  { %988 = vmatpush3.bf16.msra.mxu0 %v1053_v38 }
  0x2e   :  { %989 = vmatprep.subr.bf16.mxu0 %v1130_v2 }
  0x31   :  { %990 = vmatpush3.bf16.msra.mxu0 %v1055_v44 }
  0x32   :  { %991 = vmatprep.subr.bf16.mxu0 %v1130_v2 }
  0x35   :  { %992 = vmatpush3.bf16.msra.mxu0 %v1057_v46 }
  0x36   :  { %993 = vmatprep.subr.bf16.mxu0 %v1130_v2 }
  0x39   :  { %994 = vmatpush3.bf16.msra.mxu0 %v1059_v48 }
  0x3a   :  { %995 = vmatprep.subr.bf16.mxu0 %v1130_v2 }
  0x3d   :  { %996 = vmatpush3.bf16.msra.mxu0 %v1061_v50 }
  0x3e   :  { %997 = vmatprep.subr.bf16.mxu0 %v1130_v2 }
  0x41   :  { %998 = vmatpush3.bf16.msra.mxu0 %v1063_v52 }
  0x42   :  { %1023 = vmatprep.subr.bf16.mxu0 %v1130_v2 }
  0x44   :  { %1000 = vmatmul.mubr.bf16.vlgmr.msra.gmra.mxu0 %v360_v55 }
  0x45   :  { %1031 = vmatprep.mubr.msk.bf16.mxu0 %vm1131_vm0, %v1130_v2 }
  0xe4   :  { %v162_v13 = vpop.f32.mrf.mxu0 }
  0xe5   :  { %v163_v14 = vadd.f32 %v839_v12, %v162_v13  ;;  %v1072_v12 = vld [vmem:[%s1421_s10 + $0x8] sm:$0xff]   ;;  %v1073_v13 = vld [vmem:[%s1421_s10] sm:$0xff]  }
  0xe6   :  { %v951_v15 = vpop.f32.mrf.mxu0 }
  0xe7   :  { %v168_v17 = vmax.f32 %v163_v14, 0.0  ;;  %v870_v15 = vld [vmem:[%s1420_s9] ss:$0 sm:$0xff] }
  0xe8   :  { %v165_v18 = vpop.f32.mrf.mxu0 }
  0xe9   :  { %v176_v19 = vmul.f32 %v848_v16, %v168_v17 }
  0xea   :  { %v952_v20 = vpop.f32.mrf.mxu0 }
  0xeb   :  { %v178_v21 = vsel %vm177_vm1, %v176_v19, 0.0 }
  0xec   :  { %179 = vadd.xlane.f32.xlu0 %v178_v21 }
 0x104   :  { %v564_v8 = vpop.f32.mrf.mxu0 }
 0x106   :  { %v1001_v9 = vpop.f32.mrf.mxu0 }
 0x175   :  { %v180_v24 = vpop.xlane.xlu0 %179 }
 0x176   :  { %v188_v25 = vadd.f32 %v849_v23, %v180_v24  ;;  %v871_v23 = vld [vmem:[%s1422_s11] ss:$0 sm:$0xff] }
 0x178   :  { %v190_v26 = vsel %vm189_vm2, %v188_v25, -inf }
 0x179   :  { %v191_v27 = vrot.slane %v190_v26, 4 }
 0x17b   :  { %v192_v28 = vmax.f32 %v190_v26, %v191_v27 }
 0x17d   :  { %v193_v29 = vrot.slane %v192_v28, 2 }
 0x17f   :  { %v194_v30 = vmax.f32 %v192_v28, %v193_v29 }
 0x181   :  { %v195_v31 = vrot.slane %v194_v30, 1 }
 0x183   :  { %v196_v32 = vmax.f32 %v194_v30, %v195_v31  ;;  %v1074_v31 = vld [vmem:[%s1423_s12 + $0x18] sm:$0xff]  }
 0x184   :  { %1024 = vmatpush3.bf16.msra.mxu0 %v1074_v31 }
 0x185   :  { %v197_v33 = vsub.f32 %v188_v25, %v196_v32  ;;  %v1075_v32 = vld [vmem:[%s1423_s12 + $0x10] sm:$0xff]   ;;  %1025 = vmatprep.subr.bf16.mxu0 %v1130_v2 }
 0x187   :  { %v198_v34 = vmul.f32 1.442695, %v197_v33  ;;  %v1076_v33 = vld [vmem:[%s1423_s12 + $0x8] sm:$0xff]  }
 0x188   :  { %1026 = vmatpush3.bf16.msra.mxu0 %v1075_v32 }
 0x189   :  { %1078 = vpow2.f32 %v198_v34  ;;  %1027 = vmatprep.subr.bf16.mxu0 %v1130_v2  ;;  %v1077_v34 = vld [vmem:[%s1423_s12] sm:$0xff]   ;;  %s827_s12 = sshll.u32 %s1133_s20, 4  ;;  %s828_s12 = int_to_ptr.vmem [resolvable:$true] %s827_s12 }
 0x18a   :  { %s1086_s21 = scalar_lea.vmem %s828_s12, 32  ;;  %p1091_p1 = scmp.lt.s32.totalorder %s828_s12, %s828_s12 }
 0x18b   :  { %p1087_p0 = scmp.ne.s32.totalorder %s828_s12, %s1086_s21  ;;  %p1092_p2 = scmp.lt.s32.totalorder %s1086_s21, %s1086_s21 }
 0x18c   :  { %1028 = vmatpush3.bf16.msra.mxu0 %v1076_v33 }
 0x18d   :  { %1029 = vmatprep.subr.bf16.mxu0 %v1130_v2  ;;  %p1093_p3 = por %p1092_p2, %p1091_p1 }
 0x18f   :  { %p1094_p4 = pnand %p1093_p3, %p1087_p0 }
 0x190   :  { %1030 = vmatpush3.bf16.msra.mxu0 %v1077_v34 }
 0x196   :  { %v1079_v35 = vpop.eup %1078 }
 0x197   :  { %202 = vperm.xlu0 %1040, %v1079_v35   ;;  %v797_v35 = vld [vmem:[%s1424_s13] sm:$0x3] }
 0x212   :  { %v203_v39 = vpop.permute.xlu0 %202 }
 0x213   :  { %v205_v40 = vmul.f32 %v203_v39, %v54_v10  ;;  %v567_v10 = vpop.f32.mrf.mxu0 }
 0x215   :  { %954 = vmatpush3.msk.msra.mxu1 %vm210_vm3, %v205_v40  ;;  %v1002_v11 = vpop.f32.mrf.mxu0 }
 0x216   :  { %956 = vmatmul.mubr.msk.f32.vlgmr.msra.gmra.mxu1 %vm206_vm4, %v55_v41  ;;  %958 = vmatprep.subr.mxu1 %v1130_v2 }
 0x217   :  { %959 = vmatpush3.msk.msra.mxu1 %vm210_vm3, %v203_v39  ;;  %960 = vmatprep.mubr.msk.f32.mxu1 %vm1131_vm0, %v1130_v2 }
 0x218   :  { %963 = vmatprep.subr.bf16.mxu1 %v1130_v2 }
 0x21a   :  { %961 = vmatmul.mubr.msk.f32.vlgmr.msra.gmra.mxu1 %vm206_vm4, %v55_v41 }
 0x21b   :  { %964 = vmatpush3.bf16.msra.mxu1 %v1052_v42  ;;  %979 = vmatprep.mubr.msk.bf16.mxu1 %vm1131_vm0, %v1130_v2 }
 0x21c   :  { %965 = vmatprep.subr.bf16.mxu1 %v1130_v2 }
 0x21f   :  { %966 = vmatpush3.bf16.msra.mxu1 %v1054_v43 }
 0x220   :  { %967 = vmatprep.subr.bf16.mxu1 %v1130_v2 }
 0x223   :  { %968 = vmatpush3.bf16.msra.mxu1 %v1056_v45 }
 0x224   :  { %969 = vmatprep.subr.bf16.mxu1 %v1130_v2 }
 0x227   :  { %970 = vmatpush3.bf16.msra.mxu1 %v1058_v47 }
 0x228   :  { %971 = vmatprep.subr.bf16.mxu1 %v1130_v2 }
 0x22b   :  { %972 = vmatpush3.bf16.msra.mxu1 %v1060_v49 }
 0x22c   :  { %973 = vmatprep.subr.bf16.mxu1 %v1130_v2 }
 0x22f   :  { %974 = vmatpush3.bf16.msra.mxu1 %v1062_v51 }
 0x230   :  { %975 = vmatprep.subr.bf16.mxu1 %v1130_v2 }
 0x233   :  { %976 = vmatpush3.bf16.msra.mxu1 %v1064_v54 }
 0x234   :  { %977 = vmatprep.subr.bf16.mxu1 %v1130_v2 }
 0x237   :  { %978 = vmatpush3.bf16.msra.mxu1 %v1065_v56 }
 0x238   :  { %1003 = vmatprep.subr.bf16.mxu1 %v1130_v2 }
 0x2d6   :  { %v280_v57 = vpop.f32.mrf.mxu1 }
 0x2d8   :  { %v957_v58 = vpop.f32.mrf.mxu1 }
 0x2da   :  { %v352_v59 = vpop.f32.mrf.mxu1 }
 0x2db   :  { %1080 = vrcp.f32 %v352_v59 }
 0x2dc   :  { %v962_v60 = vpop.f32.mrf.mxu1 }
 0x2e8   :  { %v1081_v61 = vpop.eup %1080 }
 0x2e9   :  { %v357_v62 = vmul.f32 %v1081_v61, %v280_v57 }
 0x2eb   :  { %v358_v63 = vmul.f32 0.5, %v357_v62 }
 0x2ed   :  { %v377_v1 = vpack.c.bf16 %v358_v63, %v358_v63 }
 0x2ef   :  { %980 = vmatmul.mubr.bf16.vlgmr.msra.gmra.mxu1 %v377_v1 }
 0x2f0   :  { %1004 = vmatpush3.bf16.msra.mxu1 %v1066_v0  ;;  %1019 = vmatprep.mubr.msk.bf16.mxu1 %vm1131_vm0, %v1130_v2 }
 0x2f1   :  { %1005 = vmatprep.subr.bf16.mxu1 %v1130_v2 }
 0x2f4   :  { %1006 = vmatpush3.bf16.msra.mxu1 %v1067_v3 }
 0x2f5   :  { %1007 = vmatprep.subr.bf16.mxu1 %v1130_v2 }
 0x2f8   :  { %1008 = vmatpush3.bf16.msra.mxu1 %v1068_v4 }
 0x2f9   :  { %1009 = vmatprep.subr.bf16.mxu1 %v1130_v2 }
 0x2fc   :  { %1010 = vmatpush3.bf16.msra.mxu1 %v1069_v5 }
 0x2fd   :  { %1011 = vmatprep.subr.bf16.mxu1 %v1130_v2 }
 0x300   :  { %1012 = vmatpush3.bf16.msra.mxu1 %v1070_v6 }
 0x301   :  { %1013 = vmatprep.subr.bf16.mxu1 %v1130_v2 }
 0x304   :  { %1014 = vmatpush3.bf16.msra.mxu1 %v1071_v7 }
 0x305   :  { %1015 = vmatprep.subr.bf16.mxu1 %v1130_v2 }
 0x308   :  { %1016 = vmatpush3.bf16.msra.mxu1 %v1072_v12 }
 0x309   :  { %1017 = vmatprep.subr.bf16.mxu1 %v1130_v2 }
 0x30c   :  { %1018 = vmatpush3.bf16.msra.mxu1 %v1073_v13 }
 0x3af   :  { %v476_v14 = vpop.f32.mrf.mxu1 }
 0x3b0   :  { %v565_v16 = vadd.f32 %v564_v8, %v476_v14 }
 0x3b1   :  { %v981_v17 = vpop.f32.mrf.mxu1 }
 0x3b2   :  { %v577_v18 = vadd.f32 %v870_v15, %v565_v16 }
 0x3b3   :  { %v479_v19 = vpop.f32.mrf.mxu1 }
 0x3b4   :  { %v578_v20 = vmax.f32 %v577_v18, 0.0 }
 0x3b5   :  { %v982_v21 = vpop.f32.mrf.mxu1 }
 0x3b6   :  { %v579_v22 = vpack.c.bf16 %v578_v20, %v578_v20 }
 0x3b8   :  { %1020 = vmatmul.mubr.bf16.vlgmr.msra.gmra.mxu1 %v579_v22 }
 0x478   :  { %v685_v24 = vpop.f32.mrf.mxu1 }
 0x479   :  { %v686_v25 = vadd.f32 %v871_v23, %v685_v24 }
 0x47a   :  { %v1021_v26 = vpop.f32.mrf.mxu1 }
 0x47b   :  { %v691_v27 = vmul.f32 %v686_v25, %v686_v25 }
 0x47c   :  { %v688_v28 = vpop.f32.mrf.mxu1 }
 0x47d   :  { %v693_v29 = vsel %vm692_vm5, %v691_v27, 0.0 }
 0x47e   :  { %694 = vadd.xlane.f32.xlu1 %v693_v29  ;;  %v1022_v30 = vpop.f32.mrf.mxu1 }
 0x48f   :  { %799 = vperm.xlu1 %1041, %v797_v35  }
 0x507   :  { %v695_v36 = vpop.xlane.xlu1 %694 }
 0x508   :  { %v696_v37 = vmax.f32 %v695_v36, 1e-24 }
 0x50a   :  { %1082 = vrsqrt.f32 %v696_v37 }
 0x517   :  { %v1083_v38 = vpop.eup %1082 }
 0x518   :  { %v698_v39 = vmul.f32 %v1083_v38, %v686_v25 }
 0x51a   :  { %v700_v40 = vpack.c.bf16 %v698_v39, %v698_v39  ;;  %699 = vst.msk [vmem:[#allocation5] sm:$0x3] %vm692_vm5, %v698_v39 }
 0x51c   :  { %1032 = vmatmul.mubr.msk.bf16.vlgmr.msra.gmra.mxu0 %vm733_vm6, %v700_v40 }
 0x51d   :  { %1097 = shalt.err (!%p1094_p4)
}
 0x51e   :  { %830 = dma.vmem_to_hbm [thread:$0]  %s828_s12, 32, %s1426_s15, [#allocation6]   ;;  %v795_v49 = vlaneseq  ;;  %v800_v51 = vpop.permute.xlu1 %799  ;;  %vm809_vm11 = vcmask 123904  }
 0x51f   :  { %s1134_s15 = smov [#allocation3]  }
 0x520   :  { %v796_v50 = vand.u32 127, %v795_v49  ;;  %s817_s23 = sshll.u32 %s1134_s15, 4  ;;  %s818_s23 = int_to_ptr.vmem [resolvable:$true] %s817_s23 }
 0x521   :  { %s1106_s0 = scalar_lea.vmem %s818_s23, 32  ;;  %p1111_p6 = scmp.lt.s32.totalorder %s818_s23, %s818_s23 }
 0x522   :  { %vm801_vm7 = vcmp.eq.s32.totalorder %v796_v50, %v800_v51  ;;  %p1107_p5 = scmp.ne.s32.totalorder %s818_s23, %s1106_s0  ;;  %p1112_p7 = scmp.lt.s32.totalorder %s1106_s0, %s1106_s0 }
 0x523   :  { %v887_v55 = vsel %vm801_vm7, 1.0, %v1130_v2 }
 0x524   :  { %v805_v60 = vsub.f32 1.0, %v887_v55  ;;  %p1113_p8 = por %p1112_p7, %p1111_p6 }
 0x526   :  { %p1114_p9 = pnand %p1113_p8, %p1107_p5 }
 0x5dc   :  { %v771_v41 = vpop.f32.mrf.mxu0 }
 0x5dd   :  { %v885_v42 = vclamps-f32 %v771_v41, 1.0 }
 0x5de   :  { %v1033_v43 = vpop.f32.mrf.mxu0 }
 0x5df   :  { %v779_v44 = vmul.f32 %v885_v42, %v885_v42  ;;  %v789_v58 = vmul.f32 0.87758255, %v885_v42  ;;  %v886_v62 = vadd.f32 -0.23971277, %v885_v42  ;;  %vm792_vm10 = vcmp.gt.f32.partialorder %v885_v42, -0.87758255 }
 0x5e0   :  { %v774_v45 = vpop.f32.mrf.mxu0  ;;  %v806_v1 = vmul.f32 %v885_v42, %v805_v60 }
 0x5e1   :  { %v780_v46 = vsub.f32 1.0, %v779_v44 }
 0x5e2   :  { %v1034_v47 = vpop.f32.mrf.mxu0 }
 0x5e3   :  { %v781_v48 = vmax.f32 %v780_v46, 0.0 }
 0x5e5   :  { %1084 = vrsqrt.f32 %v781_v48  ;;  %vm784_vm8 = vcmp.eq.f32.partialorder %v781_v48, inf  ;;  %v787_v54 = vand.u32 2147483648, %v781_v48  ;;  %vm786_vm9 = vcmp.eq.f32.partialorder %v781_v48, 0.0 }
 0x5f2   :  { %v1085_v52 = vpop.eup %1084 }
 0x5f3   :  { %v783_v53 = vmul.f32 %v1085_v52, %v781_v48 }
 0x5f5   :  { %v785_v56 = vsel %vm784_vm8, %v781_v48, %v783_v53 }
 0x5f6   :  { %v788_v57 = vsel %vm786_vm9, %v787_v54, %v785_v56 }
 0x5f7   :  { %v790_v59 = vmul.f32 0.47942555, %v788_v57 }
 0x5f9   :  { %v791_v61 = vsub.f32 %v789_v58, %v790_v59 }
 0x5fb   :  { %v794_v63 = vsel %vm792_vm10, %v791_v61, %v886_v62 }
 0x5fc   :  { %v804_v0 = vmul.f32 %v887_v55, %v794_v63 }
 0x5fe   :  { %v807_v3 = vadd.f32 %v806_v1, %v804_v0 }
 0x600   :  { %v808_v4 = vmul.f32 64.0, %v807_v3 }
 0x602   :  { %810 = vst.msk [vmem:[#allocation3] sm:$0x3] %vm809_vm11, %v808_v4 }
 0x603   :  { %1117 = shalt.err (!%p1114_p9)
}
 0x604   :  { %820 = dma.vmem_to_hbm [thread:$0]  %s818_s23, 32, %s1425_s14, [#allocation4]  }
 0x605   :  { %1126 = dma.done.wait [#allocation4], 32  }
 0x606   :  { %1127 = vsyncadd [#allocation4], 4294967264 }
 0x607   :  { %1128 = dma.done.wait [#allocation6], 32  }
 0x608   :  { %1129 = vsyncadd [#allocation6], 4294967264 }
 0x609   :  { %837 = vsyncpa [#allocation4], 1 }
 0x60a   :  { %838 = vsyncpa [#allocation6], 1 }

// kernel: forward.2
= control target key start
LH: loop header
LB: loop body
LE: loop exit
PB: predicated region body
PF: predicated region fallthrough
CT: control target
= control target key end

     0   :  { %s4749_s0 = inlined_call_operand.vmem [shape: s32[3], index: 0, kind: input, shape index: {}]   ;;  %s4750_s1 = inlined_call_operand.vmem [shape: f32[3,8,512], index: 1, kind: input, shape index: {}]   ;;  %s4751_s2 = inlined_call_operand.vmem [shape: bf16[2,16,72], index: 2, kind: input, shape index: {}]   ;;  %s4752_s3 = inlined_call_operand.vmem [shape: f32[2,16,1], index: 3, kind: input, shape index: {}]   ;;  %s4753_s4 = inlined_call_operand.vmem [shape: bf16[2,16,144], index: 4, kind: input, shape index: {}]   ;;  %s4754_s5 = inlined_call_operand.vmem [shape: f32[2,16,1], index: 5, kind: input, shape index: {}]   ;;  %s4755_s6 = inlined_call_operand.vmem [shape: bf16[2,32,144], index: 6, kind: input, shape index: {}]   ;;  %s4756_s7 = inlined_call_operand.vmem [shape: f32[2,32,1], index: 7, kind: input, shape index: {}]   ;;  %s4757_s8 = inlined_call_operand.vmem [shape: bf16[2,32,288], index: 8, kind: input, shape index: {}]   ;;  %s4758_s9 = inlined_call_operand.vmem [shape: f32[2,32,1], index: 9, kind: input, shape index: {}]   ;;  %s4759_s10 = inlined_call_operand.vmem [shape: f32[9,512], index: 10, kind: input, shape index: {}]   ;;  %s4760_s11 = inlined_call_operand.vmem [shape: f32[9,128], index: 11, kind: input, shape index: {}]   ;;  %s4761_s12 = inlined_call_operand.vmem [shape: f32[512,128], index: 12, kind: input, shape index: {}]   ;;  %s4762_s13 = inlined_call_operand.vmem [shape: f32[128,32], index: 13, kind: input, shape index: {}]   ;;  %s4763_s14 = inlined_call_operand.vmem [shape: f32[32,8], index: 14, kind: input, shape index: {}]   ;;  %s4764_s15 = inlined_call_operand.vmem [shape: f32[3,32,8], index: 15, kind: output, shape index: {}]  }
   0x1   :  { %s20_s20 = sshll.u32 %s4749_s0, 4  ;;  %s21_s20 = int_to_ptr.vmem [resolvable:$true] %s20_s20 }
   0x2   :  { %s3158_s21 = scalar_lea.vmem %s21_s20, 16  ;;  %p3163_p1 = scmp.lt.s32.totalorder %s21_s20, %s21_s20 }
   0x3   :  { %p3159_p0 = scmp.ne.s32.totalorder %s21_s20, %s3158_s21  ;;  %p3164_p2 = scmp.lt.s32.totalorder %s3158_s21, %s3158_s21 }
   0x5   :  { %p3165_p3 = por %p3164_p2, %p3163_p1 }
   0x7   :  { %p3166_p4 = pnand %p3165_p3, %p3159_p0 }
   0x9   :  { %3169 = shalt.err (!%p3166_p4)  }
   0xa   :  { %s3180_s22 = smov [#allocation3]  }
   0xb   :  { %23 = dma.vmem_to_smem %s21_s20, 16, %s3180_s22, [#allocation2] }
   0xc   :  { %3174 = dma.done.wait [#allocation2], 16 }
   0xd   :  { %3175 = vsyncadd [#allocation2], 4294967280 }
   0xe   :  { %25 = sfence }
   0xf   :  { %s3279_s23 = smov 0  }
  0x10 LB: > { %s3285_s0 = sadd.s32 4294967295, %s3178_s23   ;;  %p2760_p5 = scmp.ge.s32.totalorder %s3178_s23, 1  ;;  %s3178_s23 = sphi %s3279_s23, %s31_s23  }
  0x11   : > { %p531_p6 = scmp.lt.s32.totalorder %s3178_s23, 4 }
  0x13   : > { %p532_p7 = pnand %p2760_p5, %p531_p6 }
  0x15   : > { %535 = sbr.rel (%p532_p7) target bundleno = 2480 (0x9b0), region = 76 }
  0x1a   : > { %p625_p8 = scmp.lt.s32.totalorder %s3285_s0, 2  ;;  %s4766_s29 = smov 111   ;;  %v4774_v4 = vmov 0   ;;  %v718_v7 = vlaneseq  ;;  %v2781_v11 = vld [vmem:[%s4759_s10 + $0x28] ss:$0 sm:$0xff]  ;;  %vm1035_vm1 = vcmask 1043456  }
  0x1b   : > { %s3182_s30 = smov 113   ;;  %s3183_s16 = smov 112   ;;  %1080 = vmatprep.mubr.bf16.mxu0 %v4774_v4  ;;  %1123 = vmatprep.mubr.bf16.mxu1 %v4774_v4  ;;  %v2783_v12 = vld [vmem:[%s4759_s10 + $0x38] ss:$0 sm:$0xff]  ;;  %v2780_v13 = vld [vmem:[%s4759_s10 + $0x20] ss:$0 sm:$0xff] }
  0x1c   : > { %s3291_s24 = scalar_select %p625_p8, %s3285_s0, 2  ;;  %3044 = vset.pattern.permute.xlu0 %v4774_v4  ;;  %3045 = vset.pattern.permute.xlu1 %v4774_v4  ;;  %v3385_v8 = vand.u32 127, %v718_v7  ;;  %v2782_v14 = vld [vmem:[%s4759_s10 + $0x30] ss:$0 sm:$0xff]  ;;  %v3408_v31 = vshrl.u32 %v718_v7, 7  ;;  %v3413_v36 = vld [vmem:[%s4759_s10 + $0x18] sm:$0xff] }
  0x1d   : > { %s4822_s17 = smov 127   ;;  %s4772_s18 = smov 15   ;;  %v3418_v37 = vld [vmem:[%s4759_s10 + $0x8] sm:$0xff]  ;;  %v3429_v40 = vld [vmem:[%s4759_s10 + $0x10] sm:$0xff]  ;;  %v3435_v41 = vld [vmem:[%s4759_s10] sm:$0xff]  ;;  %vm1031_vm9 = vcmask 588800  }
  0x1e   : > { %s4765_s25 = sshll.u32 %s3291_s24, 5  ;;  %s4818_s19 = smov 1   ;;  %vm971_vm0 = vcmp.lt.s32.totalorder %v3385_v8, 111  ;;  %v3421_v38 = vsub.s32 7, %v3408_v31  ;;  %v3424_v39 = vsub.s32 6, %v3408_v31  ;;  %vm938_vm2 = vcmp.lt.s32.totalorder %v3385_v8, 112 }
  0x1f   : > { %s629_s28 = scalar_lea.vmem %s4750_s1, %s4765_s25  ;;  %s630_s20 = sld [smem:[#allocation3 + %s3285_s0]]  ;;  %vm905_vm3 = vcmp.lt.s32.totalorder %v3385_v8, 113  ;;  %v3479_v56 = vsub.s32 5, %v3408_v31  ;;  %v3482_v57 = vsub.s32 4, %v3408_v31  ;;  %vm872_vm4 = vcmp.lt.s32.totalorder %v3385_v8, 127 }
  0x20   : > { %v3299_v0 = vld [vmem:[%s629_s28 + $0x10] sm:$0xff]  ;;  %v3301_v1 = vld [vmem:[%s629_s28] sm:$0xff]  ;;  %v3307_v2 = vld [vmem:[%s629_s28 + $0x18] sm:$0xff]  ;;  %s4768_s21 = smov 17   ;;  %s637_s25 = sld [smem:[#allocation3 + %s3285_s0]]  ;;  %4828 = vst [vmem:[#allocation5_spill] sm:$0xff] %v3421_v38  ;;  %v3440_v42 = vrot.slane %v3413_v36, %v3424_v39  ;;  %v3444_v43 = vrot.slane %v3418_v37, %v3424_v39  ;;  %v3450_v47 = vrot.slane %v3429_v40, %v3424_v39  ;;  %v3456_v49 = vrot.slane %v3435_v41, %v3421_v38 }
  0x21   : > { %967 = vrot.lane.b32.xlu1 %v3299_v0, %s4766_s29  ;;  %963 = vrot.lane.b32.xlu0 %v3301_v1, %s4766_s29  ;;  %v3309_v3 = vld [vmem:[%s629_s28 + $0x8] sm:$0xff]  ;;  %4829 = vst [vmem:[#allocation6_spill] sm:$0xff] %v3424_v39  ;;  %v3462_v51 = vrot.slane %v3413_v36, %v3421_v38  ;;  %v3466_v52 = vrot.slane %v3418_v37, %v3421_v38  ;;  %4830 = vst [vmem:[#allocation7_spill] sm:$0xff] %v3479_v56  ;;  %vm786_vm5 = vcmp.lt.s32.totalorder %v3385_v8, 15  ;;  %vm1465_vm10 = vcmask 130048   ;;  %s3192_s26 = smov 7  }
  0x22   : > { %v3470_v53 = vrot.slane %v3429_v40, %v3421_v38  ;;  %v3474_v54 = vrot.slane %v3435_v41, %v3424_v39  ;;  %4831 = vst [vmem:[#allocation8_spill] sm:$0xff] %v3482_v57  ;;  %vm819_vm6 = vcmp.lt.s32.totalorder %v3385_v8, 1  ;;  %vm720_vm7 = vcmp.lt.s32.totalorder %v3385_v8, 17 }
  0x23   : > { %vm753_vm8 = vcmp.lt.s32.totalorder %v3385_v8, 16  ;;  %vm2253_vm11 = vcmask 261120   ;;  %vm2600_vm12 = vcmask 64512  }
  0x25   : > { %969 = vrot.lane.b32.xlu1 %v3307_v2, %s4766_s29  ;;  %965 = vrot.lane.b32.xlu0 %v3309_v3, %s4766_s29  ;;  %p631_p9 = scmp.lt.s32.totalorder %s630_s20, 1 }
  0x26   : > { %p638_p10 = scmp.lt.s32.totalorder %s637_s25, 1 }
  0x27   : > { %s4904_s20 = smov (!%p631_p9, %s630_s20), 1 }
  0x28   : > { %s2815_s22 = sshll.u32 %s4904_s20, 3  ;;  %s4770_s20 = smov 16  }
  0x29   : > { %899 = vrot.lane.b32.xlu1 %v3309_v3, %s3182_s30  ;;  %897 = vrot.lane.b32.xlu0 %v3301_v1, %s3182_s30  ;;  %s3367_s28 = scalar_lea.vmem %s4751_s2, %s2815_s22  ;;  %s4906_s25 = smov (!%p638_p10, %s637_s25), 1 }
  0x2a   : > { %s2816_s22 = sshll.u32 %s4906_s25, 4  ;;  %s644_s25 = sld [smem:[#allocation3 + %s3285_s0]] }
  0x2b   : > { %s642_s29 = scalar_lea.vmem %s4752_s3, %s2816_s22 }
  0x2c   : > { %v708_v5 = vld [vmem:[%s642_s29] sm:$0xff]  ;;  %v709_v6 = vld [vmem:[%s642_s29 + $0x8] sm:$0xff]  ;;  %s3193_s29 = smov 8  }
  0x2d   : > { %903 = vrot.lane.b32.xlu1 %v3307_v2, %s3182_s30  ;;  %901 = vrot.lane.b32.xlu0 %v3299_v0, %s3182_s30 }
  0x30   : > { %p645_p12 = scmp.lt.s32.totalorder %s644_s25, 1 }
  0x31   : > { %932 = vrot.lane.b32.xlu1 %v3309_v3, %s3183_s16  ;;  %930 = vrot.lane.b32.xlu0 %v3301_v1, %s3183_s16 }
  0x32   : > { %s4908_s25 = smov (!%p645_p12, %s644_s25), 1 }
  0x33   : > { %s2817_s22 = sshll.u32 %s4908_s25, 4  ;;  %s4891_s25 = smov 9  }
  0x34   : > { %s3799_s27 = scalar_lea.vmem %s4753_s4, %s2817_s22 }
  0x35   : > { %936 = vrot.lane.b32.xlu1 %v3307_v2, %s3183_s16  ;;  %934 = vrot.lane.b32.xlu0 %v3299_v0, %s3183_s16 }
  0x39   : > { %866 = vrot.lane.b32.xlu1 %v3309_v3, %s4822_s17  ;;  %864 = vrot.lane.b32.xlu0 %v3301_v1, %s4822_s17 }
  0x3d   : > { %870 = vrot.lane.b32.xlu1 %v3307_v2, %s4822_s17  ;;  %868 = vrot.lane.b32.xlu0 %v3299_v0, %s4822_s17 }
  0x41   : > { %780 = vrot.lane.b32.xlu1 %v3309_v3, %s4772_s18  ;;  %778 = vrot.lane.b32.xlu0 %v3301_v1, %s4772_s18 }
  0x45   : > { %784 = vrot.lane.b32.xlu1 %v3307_v2, %s4772_s18  ;;  %782 = vrot.lane.b32.xlu0 %v3299_v0, %s4772_s18  ;;  %s4848_s18 = smov 16  }
  0x49   : > { %813 = vrot.lane.b32.xlu1 %v3309_v3, %s4818_s19  ;;  %811 = vrot.lane.b32.xlu0 %v3301_v1, %s4818_s19 }
  0x4d   : > { %817 = vrot.lane.b32.xlu1 %v3307_v2, %s4818_s19  ;;  %815 = vrot.lane.b32.xlu0 %v3299_v0, %s4818_s19 }
  0x51   : > { %712 = vrot.lane.b32.xlu1 %v3309_v3, %s4768_s21  ;;  %710 = vrot.lane.b32.xlu0 %v3301_v1, %s4768_s21 }
  0x55   : > { %716 = vrot.lane.b32.xlu1 %v3307_v2, %s4768_s21  ;;  %714 = vrot.lane.b32.xlu0 %v3299_v0, %s4768_s21  ;;  %s4849_s21 = smov 17  }
  0x59   : > { %747 = vrot.lane.b32.xlu1 %v3309_v3, %s4770_s20  ;;  %745 = vrot.lane.b32.xlu0 %v3301_v1, %s4770_s20 }
  0x5d   : > { %751 = vrot.lane.b32.xlu1 %v3307_v2, %s4770_s20  ;;  %749 = vrot.lane.b32.xlu0 %v3299_v0, %s4770_s20  ;;  %s4850_s20 = smov 111  }
  0x61   : > { %1018 = vperm.xlu0 %3044, %v708_v5   ;;  %1023 = vperm.xlu1 %3045, %v709_v6  }
  0x93   : > { %v968_v9 = vpop.permute.xlu1 %967  ;;  %v964_v10 = vpop.permute.xlu0 %963 }
  0x97   : > { %v970_v15 = vpop.permute.xlu1 %969  ;;  %v966_v16 = vpop.permute.xlu0 %965 }
  0x98   : > { %v972_v17 = vsel %vm971_vm0, %v968_v9, %v970_v15  ;;  %v974_v18 = vsel %vm971_vm0, %v964_v10, %v966_v16  ;;  %v973_v19 = vsel %vm971_vm0, %v966_v16, %v968_v9  ;;  %v975_v20 = vsel %vm971_vm0, %v970_v15, %v964_v10 }
  0x99   : > { %v993_v21 = vmul.f32 %v2781_v11, %v973_v19  ;;  %v995_v22 = vmul.f32 %v2783_v12, %v975_v20  ;;  %v992_v23 = vmul.f32 %v2780_v13, %v974_v18  ;;  %v994_v24 = vmul.f32 %v2782_v14, %v972_v17 }
  0x9a   : > { %v3503_v14 = vrot.slane %v3418_v37, %v3482_v57  ;;  %v3507_v15 = vrot.slane %v3413_v36, %v3482_v57  ;;  %v3511_v16 = vrot.slane %v3435_v41, %v3482_v57 }
  0x9b   : > { %v900_v25 = vpop.permute.xlu1 %899  ;;  %v898_v26 = vpop.permute.xlu0 %897  ;;  %v1013_v27 = vpack.c.bf16 %v993_v21, %v993_v21  ;;  %v1015_v28 = vpack.c.bf16 %v995_v22, %v995_v22  ;;  %v1012_v29 = vpack.c.bf16 %v992_v23, %v992_v23  ;;  %v1014_v30 = vpack.c.bf16 %v994_v24, %v994_v24 }
  0x9c   : > { %v908_v58 = vsel %vm905_vm3, %v898_v26, %v900_v25  ;;  %v3515_v22 = vrot.slane %v3429_v40, %v3482_v57  ;;  %v3519_v23 = vrot.slane %v3435_v41, %v3479_v56 }
  0x9d   : > { %2785 = vmatprep.subr.msk.bf16.mxu0 %vm1035_vm1, %v1013_v27  ;;  %2787 = vmatprep.subr.msk.bf16.mxu1 %vm1035_vm1, %v1015_v28  ;;  %v1037_v32 = vsel %vm1035_vm1, %v1012_v29, 0  ;;  %v1043_v33 = vsel %vm1035_vm1, %v1014_v30, 0  ;;  %v926_v13 = vmul.f32 %v3474_v54, %v908_v58  ;;  %v3529_v27 = vrot.slane %v3418_v37, %v3479_v56 }
  0x9e   : > { %1055 = vmatpush1.bf16.msra.mxu0 %v1037_v32  ;;  %1098 = vmatpush1.bf16.msra.mxu1 %v1043_v33  ;;  %v3533_v28 = vrot.slane %v3429_v40, %v3479_v56  ;;  %v861_v32 = vmul.f32 %v3503_v14, %v3309_v3  ;;  %v863_v33 = vmul.f32 %v3507_v15, %v3307_v2 }
  0x9f   : > { %v904_v34 = vpop.permute.xlu1 %903  ;;  %v902_v35 = vpop.permute.xlu0 %901 }
  0xa0   : > { %v909_v46 = vsel %vm905_vm3, %v904_v34, %v898_v26  ;;  %v907_v48 = vsel %vm905_vm3, %v900_v25, %v902_v35  ;;  %v906_v55 = vsel %vm905_vm3, %v902_v35, %v904_v34  ;;  %v3523_v25 = vrot.slane %v3413_v36, %v3479_v56 }
  0xa1   : > { %v929_v59 = vmul.f32 %v3440_v42, %v909_v46  ;;  %v927_v60 = vmul.f32 %v3444_v43, %v907_v48  ;;  %v928_v9 = vmul.f32 %v3450_v47, %v906_v55  ;;  %v860_v34 = vmul.f32 %v3511_v16, %v3301_v1 }
  0xa2   : > { %v862_v35 = vmul.f32 %v3515_v22, %v3299_v0 }
  0xa3   : > { %v933_v44 = vpop.permute.xlu1 %932  ;;  %v931_v45 = vpop.permute.xlu0 %930 }
  0xa4   : > { %v941_v50 = vsel %vm938_vm2, %v931_v45, %v933_v44 }
  0xa5   : > { %v959_v63 = vmul.f32 %v3456_v49, %v941_v50 }
  0xa7   : > { %v937_v61 = vpop.permute.xlu1 %936  ;;  %v935_v62 = vpop.permute.xlu0 %934  ;;  %v1008_v24 = vpack.c.bf16 %v959_v63, %v926_v13 }
  0xa8   : > { %v942_v5 = vsel %vm938_vm2, %v937_v61, %v931_v45  ;;  %v939_v6 = vsel %vm938_vm2, %v935_v62, %v937_v61  ;;  %v940_v7 = vsel %vm938_vm2, %v933_v44, %v935_v62  ;;  %v3554_v61 = vsub.s32 2, %v3408_v31 }
  0xa9   : > { %v962_v10 = vmul.f32 %v3462_v51, %v942_v5  ;;  %v960_v11 = vmul.f32 %v3466_v52, %v940_v7  ;;  %v961_v12 = vmul.f32 %v3470_v53, %v939_v6  ;;  %v3557_v62 = vsub.s32 3, %v3408_v31 }
  0xaa   : > { %4832 = vst [vmem:[#allocation9_spill] sm:$0xff] %v3554_v61  ;;  %v3562_v6 = vrot.slane %v3418_v37, %v3554_v61 }
  0xab   : > { %v867_v17 = vpop.permute.xlu1 %866  ;;  %v865_v18 = vpop.permute.xlu0 %864  ;;  %v1009_v19 = vpack.c.bf16 %v960_v11, %v927_v60  ;;  %v1011_v20 = vpack.c.bf16 %v962_v10, %v929_v59  ;;  %v1010_v21 = vpack.c.bf16 %v961_v12, %v928_v9  ;;  %4833 = vst [vmem:[#allocation10_spill] sm:$0xff] %v3557_v62  ;;  %v3567_v7 = vrot.slane %v3418_v37, %v3557_v62 }
  0xac   : > { %v875_v26 = vsel %vm872_vm4, %v865_v18, %v867_v17  ;;  %v3573_v10 = vrot.slane %v3435_v41, %v3554_v61  ;;  %v3577_v11 = vrot.slane %v3429_v40, %v3554_v61  ;;  %v3581_v12 = vrot.slane %v3413_v36, %v3554_v61 }
  0xad   : > { %1056 = vmatprep.subr.bf16.mxu0 %v1009_v19  ;;  %1099 = vmatprep.subr.bf16.mxu1 %v1011_v20  ;;  %v893_v44 = vmul.f32 %v3519_v23, %v875_v26  ;;  %v3589_v20 = vrot.slane %v3435_v41, %v3557_v62 }
  0xae   : > { %1057 = vmatpush1.bf16.msra.mxu0 %v1008_v24  ;;  %1100 = vmatpush1.bf16.msra.mxu1 %v1010_v21  ;;  %4834 = vst [vmem:[#allocation11_spill] sm:$0xff] %v3573_v10  ;;  %4835 = vst [vmem:[#allocation12_spill] sm:$0xff] %v3577_v11  ;;  %v3593_v21 = vrot.slane %v3429_v40, %v3557_v62 }
  0xaf   : > { %v871_v29 = vpop.permute.xlu1 %870  ;;  %v869_v30 = vpop.permute.xlu0 %868  ;;  %v1004_v60 = vpack.c.bf16 %v893_v44, %v860_v34  ;;  %4836 = vst [vmem:[#allocation13_spill] sm:$0xff] %v3581_v12 }
  0xb0   : > { %v876_v45 = vsel %vm872_vm4, %v871_v29, %v865_v18  ;;  %v873_v46 = vsel %vm872_vm4, %v869_v30, %v871_v29  ;;  %v874_v3 = vsel %vm872_vm4, %v867_v17, %v869_v30  ;;  %v3601_v30 = vrot.slane %v3413_v36, %v3557_v62 }
  0xb1   : > { %v896_v48 = vmul.f32 %v3523_v25, %v876_v45  ;;  %v894_v2 = vmul.f32 %v3529_v27, %v874_v3  ;;  %v895_v1 = vmul.f32 %v3533_v28, %v873_v46 }
  0xb3   : > { %v781_v50 = vpop.permute.xlu1 %780  ;;  %v779_v55 = vpop.permute.xlu0 %778  ;;  %v1005_v0 = vpack.c.bf16 %v894_v2, %v861_v32  ;;  %v1007_v58 = vpack.c.bf16 %v896_v48, %v863_v33  ;;  %v1006_v59 = vpack.c.bf16 %v895_v1, %v862_v35 }
  0xb4   : > { %v789_v9 = vsel %vm786_vm5, %v779_v55, %v781_v50 }
  0xb5   : > { %1058 = vmatprep.subr.bf16.mxu0 %v1005_v0  ;;  %1101 = vmatprep.subr.bf16.mxu1 %v1007_v58  ;;  %v808_v24 = vmul.f32 %v3562_v6, %v789_v9  ;;  %v3621_v9 = vsub.s32 1, %v3408_v31 }
  0xb6   : > { %1059 = vmatpush1.bf16.msra.mxu0 %v1004_v60  ;;  %1102 = vmatpush1.bf16.msra.mxu1 %v1006_v59 }
  0xb7   : > { %v785_v63 = vpop.permute.xlu1 %784  ;;  %v783_v5 = vpop.permute.xlu0 %782  ;;  %4838 = vst [vmem:[#allocation15_spill] sm:$0xff] %v3621_v9 }
  0xb8   : > { %v790_v18 = vsel %vm786_vm5, %v785_v63, %v779_v55  ;;  %v788_v26 = vsel %vm786_vm5, %v781_v50, %v783_v5  ;;  %v787_v32 = vsel %vm786_vm5, %v783_v5, %v785_v63  ;;  %v3618_v5 = vsub.s32 0, %v3408_v31 }
  0xb9   : > { %v807_v33 = vmul.f32 %v3573_v10, %v790_v18  ;;  %v809_v45 = vmul.f32 %v3577_v11, %v788_v26  ;;  %v810_v2 = vmul.f32 %v3581_v12, %v787_v32 }
  0xba   : > { %4837 = vst [vmem:[#allocation14_spill] sm:$0xff] %v3618_v5  ;;  %v3626_v18 = vrot.slane %v3418_v37, %v3618_v5  ;;  %v3637_v31 = vrot.slane %v3435_v41, %v3618_v5  ;;  %v3641_v26 = vrot.slane %v3429_v40, %v3618_v5 }
  0xbb   : > { %v814_v13 = vpop.permute.xlu1 %813  ;;  %v812_v17 = vpop.permute.xlu0 %811 }
  0xbc   : > { %v822_v19 = vsel %vm819_vm6, %v812_v17, %v814_v13  ;;  %4839 = vst [vmem:[#allocation16_spill] sm:$0xff] %v3626_v18  ;;  %4841 = vst [vmem:[#allocation18_spill] sm:$0xff] %v3637_v31 }
  0xbd   : > { %v841_v29 = vmul.f32 %v3567_v7, %v822_v19  ;;  %v3631_v19 = vrot.slane %v3418_v37, %v3621_v9  ;;  %4842 = vst [vmem:[#allocation19_spill] sm:$0xff] %v3641_v26 }
  0xbf   : > { %v818_v34 = vpop.permute.xlu1 %817  ;;  %v816_v35 = vpop.permute.xlu0 %815  ;;  %v1001_v44 = vpack.c.bf16 %v841_v29, %v808_v24  ;;  %4840 = vst [vmem:[#allocation17_spill] sm:$0xff] %v3631_v19  ;;  %v3645_v29 = vrot.slane %v3413_v36, %v3618_v5 }
  0xc0   : > { %v823_v46 = vsel %vm819_vm6, %v818_v34, %v812_v17  ;;  %v820_v3 = vsel %vm819_vm6, %v816_v35, %v818_v34  ;;  %v821_v48 = vsel %vm819_vm6, %v814_v13, %v816_v35  ;;  %v3653_v35 = vrot.slane %v3435_v41, %v3621_v9 }
  0xc1   : > { %v840_v1 = vmul.f32 %v3589_v20, %v823_v46  ;;  %v842_v50 = vmul.f32 %v3593_v21, %v821_v48  ;;  %v843_v55 = vmul.f32 %v3601_v30, %v820_v3  ;;  %1060 = vmatprep.subr.bf16.mxu0 %v1001_v44  ;;  %4843 = vst [vmem:[#allocation20_spill] sm:$0xff] %v3645_v29 }
  0xc2   : > { %4844 = vst [vmem:[#allocation21_spill] sm:$0xff] %v3653_v35  ;;  %v3657_v44 = vrot.slane %v3429_v40, %v3621_v9  ;;  %v3665_v48 = vrot.slane %v3413_v36, %v3621_v9 }
  0xc3   : > { %v713_v0 = vpop.permute.xlu1 %712  ;;  %v711_v58 = vpop.permute.xlu0 %710  ;;  %v1000_v59 = vpack.c.bf16 %v840_v1, %v807_v33  ;;  %v1003_v60 = vpack.c.bf16 %v843_v55, %v810_v2  ;;  %v1002_v63 = vpack.c.bf16 %v842_v50, %v809_v45 }
  0xc4   : > { %v723_v24 = vsel %vm720_vm7, %v711_v58, %v713_v0  ;;  %4845 = vst [vmem:[#allocation22_spill] sm:$0xff] %v3657_v44  ;;  %4846 = vst [vmem:[#allocation23_spill] sm:$0xff] %v3665_v48 }
  0xc5   : > { %1061 = vmatpush1.bf16.msra.mxu0 %v1000_v59  ;;  %1103 = vmatprep.subr.bf16.mxu1 %v1003_v60  ;;  %v742_v45 = vmul.f32 %v3626_v18, %v723_v24 }
  0xc6   : > { %1104 = vmatpush1.bf16.msra.mxu1 %v1002_v63 }
  0xc7   : > { %v717_v13 = vpop.permute.xlu1 %716  ;;  %v715_v17 = vpop.permute.xlu0 %714 }
  0xc8   : > { %v724_v37 = vsel %vm720_vm7, %v717_v13, %v711_v58  ;;  %v722_v46 = vsel %vm720_vm7, %v713_v0, %v715_v17  ;;  %v721_v2 = vsel %vm720_vm7, %v715_v17, %v717_v13 }
  0xc9   : > { %v741_v41 = vmul.f32 %v3637_v31, %v724_v37  ;;  %v743_v55 = vmul.f32 %v3641_v26, %v722_v46  ;;  %v744_v59 = vmul.f32 %v3645_v29, %v721_v2 }
  0xcb   : > { %v748_v32 = vpop.permute.xlu1 %747  ;;  %v746_v33 = vpop.permute.xlu0 %745 }
  0xcc   : > { %v756_v34 = vsel %vm753_vm8, %v746_v33, %v748_v32 }
  0xcd   : > { %v775_v3 = vmul.f32 %v3631_v19, %v756_v34  ;;  %v3136_v34 = vld [vmem:[%s3367_s28] sm:$0xff]   ;;  %s4847_s28 = smov 15  }
  0xcf   : > { %v752_v1 = vpop.permute.xlu1 %751  ;;  %v750_v40 = vpop.permute.xlu0 %749  ;;  %v997_v50 = vpack.c.bf16 %v775_v3, %v742_v45 }
  0xd0   : > { %v757_v0 = vsel %vm753_vm8, %v752_v1, %v746_v33  ;;  %v754_v58 = vsel %vm753_vm8, %v750_v40, %v752_v1  ;;  %v755_v36 = vsel %vm753_vm8, %v748_v32, %v750_v40 }
  0xd1   : > { %v774_v60 = vmul.f32 %v3653_v35, %v757_v0  ;;  %v776_v63 = vmul.f32 %v3657_v44, %v755_v36  ;;  %v777_v13 = vmul.f32 %v3665_v48, %v754_v58  ;;  %1062 = vmatprep.subr.bf16.mxu0 %v997_v50 }
  0xd3   : > { %v996_v17 = vpack.c.bf16 %v774_v60, %v741_v41  ;;  %v999_v24 = vpack.c.bf16 %v777_v13, %v744_v59  ;;  %v998_v37 = vpack.c.bf16 %v776_v63, %v743_v55 }
  0xd5   : > { %1063 = vmatpush1.bf16.msra.mxu0 %v996_v17  ;;  %1105 = vmatprep.subr.bf16.mxu1 %v999_v24 }
  0xd6   : > { %1106 = vmatpush1.bf16.msra.mxu1 %v998_v37 }
  0xd8   : > { %2786 = vmatmul.mubr.msk.bf16.vlgmr.msra.gmra.mxu0 %vm1031_vm9, %v3136_v34 }
  0xd9   : > { %2788 = vmatmul.mubr.msk.bf16.vlgmr.msra.gmra.mxu1 %vm1031_vm9, %v3136_v34 }
  0xdc   : > { %v1019_v32 = vpop.permute.xlu0 %1018  ;;  %v1024_v1 = vpop.permute.xlu1 %1023 }
 0x198   : > { %v1082_v33 = vpop.f32.mrf.mxu0 }
 0x199   : > { %v1083_v45 = vadd.f32 %v1082_v33, %v1019_v32  ;;  %v1125_v46 = vpop.f32.mrf.mxu1 }
 0x19a   : > { %v1126_v3 = vadd.f32 %v1125_v46, %v1019_v32  ;;  %v1084_v2 = vpop.f32.mrf.mxu0 }
 0x19b   : > { %v1134_v40 = vmax.f32 %v1083_v45, 0.0  ;;  %v1127_v0 = vpop.f32.mrf.mxu1 }
 0x19c   : > { %v1136_v50 = vmax.f32 %v1126_v3, 0.0  ;;  %v1086_v41 = vpop.f32.mrf.mxu0  ;;  %v1128_v45 = vadd.f32 %v1127_v0, %v1019_v32 }
 0x19d   : > { %v1087_v58 = vadd.f32 %v1086_v41, %v1024_v1  ;;  %v1129_v55 = vpop.f32.mrf.mxu1  ;;  %1346 = vrot.lane.b32.xlu1 %v1134_v40, %s3183_s16  ;;  %v3689_v13 = vmul.f32 %v1134_v40, %v3511_v16 }
 0x19e   : > { %v1130_v36 = vadd.f32 %v1129_v55, %v1024_v1  ;;  %v3684_v63 = vmul.f32 %v1136_v50, %v3515_v22  ;;  %v3734_v41 = vmax.f32 %v1128_v45, 0.0 }
 0x19f   : > { %v1138_v59 = vmax.f32 %v1087_v58, 0.0  ;;  %v1131_v3 = vpop.f32.mrf.mxu1 }
 0x1a0   : > { %v1140_v60 = vmax.f32 %v1130_v36, 0.0 }
 0x1a1   : > { %1348 = vrot.lane.b32.xlu0 %v1138_v59, %s3183_s16  ;;  %1354 = vrot.lane.b32.xlu1 %v1136_v50, %s3183_s16  ;;  %v3692_v17 = vmul.f32 %v1138_v59, %v3511_v16  ;;  %v1085_v16 = vadd.f32 %v1084_v2, %v1019_v32  ;;  %v1132_v2 = vadd.f32 %v1131_v3, %v1024_v1 }
 0x1a2   : > { %v3695_v24 = vmul.f32 %v1140_v60, %v3515_v22  ;;  %v1088_v22 = vpop.f32.mrf.mxu0 }
 0x1a3   : > { %v3729_v33 = vmax.f32 %v1085_v16, 0.0  ;;  %v1089_v46 = vadd.f32 %v1088_v22, %v1024_v1 }
 0x1a5   : > { %1356 = vrot.lane.b32.xlu0 %v1140_v60, %s3183_s16  ;;  %1314 = vrot.lane.b32.xlu1 %v1134_v40, %s3182_s30  ;;  %v3736_v58 = vmax.f32 %v1089_v46, 0.0 }
 0x1a9   : > { %1316 = vrot.lane.b32.xlu0 %v1138_v59, %s3182_s30  ;;  %1322 = vrot.lane.b32.xlu1 %v1136_v50, %s3182_s30 }
 0x1ad   : > { %1324 = vrot.lane.b32.xlu0 %v1140_v60, %s3182_s30  ;;  %1282 = vrot.lane.b32.xlu1 %v1134_v40, %s4822_s17 }
 0x1b1   : > { %1284 = vrot.lane.b32.xlu0 %v1138_v59, %s4822_s17  ;;  %1290 = vrot.lane.b32.xlu1 %v1136_v50, %s4822_s17 }
 0x1b5   : > { %1292 = vrot.lane.b32.xlu0 %v1140_v60, %s4822_s17  ;;  %1242 = vrot.lane.b32.xlu1 %v1134_v40, %s4818_s19 }
 0x1b9   : > { %1244 = vrot.lane.b32.xlu0 %v1138_v59, %s4818_s19  ;;  %1250 = vrot.lane.b32.xlu1 %v1136_v50, %s4818_s19 }
 0x1bd   : > { %1252 = vrot.lane.b32.xlu0 %v1140_v60, %s4818_s19  ;;  %1210 = vrot.lane.b32.xlu1 %v1134_v40, %s4847_s28 }
 0x1c1   : > { %1212 = vrot.lane.b32.xlu0 %v1138_v59, %s4847_s28  ;;  %1218 = vrot.lane.b32.xlu1 %v1136_v50, %s4847_s28 }
 0x1c5   : > { %1220 = vrot.lane.b32.xlu0 %v1140_v60, %s4847_s28  ;;  %1178 = vrot.lane.b32.xlu1 %v1134_v40, %s4848_s18 }
 0x1c9   : > { %1180 = vrot.lane.b32.xlu0 %v1138_v59, %s4848_s18  ;;  %1186 = vrot.lane.b32.xlu1 %v1136_v50, %s4848_s18 }
 0x1cd   : > { %1188 = vrot.lane.b32.xlu0 %v1140_v60, %s4848_s18  ;;  %1146 = vrot.lane.b32.xlu1 %v1134_v40, %s4849_s21 }
 0x1d1   : > { %1148 = vrot.lane.b32.xlu0 %v1138_v59, %s4849_s21  ;;  %1154 = vrot.lane.b32.xlu1 %v1136_v50, %s4849_s21 }
 0x1d5   : > { %1156 = vrot.lane.b32.xlu0 %v1140_v60, %s4849_s21  ;;  %1378 = vrot.lane.b32.xlu1 %v1134_v40, %s4850_s20  ;;  %v3742_v40 = vmax.f32 %v1132_v2, 0.0 }
 0x1d9   : > { %1380 = vrot.lane.b32.xlu0 %v1138_v59, %s4850_s20  ;;  %1386 = vrot.lane.b32.xlu1 %v1136_v50, %s4850_s20  ;;  %v3137_v50 = vld [vmem:[%s3799_s27 + $0x4] ss:$8 sps:$4 sm:$0xff]  }
 0x1da   : > { %2791 = vmatprep.mubr.msk.bf16.mxu0 %vm1465_vm10, %v3137_v50  ;;  %2792 = vmatprep.mubr.msk.bf16.mxu1 %vm1465_vm10, %v3137_v50 }
 0x1dd   : > { %1388 = vrot.lane.b32.xlu0 %v1140_v60, %s4850_s20  ;;  %1350 = vrot.lane.b32.xlu1 %v3729_v33, %s3183_s16 }
 0x1e1   : > { %1352 = vrot.lane.b32.xlu0 %v3736_v58, %s3183_s16  ;;  %1358 = vrot.lane.b32.xlu1 %v3734_v41, %s3183_s16 }
 0x1e5   : > { %1360 = vrot.lane.b32.xlu0 %v3742_v40, %s3183_s16  ;;  %1318 = vrot.lane.b32.xlu1 %v3729_v33, %s3182_s30 }
 0x1e9   : > { %1320 = vrot.lane.b32.xlu0 %v3736_v58, %s3182_s30  ;;  %1326 = vrot.lane.b32.xlu1 %v3734_v41, %s3182_s30 }
 0x1ed   : > { %1328 = vrot.lane.b32.xlu0 %v3742_v40, %s3182_s30  ;;  %1286 = vrot.lane.b32.xlu1 %v3729_v33, %s4822_s17  ;;  %s651_s30 = sld [smem:[#allocation3 + %s3285_s0]] }
 0x1f1   : > { %1288 = vrot.lane.b32.xlu0 %v3736_v58, %s4822_s17  ;;  %1294 = vrot.lane.b32.xlu1 %v3734_v41, %s4822_s17 }
 0x1f3   : > { %p652_p11 = scmp.lt.s32.totalorder %s651_s30, 1 }
 0x1f5   : > { %1296 = vrot.lane.b32.xlu0 %v3742_v40, %s4822_s17  ;;  %1246 = vrot.lane.b32.xlu1 %v3729_v33, %s4818_s19  ;;  %s4910_s30 = smov (!%p652_p11, %s651_s30), 1 }
 0x1f9   : > { %1248 = vrot.lane.b32.xlu0 %v3736_v58, %s4818_s19  ;;  %1254 = vrot.lane.b32.xlu1 %v3734_v41, %s4818_s19 }
 0x1fd   : > { %1256 = vrot.lane.b32.xlu0 %v3742_v40, %s4818_s19  ;;  %1214 = vrot.lane.b32.xlu1 %v3729_v33, %s4847_s28  ;;  %s672_s19 = sld [smem:[#allocation3 + %s3285_s0]] }
 0x201   : > { %1216 = vrot.lane.b32.xlu0 %v3736_v58, %s4847_s28  ;;  %1222 = vrot.lane.b32.xlu1 %v3734_v41, %s4847_s28 }
 0x203   : > { %p673_p1 = scmp.lt.s32.totalorder %s672_s19, 1 }
 0x205   : > { %1224 = vrot.lane.b32.xlu0 %v3742_v40, %s4847_s28  ;;  %1182 = vrot.lane.b32.xlu1 %v3729_v33, %s4848_s18  ;;  %s2818_s28 = sshll.u32 %s4910_s30, 4  ;;  %s4890_s30 = smov 1  }
 0x206   : > { %s656_s22 = scalar_lea.vmem %s4754_s5, %s2818_s28  ;;  %s4916_s19 = smov (!%p673_p1, %s672_s19), 1 }
 0x207   : > { %v1144_v59 = vld [vmem:[%s656_s22] sm:$0xff]  ;;  %v1145_v22 = vld [vmem:[%s656_s22 + $0x8] sm:$0xff] }
 0x209   : > { %1184 = vrot.lane.b32.xlu0 %v3736_v58, %s4848_s18  ;;  %1190 = vrot.lane.b32.xlu1 %v3734_v41, %s4848_s18 }
 0x20d   : > { %1192 = vrot.lane.b32.xlu0 %v3742_v40, %s4848_s18  ;;  %1150 = vrot.lane.b32.xlu1 %v3729_v33, %s4849_s21  ;;  %s4826_s18 = smov 9  }
 0x20f   : > { %v3790_v32 = vpop.permute.xlu1 %1346 }
 0x211   : > { %1152 = vrot.lane.b32.xlu0 %v3736_v58, %s4849_s21  ;;  %1158 = vrot.lane.b32.xlu1 %v3734_v41, %s4849_s21 }
 0x213   : > { %v3801_v1 = vpop.permute.xlu0 %1348  ;;  %v1355_v0 = vpop.permute.xlu1 %1354 }
 0x215   : > { %1160 = vrot.lane.b32.xlu0 %v3742_v40, %s4849_s21  ;;  %1382 = vrot.lane.b32.xlu1 %v3729_v33, %s4850_s20  ;;  %s665_s21 = sld [smem:[#allocation3 + %s3285_s0]] }
 0x217   : > { %v1357_v55 = vpop.permute.xlu0 %1356  ;;  %v3810_v36 = vpop.permute.xlu1 %1314 }
 0x219   : > { %1384 = vrot.lane.b32.xlu0 %v3736_v58, %s4850_s20  ;;  %1390 = vrot.lane.b32.xlu1 %v3734_v41, %s4850_s20 }
 0x21b   : > { %v3819_v60 = vpop.permute.xlu0 %1316  ;;  %v3821_v16 = vpop.permute.xlu1 %1322  ;;  %p666_p13 = scmp.lt.s32.totalorder %s665_s21, 1 }
 0x21d   : > { %1392 = vrot.lane.b32.xlu0 %v3742_v40, %s4850_s20  ;;  %1448 = vperm.xlu1 %3045, %v1144_v59   ;;  %s4912_s21 = smov (!%p666_p13, %s665_s21), 1 }
 0x21e   : > { %s2820_s28 = sshll.u32 %s4912_s21, 5 }
 0x21f   : > { %v3825_v45 = vpop.permute.xlu0 %1324  ;;  %v3827_v46 = vpop.permute.xlu1 %1282  ;;  %s670_s22 = scalar_lea.vmem %s4756_s7, %s2820_s28  ;;  %s4899_s28 = smov 120  }
 0x221   : > { %1453 = vperm.xlu0 %3044, %v1145_v22  }
 0x223   : > { %v3829_v3 = vpop.permute.xlu0 %1284  ;;  %v3831_v2 = vpop.permute.xlu1 %1290 }
 0x227   : > { %v3833_v50 = vpop.permute.xlu0 %1292  ;;  %v3835_v4 = vpop.permute.xlu1 %1242 }
 0x22b   : > { %v3837_v34 = vpop.permute.xlu0 %1244  ;;  %v3839_v37 = vpop.permute.xlu1 %1250 }
 0x22f   : > { %v3841_v5 = vpop.permute.xlu0 %1252  ;;  %v3843_v59 = vpop.permute.xlu1 %1210 }
 0x233   : > { %v3845_v9 = vpop.permute.xlu0 %1212  ;;  %v3847_v61 = vpop.permute.xlu1 %1218 }
 0x237   : > { %v3849_v22 = vpop.permute.xlu0 %1220  ;;  %v3851_v62 = vpop.permute.xlu1 %1178 }
 0x238   : > { %4851 = vst [vmem:[#allocation24_spill] sm:$0xff] %v3851_v62 }
 0x23b   : > { %v3853_v56 = vpop.permute.xlu0 %1180  ;;  %v3855_v39 = vpop.permute.xlu1 %1186 }
 0x23c   : > { %4852 = vst [vmem:[#allocation25_spill] sm:$0xff] %v3853_v56  ;;  %4853 = vst [vmem:[#allocation26_spill] sm:$0xff] %v3855_v39 }
 0x23f   : > { %v3857_v38 = vpop.permute.xlu0 %1188  ;;  %v3859_v57 = vpop.permute.xlu1 %1146 }
 0x240   : > { %4854 = vst [vmem:[#allocation27_spill] sm:$0xff] %v3857_v38  ;;  %4855 = vst [vmem:[#allocation28_spill] sm:$0xff] %v3859_v57 }
 0x243   : > { %v3861_v29 = vpop.permute.xlu0 %1148  ;;  %v3863_v31 = vpop.permute.xlu1 %1154 }
 0x244   : > { %4856 = vst [vmem:[#allocation29_spill] sm:$0xff] %v3861_v29  ;;  %4857 = vst [vmem:[#allocation30_spill] sm:$0xff] %v3863_v31 }
 0x247   : > { %v3865_v26 = vpop.permute.xlu0 %1156  ;;  %v3867_v18 = vpop.permute.xlu1 %1378 }
 0x248   : > { %4858 = vst [vmem:[#allocation31_spill] sm:$0xff] %v3865_v26  ;;  %4859 = vst [vmem:[#allocation32_spill] sm:$0xff] %v3867_v18 }
 0x24b   : > { %v3869_v48 = vpop.permute.xlu0 %1380  ;;  %v3871_v35 = vpop.permute.xlu1 %1386 }
 0x24c   : > { %4860 = vst [vmem:[#allocation33_spill] sm:$0xff] %v3869_v48  ;;  %4861 = vst [vmem:[#allocation34_spill] sm:$0xff] %v3871_v35 }
 0x24f   : > { %v3873_v44 = vpop.permute.xlu0 %1388  ;;  %v1351_v19 = vpop.permute.xlu1 %1350 }
 0x250   : > { %4862 = vst [vmem:[#allocation35_spill] sm:$0xff] %v3873_v44  ;;  %v1364_v39 = vsel %vm938_vm2, %v1351_v19, %v1355_v0  ;;  %v1366_v29 = vsel %vm938_vm2, %v3790_v32, %v1351_v19 }
 0x251   : > { %v1370_v18 = vmul.f32 %v1366_v29, %v3456_v49  ;;  %v1371_v44 = vmul.f32 %v1364_v39, %v3466_v52 }
 0x253   : > { %v1353_v57 = vpop.permute.xlu0 %1352  ;;  %v1359_v31 = vpop.permute.xlu1 %1358 }
 0x254   : > { %v1365_v26 = vsel %vm938_vm2, %v1353_v57, %v1357_v55  ;;  %v1367_v48 = vsel %vm938_vm2, %v3801_v1, %v1353_v57  ;;  %v1362_v19 = vsel %vm938_vm2, %v1355_v0, %v1359_v31  ;;  %v1368_v56 = vsel %vm938_vm2, %v1359_v31, %v3790_v32 }
 0x255   : > { %v1374_v35 = vmul.f32 %v1367_v48, %v3456_v49  ;;  %v1375_v38 = vmul.f32 %v1365_v26, %v3466_v52  ;;  %v1372_v49 = vmul.f32 %v1362_v19, %v3470_v53  ;;  %v1373_v52 = vmul.f32 %v1368_v56, %v3462_v51 }
 0x257   : > { %v1438_v62 = vpack.c.bf16 %v1374_v35, %v1370_v18  ;;  %v1361_v12 = vpop.permute.xlu0 %1360  ;;  %v1319_v10 = vpop.permute.xlu1 %1318  ;;  %v1439_v11 = vpack.c.bf16 %v1375_v38, %v1371_v44 }
 0x258   : > { %v1363_v57 = vsel %vm938_vm2, %v1357_v55, %v1361_v12  ;;  %v1369_v39 = vsel %vm938_vm2, %v1361_v12, %v3801_v1  ;;  %v1332_v38 = vsel %vm905_vm3, %v1319_v10, %v3821_v16  ;;  %v1334_v18 = vsel %vm905_vm3, %v3810_v36, %v1319_v10 }
 0x259   : > { %v1376_v26 = vmul.f32 %v1363_v57, %v3470_v53  ;;  %v1377_v29 = vmul.f32 %v1369_v39, %v3462_v51  ;;  %1469 = vmatprep.subr.bf16.mxu0 %v1439_v11  ;;  %v1338_v56 = vmul.f32 %v1334_v18, %v3474_v54  ;;  %v1339_v11 = vmul.f32 %v1332_v38, %v3444_v43 }
 0x25a   : > { %1470 = vmatpush1.bf16.msra.mxu0 %v1438_v62  ;;  %v1279_v38 = vmul.f32 %v3736_v58, %v3503_v14  ;;  %v1275_v58 = vmul.f32 %v3729_v33, %v3503_v14 }
 0x25b   : > { %v1440_v31 = vpack.c.bf16 %v1376_v26, %v1372_v49  ;;  %v1321_v12 = vpop.permute.xlu0 %1320  ;;  %v1327_v35 = vpop.permute.xlu1 %1326  ;;  %v1441_v44 = vpack.c.bf16 %v1377_v29, %v1373_v52 }
 0x25c   : > { %v1333_v53 = vsel %vm905_vm3, %v1321_v12, %v3825_v45  ;;  %v1335_v51 = vsel %vm905_vm3, %v3819_v60, %v1321_v12  ;;  %v1330_v10 = vsel %vm905_vm3, %v3821_v16, %v1327_v35  ;;  %v1336_v32 = vsel %vm905_vm3, %v1327_v35, %v3810_v36 }
 0x25d   : > { %v1342_v48 = vmul.f32 %v1335_v51, %v3474_v54  ;;  %v1343_v62 = vmul.f32 %v1333_v53, %v3444_v43  ;;  %1512 = vmatprep.subr.bf16.mxu1 %v1441_v44  ;;  %v1340_v57 = vmul.f32 %v1330_v10, %v3450_v47  ;;  %v1341_v16 = vmul.f32 %v1336_v32, %v3440_v42 }
 0x25e   : > { %1513 = vmatpush1.bf16.msra.mxu1 %v1440_v31 }
 0x25f   : > { %v1434_v1 = vpack.c.bf16 %v1342_v48, %v1338_v56  ;;  %v1329_v0 = vpop.permute.xlu0 %1328  ;;  %v1287_v55 = vpop.permute.xlu1 %1286  ;;  %v1435_v19 = vpack.c.bf16 %v1343_v62, %v1339_v11 }
 0x260   : > { %v1331_v54 = vsel %vm905_vm3, %v3825_v45, %v1329_v0  ;;  %v1337_v43 = vsel %vm905_vm3, %v1329_v0, %v3819_v60  ;;  %v1300_v49 = vsel %vm872_vm4, %v1287_v55, %v3831_v2  ;;  %v1302_v45 = vsel %vm872_vm4, %v3827_v46, %v1287_v55 }
 0x261   : > { %v1344_v39 = vmul.f32 %v1331_v54, %v3450_v47  ;;  %v1345_v36 = vmul.f32 %v1337_v43, %v3440_v42  ;;  %1471 = vmatprep.subr.bf16.mxu0 %v1435_v19  ;;  %v1306_v18 = vmul.f32 %v1302_v45, %v3519_v23  ;;  %v1307_v31 = vmul.f32 %v1300_v49, %v3529_v27 }
 0x262   : > { %1472 = vmatpush1.bf16.msra.mxu0 %v1434_v1 }
 0x263   : > { %v1436_v52 = vpack.c.bf16 %v1344_v39, %v1340_v57  ;;  %v1289_v60 = vpop.permute.xlu0 %1288  ;;  %v1295_v26 = vpop.permute.xlu1 %1294  ;;  %v1437_v29 = vpack.c.bf16 %v1345_v36, %v1341_v16 }
 0x264   : > { %v1301_v47 = vsel %vm872_vm4, %v1289_v60, %v3833_v50  ;;  %v1303_v42 = vsel %vm872_vm4, %v3829_v3, %v1289_v60  ;;  %v1298_v44 = vsel %vm872_vm4, %v3831_v2, %v1295_v26  ;;  %v1304_v53 = vsel %vm872_vm4, %v1295_v26, %v3827_v46 }
 0x265   : > { %v1310_v12 = vmul.f32 %v1303_v42, %v3519_v23  ;;  %v1311_v35 = vmul.f32 %v1301_v47, %v3529_v27  ;;  %1514 = vmatprep.subr.bf16.mxu1 %v1437_v29  ;;  %v1427_v2 = vpack.c.bf16 %v1279_v38, %v1275_v58  ;;  %v1281_v46 = vmul.f32 %v3742_v40, %v3507_v15 }
 0x266   : > { %1515 = vmatpush1.bf16.msra.mxu1 %v1436_v52  ;;  %v1308_v62 = vmul.f32 %v1298_v44, %v3533_v28  ;;  %v1309_v14 = vmul.f32 %v1304_v53, %v3523_v25  ;;  %v1277_v40 = vmul.f32 %v3734_v41, %v3507_v15  ;;  %v4863_v41 = vpack.c.bf16 %v3692_v17, %v3689_v13  ;;  %v4865_v44 = vld [vmem:[#allocation12_spill] sm:$0xff] }
 0x267   : > { %v1430_v51 = vpack.c.bf16 %v1310_v12, %v1306_v18  ;;  %v1297_v56 = vpop.permute.xlu0 %1296  ;;  %v1247_v11 = vpop.permute.xlu1 %1246  ;;  %v1431_v48 = vpack.c.bf16 %v1311_v35, %v1307_v31 }
 0x268   : > { %v1299_v23 = vsel %vm872_vm4, %v3833_v50, %v1297_v56  ;;  %v1305_v27 = vsel %vm872_vm4, %v1297_v56, %v3829_v3  ;;  %v1262_v50 = vsel %vm819_vm6, %v3835_v4, %v1247_v11  ;;  %v1429_v54 = vpack.c.bf16 %v1281_v46, %v1277_v40  ;;  %v4867_v56 = vld [vmem:[#allocation13_spill] sm:$0xff]  ;;  %v4872_v40 = vld [vmem:[#allocation26_spill] sm:$0xff] }
 0x269   : > { %v1312_v33 = vmul.f32 %v1299_v23, %v3533_v28  ;;  %v1313_v10 = vmul.f32 %v1305_v27, %v3523_v25  ;;  %1473 = vmatprep.subr.bf16.mxu0 %v1431_v48  ;;  %v1267_v25 = vmul.f32 %v1262_v50, %v3567_v7  ;;  %v4870_v50 = vld [vmem:[#allocation17_spill] sm:$0xff] }
 0x26a   : > { %1474 = vmatpush1.bf16.msra.mxu0 %v1430_v51 }
 0x26b   : > { %v1432_v32 = vpack.c.bf16 %v1312_v33, %v1308_v62  ;;  %v1249_v3 = vpop.permute.xlu0 %1248  ;;  %1475 = vmatprep.subr.bf16.mxu0 %v1427_v2  ;;  %v1255_v1 = vpop.permute.xlu1 %1254  ;;  %v1433_v0 = vpack.c.bf16 %v1313_v10, %v1309_v14 }
 0x26c   : > { %v1263_v28 = vsel %vm819_vm6, %v3837_v34, %v1249_v3  ;;  %v1261_v55 = vsel %vm819_vm6, %v1249_v3, %v3841_v5  ;;  %v1258_v43 = vsel %vm819_vm6, %v3839_v37, %v1255_v1  ;;  %v1264_v15 = vsel %vm819_vm6, %v1255_v1, %v3835_v4  ;;  %v4871_v3 = vld [vmem:[#allocation27_spill] sm:$0xff] }
 0x26d   : > { %v1271_v19 = vmul.f32 %v1263_v28, %v3567_v7  ;;  %1516 = vmatprep.subr.bf16.mxu1 %v1433_v0  ;;  %v1260_v7 = vsel %vm819_vm6, %v1247_v11, %v3839_v37  ;;  %v1272_v36 = vmul.f32 %v1261_v55, %v3593_v21  ;;  %v1266_v13 = vmul.f32 %v1264_v15, %v3589_v20  ;;  %v4873_v15 = vld [vmem:[#allocation22_spill] sm:$0xff] }
 0x26e   : > { %1476 = vmatpush1.bf16.msra.mxu0 %v4863_v41  ;;  %1517 = vmatpush1.bf16.msra.mxu1 %v1432_v32  ;;  %v1269_v17 = vmul.f32 %v1258_v43, %v3601_v30  ;;  %v1268_v60 = vmul.f32 %v1260_v7, %v3593_v21 }
 0x26f   : > { %v1257_v57 = vpop.permute.xlu0 %1256  ;;  %1518 = vmatprep.subr.bf16.mxu1 %v1429_v54  ;;  %v1215_v16 = vpop.permute.xlu1 %1214  ;;  %v1423_v39 = vpack.c.bf16 %v1271_v19, %v1267_v25 }
 0x270   : > { %v1259_v49 = vsel %vm819_vm6, %v3841_v5, %v1257_v57  ;;  %v1265_v4 = vsel %vm819_vm6, %v1257_v57, %v3837_v34  ;;  %v1230_v37 = vsel %vm786_vm5, %v3843_v59, %v1215_v16  ;;  %v4864_v5 = vpack.c.bf16 %v3695_v24, %v3684_v63 }
 0x271   : > { %v1270_v45 = vmul.f32 %v1265_v4, %v3589_v20  ;;  %v1273_v52 = vmul.f32 %v1259_v49, %v3601_v30  ;;  %1477 = vmatprep.subr.bf16.mxu0 %v1423_v39  ;;  %v1424_v30 = vpack.c.bf16 %v1272_v36, %v1268_v60  ;;  %v1235_v42 = vmul.f32 %v1230_v37, %v3562_v6  ;;  %v4874_v39 = vld [vmem:[#allocation21_spill] sm:$0xff]  ;;  %v4875_v36 = vld [vmem:[#allocation23_spill] sm:$0xff] }
 0x272   : > { %1519 = vmatpush1.bf16.msra.mxu1 %v4864_v5  ;;  %v1228_v35 = vsel %vm786_vm5, %v1215_v16, %v3847_v61 }
 0x273   : > { %v1422_v34 = vpack.c.bf16 %v1270_v45, %v1266_v13  ;;  %v1217_v26 = vpop.permute.xlu0 %1216  ;;  %v1223_v29 = vpop.permute.xlu1 %1222  ;;  %v1425_v47 = vpack.c.bf16 %v1273_v52, %v1269_v17  ;;  %v1236_v2 = vmul.f32 %v1228_v35, %v4865_v44  ;;  %v4876_v17 = vld [vmem:[#allocation28_spill] sm:$0xff] }
 0x274   : > { %v1231_v20 = vsel %vm786_vm5, %v3845_v9, %v1217_v26  ;;  %v1229_v38 = vsel %vm786_vm5, %v1217_v26, %v3849_v22  ;;  %v1226_v21 = vsel %vm786_vm5, %v3847_v61, %v1223_v29  ;;  %v1232_v24 = vsel %vm786_vm5, %v1223_v29, %v3843_v59  ;;  %v4866_v59 = vld [vmem:[#allocation11_spill] sm:$0xff]  ;;  %v4868_v61 = vld [vmem:[#allocation24_spill] sm:$0xff]  ;;  %v4877_v26 = vld [vmem:[#allocation29_spill] sm:$0xff] }
 0x275   : > { %v1239_v63 = vmul.f32 %v1231_v20, %v3562_v6  ;;  %1478 = vmatpush1.bf16.msra.mxu0 %v1422_v34  ;;  %1520 = vmatprep.subr.bf16.mxu1 %v1425_v47  ;;  %v1240_v6 = vmul.f32 %v1229_v38, %v4865_v44  ;;  %v1234_v51 = vmul.f32 %v1232_v24, %v4866_v59  ;;  %v4878_v20 = vld [vmem:[#allocation16_spill] sm:$0xff] }
 0x276   : > { %1521 = vmatpush1.bf16.msra.mxu1 %v1424_v30  ;;  %v1237_v11 = vmul.f32 %v1226_v21, %v4867_v56  ;;  %v4880_v21 = vld [vmem:[#allocation30_spill] sm:$0xff] }
 0x277   : > { %v1225_v18 = vpop.permute.xlu0 %1224  ;;  %v1183_v31 = vpop.permute.xlu1 %1182  ;;  %v1419_v12 = vpack.c.bf16 %v1239_v63, %v1235_v42  ;;  %v1420_v10 = vpack.c.bf16 %v1240_v6, %v1236_v2  ;;  %v4879_v42 = vld [vmem:[#allocation31_spill] sm:$0xff]  ;;  %v4884_v2 = vld [vmem:[#allocation34_spill] sm:$0xff] }
 0x278   : > { %v1227_v53 = vsel %vm786_vm5, %v3849_v22, %v1225_v18  ;;  %v1233_v58 = vsel %vm786_vm5, %v1225_v18, %v3845_v9  ;;  %v1198_v27 = vsel %vm753_vm8, %v4868_v61, %v1183_v31  ;;  %v4869_v9 = vld [vmem:[#allocation25_spill] sm:$0xff]  ;;  %v1196_v43 = vsel %vm753_vm8, %v1183_v31, %v4872_v40  ;;  %v4881_v6 = vld [vmem:[#allocation19_spill] sm:$0xff] }
 0x279   : > { %v1238_v48 = vmul.f32 %v1233_v58, %v4866_v59  ;;  %v1241_v23 = vmul.f32 %v1227_v53, %v4867_v56  ;;  %1479 = vmatprep.subr.bf16.mxu0 %v1419_v12  ;;  %v1203_v32 = vmul.f32 %v1198_v27, %v4870_v50  ;;  %v1204_v52 = vmul.f32 %v1196_v43, %v4873_v15 }
 0x27b   : > { %v1418_v22 = vpack.c.bf16 %v1238_v48, %v1234_v51  ;;  %v1185_v46 = vpop.permute.xlu0 %1184  ;;  %v1191_v62 = vpop.permute.xlu1 %1190  ;;  %v1421_v14 = vpack.c.bf16 %v1241_v23, %v1237_v11  ;;  %v4882_v51 = vld [vmem:[#allocation18_spill] sm:$0xff]  ;;  %v4883_v11 = vld [vmem:[#allocation20_spill] sm:$0xff] }
 0x27c   : > { %v1199_v33 = vsel %vm753_vm8, %v4869_v9, %v1185_v46  ;;  %v1197_v1 = vsel %vm753_vm8, %v1185_v46, %v4871_v3  ;;  %v1194_v28 = vsel %vm753_vm8, %v4872_v40, %v1191_v62  ;;  %v1200_v25 = vsel %vm753_vm8, %v1191_v62, %v4868_v61  ;;  %v4885_v46 = vld [vmem:[#allocation32_spill] sm:$0xff]  ;;  %v3154_v40 = vld [vmem:[%s4759_s10 + $0x20] ss:$0 sm:$0xff] }
 0x27d   : > { %v1207_v0 = vmul.f32 %v1199_v33, %v4870_v50  ;;  %1480 = vmatpush1.bf16.msra.mxu0 %v1418_v22  ;;  %1522 = vmatprep.subr.bf16.mxu1 %v1421_v14  ;;  %v1208_v41 = vmul.f32 %v1197_v1, %v4873_v15  ;;  %v1202_v7 = vmul.f32 %v1200_v25, %v4874_v39  ;;  %v4887_v1 = vld [vmem:[#allocation33_spill] sm:$0xff]  ;;  %v3155_v25 = vld [vmem:[%s4759_s10 + $0x28] ss:$0 sm:$0xff] }
 0x27e   : > { %1523 = vmatpush1.bf16.msra.mxu1 %v1420_v10  ;;  %v1205_v49 = vmul.f32 %v1194_v28, %v4875_v36 }
 0x27f   : > { %v1193_v55 = vpop.permute.xlu0 %1192  ;;  %v1151_v19 = vpop.permute.xlu1 %1150  ;;  %v1415_v54 = vpack.c.bf16 %v1207_v0, %v1203_v32  ;;  %v1416_v47 = vpack.c.bf16 %v1208_v41, %v1204_v52  ;;  %v4886_v32 = vld [vmem:[#allocation35_spill] sm:$0xff]  ;;  %v3139_v52 = vld [vmem:[%s3799_s27] ss:$8 sps:$4 sm:$0xff]   ;;  %s658_s27 = sld [smem:[#allocation3 + %s3285_s0]] }
 0x280   : > { %v1195_v57 = vsel %vm753_vm8, %v4871_v3, %v1193_v55  ;;  %v1201_v16 = vsel %vm753_vm8, %v1193_v55, %v4869_v9  ;;  %v1166_v45 = vsel %vm720_vm7, %v4876_v17, %v1151_v19  ;;  %v1164_v31 = vsel %vm720_vm7, %v1151_v19, %v4880_v21 }
 0x281   : > { %v1206_v4 = vmul.f32 %v1201_v16, %v4874_v39  ;;  %v1209_v13 = vmul.f32 %v1195_v57, %v4875_v36  ;;  %1481 = vmatprep.subr.bf16.mxu0 %v1415_v54  ;;  %v1171_v30 = vmul.f32 %v1166_v45, %v4878_v20  ;;  %v1172_v27 = vmul.f32 %v1164_v31, %v4881_v6  ;;  %v3156_v36 = vld [vmem:[%s4759_s10 + $0x30] ss:$0 sm:$0xff]  ;;  %v1623_v31 = vld [vmem:[%s4761_s12 + $0x1e0] sm:$0xff] }
 0x283   : > { %v1414_v37 = vpack.c.bf16 %v1206_v4, %v1202_v7  ;;  %v1153_v5 = vpop.permute.xlu0 %1152  ;;  %v1159_v60 = vpop.permute.xlu1 %1158  ;;  %v1417_v34 = vpack.c.bf16 %v1209_v13, %v1205_v49  ;;  %v3157_v4 = vld [vmem:[%s4759_s10 + $0x38] ss:$0 sm:$0xff] }
 0x284   : > { %v1167_v29 = vsel %vm720_vm7, %v4877_v26, %v1153_v5  ;;  %v1165_v38 = vsel %vm720_vm7, %v1153_v5, %v4879_v42  ;;  %v1162_v24 = vsel %vm720_vm7, %v4880_v21, %v1159_v60  ;;  %v1168_v18 = vsel %vm720_vm7, %v1159_v60, %v4876_v17  ;;  %v1594_v60 = vld [vmem:[%s4761_s12 + $0xf8] sm:$0xff]  ;;  %v1576_v21 = vld [vmem:[%s4761_s12 + $0x68] sm:$0xff] }
 0x285   : > { %v1175_v63 = vmul.f32 %v1167_v29, %v4878_v20  ;;  %1482 = vmatpush1.bf16.msra.mxu0 %v1414_v37  ;;  %1524 = vmatprep.subr.bf16.mxu1 %v1417_v34  ;;  %v1176_v53 = vmul.f32 %v1165_v38, %v4881_v6  ;;  %v1170_v56 = vmul.f32 %v1168_v18, %v4882_v51  ;;  %v1626_v34 = vld [vmem:[%s4761_s12 + $0x1f8] sm:$0xff]  ;;  %v1625_v20 = vld [vmem:[%s4761_s12 + $0x1f0] sm:$0xff]  ;;  %v1592_v38 = vld [vmem:[%s4761_s12 + $0xe8] sm:$0xff]  ;;  %p659_p0 = scmp.lt.s32.totalorder %s658_s27, 1 }
 0x286   : > { %1525 = vmatpush1.bf16.msra.mxu1 %v1416_v47  ;;  %v1173_v48 = vmul.f32 %v1162_v24, %v4883_v11  ;;  %v1610_v29 = vld [vmem:[%s4761_s12 + $0x178] sm:$0xff]  ;;  %v1593_v47 = vld [vmem:[%s4761_s12 + $0xf0] sm:$0xff]  ;;  %v1608_v24 = vld [vmem:[%s4761_s12 + $0x168] sm:$0xff] }
 0x287   : > { %v1161_v12 = vpop.permute.xlu0 %1160  ;;  %v1383_v35 = vpop.permute.xlu1 %1382  ;;  %v1411_v44 = vpack.c.bf16 %v1175_v63, %v1171_v30  ;;  %v1412_v50 = vpack.c.bf16 %v1176_v53, %v1172_v27  ;;  %v1577_v30 = vld [vmem:[%s4761_s12 + $0x70] sm:$0xff]  ;;  %v1624_v63 = vld [vmem:[%s4761_s12 + $0x1e8] sm:$0xff]  ;;  %v1591_v18 = vld [vmem:[%s4761_s12 + $0xe0] sm:$0xff]  ;;  %s4914_s27 = smov (!%p659_p0, %s658_s27), 1 }
 0x288   : > { %v1163_v58 = vsel %vm720_vm7, %v4879_v42, %v1161_v12  ;;  %v1169_v59 = vsel %vm720_vm7, %v1161_v12, %v4877_v26  ;;  %v1396_v22 = vsel %vm971_vm0, %v1383_v35, %v4884_v2  ;;  %v1398_v62 = vsel %vm971_vm0, %v4885_v46, %v1383_v35  ;;  %v1578_v26 = vld [vmem:[%s4761_s12 + $0x78] sm:$0xff]  ;;  %v1609_v42 = vld [vmem:[%s4761_s12 + $0x170] sm:$0xff]  ;;  %v1575_v12 = vld [vmem:[%s4761_s12 + $0x60] sm:$0xff]  ;;  %s2819_s21 = sshll.u32 %s4914_s27, 5  ;;  %s4901_s27 = smov 127  }
 0x289   : > { %v1174_v23 = vmul.f32 %v1169_v59, %v4882_v51  ;;  %v1177_v61 = vmul.f32 %v1163_v58, %v4883_v11  ;;  %1483 = vmatprep.subr.bf16.mxu0 %v1411_v44  ;;  %v1402_v28 = vmul.f32 %v3154_v40, %v1398_v62  ;;  %v1403_v55 = vmul.f32 %v3155_v25, %v1396_v22  ;;  %v1607_v35 = vld [vmem:[%s4761_s12 + $0x160] sm:$0xff]  ;;  %v1590_v44 = vld [vmem:[%s4761_s12 + $0xd8] sm:$0xff]  ;;  %v1589_v59 = vld [vmem:[%s4761_s12 + $0xd0] sm:$0xff] }
 0x28a   : > { %v1622_v6 = vld [vmem:[%s4761_s12 + $0x1d8] sm:$0xff]  ;;  %v1621_v51 = vld [vmem:[%s4761_s12 + $0x1d0] sm:$0xff]  ;;  %v1604_v27 = vld [vmem:[%s4761_s12 + $0x148] sm:$0xff] }
 0x28b   : > { %v1410_v14 = vpack.c.bf16 %v1174_v23, %v1170_v56  ;;  %v1385_v9 = vpop.permute.xlu0 %1384  ;;  %v1391_v33 = vpop.permute.xlu1 %1390  ;;  %v1413_v10 = vpack.c.bf16 %v1177_v61, %v1173_v48  ;;  %v1574_v53 = vld [vmem:[%s4761_s12 + $0x58] sm:$0xff]  ;;  %v1573_v56 = vld [vmem:[%s4761_s12 + $0x50] sm:$0xff]  ;;  %v1588_v48 = vld [vmem:[%s4761_s12 + $0xc8] sm:$0xff] }
 0x28c   : > { %v1397_v3 = vsel %vm971_vm0, %v1385_v9, %v4886_v32  ;;  %v1399_v0 = vsel %vm971_vm0, %v4887_v1, %v1385_v9  ;;  %v1394_v43 = vsel %vm971_vm0, %v4884_v2, %v1391_v33  ;;  %v1400_v15 = vsel %vm971_vm0, %v1391_v33, %v4885_v46  ;;  %v1606_v58 = vld [vmem:[%s4761_s12 + $0x158] sm:$0xff]  ;;  %v1605_v11 = vld [vmem:[%s4761_s12 + $0x150] sm:$0xff]  ;;  %v1620_v23 = vld [vmem:[%s4761_s12 + $0x1c8] sm:$0xff] }
 0x28d   : > { %v1406_v19 = vmul.f32 %v3154_v40, %v1399_v0  ;;  %v1407_v54 = vmul.f32 %v3155_v25, %v1397_v3  ;;  %1484 = vmatpush1.bf16.msra.mxu0 %v1410_v14  ;;  %1526 = vmatprep.subr.bf16.mxu1 %v1413_v10  ;;  %v1404_v49 = vmul.f32 %v3156_v36, %v1394_v43  ;;  %v1572_v61 = vld [vmem:[%s4761_s12 + $0x48] sm:$0xff]  ;;  %v1587_v2 = vld [vmem:[%s4761_s12 + $0xc0] sm:$0xff]  ;;  %v1586_v9 = vld [vmem:[%s4761_s12 + $0xb8] sm:$0xff] }
 0x28e   : > { %1527 = vmatpush1.bf16.msra.mxu1 %v1412_v50  ;;  %v1405_v13 = vmul.f32 %v3157_v4, %v1400_v15  ;;  %v1619_v22 = vld [vmem:[%s4761_s12 + $0x1c0] sm:$0xff]  ;;  %v1618_v33 = vld [vmem:[%s4761_s12 + $0x1b8] sm:$0xff]  ;;  %v1585_v0 = vld [vmem:[%s4761_s12 + $0xb0] sm:$0xff] }
 0x28f   : > { %v1442_v41 = vpack.c.bf16 %v1406_v19, %v1402_v28  ;;  %v1393_v57 = vpop.permute.xlu0 %1392  ;;  %v1443_v16 = vpack.c.bf16 %v1407_v54, %v1403_v55  ;;  %v1603_v46 = vld [vmem:[%s4761_s12 + $0x140] sm:$0xff]  ;;  %v1570_v50 = vld [vmem:[%s4761_s12 + $0x38] sm:$0xff]  ;;  %v1617_v40 = vld [vmem:[%s4761_s12 + $0x1b0] sm:$0xff] }
 0x290   : > { %v1395_v39 = vsel %vm971_vm0, %v4886_v32, %v1393_v57  ;;  %v1401_v7 = vsel %vm971_vm0, %v1393_v57, %v4887_v1  ;;  %v1571_v62 = vld [vmem:[%s4761_s12 + $0x40] sm:$0xff]  ;;  %v1602_v32 = vld [vmem:[%s4761_s12 + $0x138] sm:$0xff]  ;;  %v1601_v25 = vld [vmem:[%s4761_s12 + $0x130] sm:$0xff] }
 0x291   : > { %v1408_v17 = vmul.f32 %v3156_v36, %v1395_v39  ;;  %v1409_v45 = vmul.f32 %v3157_v4, %v1401_v7  ;;  %1499 = vmatprep.subr.bf16.mxu0 %v1443_v16  ;;  %v1569_v55 = vld [vmem:[%s4761_s12 + $0x30] sm:$0xff]  ;;  %v1584_v54 = vld [vmem:[%s4761_s12 + $0xa8] sm:$0xff]  ;;  %v1615_v4 = vld [vmem:[%s4761_s12 + $0x1a0] sm:$0xff] }
 0x292   : > { %1500 = vmatpush2.bf16.msra.mxu0 %v1442_v41  ;;  %v1616_v43 = vld [vmem:[%s4761_s12 + $0x1a8] sm:$0xff] }
 0x293   : > { %v1444_v37 = vpack.c.bf16 %v1408_v17, %v1404_v49  ;;  %v1445_v5 = vpack.c.bf16 %v1409_v45, %v1405_v13  ;;  %2823 = vmatprep.subr.mxu0 %v1594_v60  ;;  %v1568_v16 = vld [vmem:[%s4761_s12 + $0x28] sm:$0xff]  ;;  %v1583_v49 = vld [vmem:[%s4761_s12 + $0xa0] sm:$0xff]  ;;  %v1614_v60 = vld [vmem:[%s4761_s12 + $0x198] sm:$0xff] }
 0x294   : > { %v1600_v39 = vld [vmem:[%s4761_s12 + $0x128] sm:$0xff]  ;;  %v1599_v17 = vld [vmem:[%s4761_s12 + $0x120] sm:$0xff] }
 0x295   : > { %1502 = vmatmul.mubr.bf16.vlgmr.msra.gmra.mxu0 %v3139_v52  ;;  %1542 = vmatprep.subr.bf16.mxu1 %v1445_v5  ;;  %v1567_v45 = vld [vmem:[%s4761_s12 + $0x20] sm:$0xff]  ;;  %v1582_v5 = vld [vmem:[%s4761_s12 + $0x98] sm:$0xff] }
 0x296   : > { %1543 = vmatpush2.bf16.msra.mxu1 %v1444_v37  ;;  %2824 = vmatpush3.msra.mxu0 %v1578_v26 }
 0x297   : > { %2861 = vmatprep.subr.mxu1 %v1626_v34  ;;  %2825 = vmatprep.subr.mxu0 %v1593_v47  ;;  %v1566_v47 = vld [vmem:[%s4761_s12 + $0x18] sm:$0xff] }
 0x298   : > { %2826 = vmatpush3.msra.mxu0 %v1577_v30  ;;  %v1449_v10 = vpop.permute.xlu1 %1448  ;;  %v1581_v30 = vld [vmem:[%s4761_s12 + $0x90] sm:$0xff] }
 0x299   : > { %1545 = vmatmul.mubr.bf16.vlgmr.msra.gmra.mxu1 %v3139_v52  ;;  %2827 = vmatprep.subr.mxu0 %v1592_v38 }
 0x29a   : > { %2862 = vmatpush3.msra.mxu1 %v1610_v29  ;;  %2828 = vmatpush3.msra.mxu0 %v1576_v21  ;;  %v1597_v21 = vld [vmem:[%s4761_s12 + $0x110] sm:$0xff] }
 0x29b   : > { %2863 = vmatprep.subr.mxu1 %v1625_v20  ;;  %2829 = vmatprep.subr.mxu0 %v1591_v18  ;;  %v1598_v20 = vld [vmem:[%s4761_s12 + $0x118] sm:$0xff] }
 0x29c   : > { %2864 = vmatpush3.msra.mxu1 %v1609_v42  ;;  %2830 = vmatpush3.msra.mxu0 %v1575_v12  ;;  %v1613_v42 = vld [vmem:[%s4761_s12 + $0x190] sm:$0xff]  ;;  %v1454_v38 = vpop.permute.xlu0 %1453  ;;  %v1580_v12 = vld [vmem:[%s4761_s12 + $0x88] sm:$0xff] }
 0x29d   : > { %2865 = vmatprep.subr.mxu1 %v1624_v63  ;;  %2831 = vmatprep.subr.mxu0 %v1590_v44  ;;  %v1564_v44 = vld [vmem:[%s4761_s12 + $0x8] sm:$0xff] }
 0x29e   : > { %2866 = vmatpush3.msra.mxu1 %v1608_v24  ;;  %2832 = vmatpush3.msra.mxu0 %v1574_v53  ;;  %v1565_v24 = vld [vmem:[%s4761_s12 + $0x10] sm:$0xff] }
 0x29f   : > { %2867 = vmatprep.subr.mxu1 %v1623_v31  ;;  %2833 = vmatprep.subr.mxu0 %v1589_v59 }
 0x2a0   : > { %2868 = vmatpush3.msra.mxu1 %v1607_v35  ;;  %2834 = vmatpush3.msra.mxu0 %v1573_v56  ;;  %v1612_v35 = vld [vmem:[%s4761_s12 + $0x188] sm:$0xff] }
 0x2a1   : > { %2869 = vmatprep.subr.mxu1 %v1622_v6  ;;  %2835 = vmatprep.subr.mxu0 %v1588_v48  ;;  %v1596_v6 = vld [vmem:[%s4761_s12 + $0x108] sm:$0xff]  ;;  %v1563_v48 = vld [vmem:[%s4761_s12] sm:$0xff] }
 0x2a2   : > { %2870 = vmatpush3.msra.mxu1 %v1606_v58  ;;  %2836 = vmatpush3.msra.mxu0 %v1572_v61  ;;  %v1579_v58 = vld [vmem:[%s4761_s12 + $0x80] sm:$0xff] }
 0x2a3   : > { %2871 = vmatprep.subr.mxu1 %v1621_v51  ;;  %2837 = vmatprep.subr.mxu0 %v1587_v2  ;;  %v1611_v51 = vld [vmem:[%s4761_s12 + $0x180] sm:$0xff] }
 0x2a4   : > { %2872 = vmatpush3.msra.mxu1 %v1605_v11  ;;  %2838 = vmatpush3.msra.mxu0 %v1571_v62  ;;  %v1595_v11 = vld [vmem:[%s4761_s12 + $0x100] sm:$0xff] }
 0x2a5   : > { %2873 = vmatprep.subr.mxu1 %v1620_v23  ;;  %2839 = vmatprep.subr.mxu0 %v1586_v9 }
 0x2a6   : > { %2874 = vmatpush3.msra.mxu1 %v1604_v27  ;;  %2840 = vmatpush3.msra.mxu0 %v1570_v50 }
 0x2a7   : > { %2875 = vmatprep.subr.mxu1 %v1619_v22  ;;  %2841 = vmatprep.subr.mxu0 %v1585_v0  ;;  %v4888_v22 = vmov 0  }
 0x2a8   : > { %2876 = vmatpush3.msra.mxu1 %v1603_v46  ;;  %2842 = vmatpush3.msra.mxu0 %v1569_v55 }
 0x2a9   : > { %2877 = vmatprep.subr.mxu1 %v1618_v33  ;;  %2843 = vmatprep.subr.mxu0 %v1584_v54 }
 0x2aa   : > { %2878 = vmatpush3.msra.mxu1 %v1602_v32  ;;  %2844 = vmatpush3.msra.mxu0 %v1568_v16 }
 0x2ab   : > { %2879 = vmatprep.subr.mxu1 %v1617_v40  ;;  %2845 = vmatprep.subr.mxu0 %v1583_v49 }
 0x2ac   : > { %2880 = vmatpush3.msra.mxu1 %v1601_v25  ;;  %2846 = vmatpush3.msra.mxu0 %v1567_v45 }
 0x2ad   : > { %2881 = vmatprep.subr.mxu1 %v1616_v43  ;;  %2847 = vmatprep.subr.mxu0 %v1582_v5 }
 0x2ae   : > { %2882 = vmatpush3.msra.mxu1 %v1600_v39  ;;  %2848 = vmatpush3.msra.mxu0 %v1566_v47 }
 0x2af   : > { %2883 = vmatprep.subr.mxu1 %v1615_v4  ;;  %2849 = vmatprep.subr.mxu0 %v1581_v30 }
 0x2b0   : > { %2884 = vmatpush3.msra.mxu1 %v1599_v17  ;;  %2850 = vmatpush3.msra.mxu0 %v1565_v24 }
 0x2b1   : > { %2885 = vmatprep.subr.mxu1 %v1614_v60  ;;  %2851 = vmatprep.subr.mxu0 %v1580_v12 }
 0x2b2   : > { %2886 = vmatpush3.msra.mxu1 %v1598_v20  ;;  %2852 = vmatpush3.msra.mxu0 %v1564_v44 }
 0x2b3   : > { %2887 = vmatprep.subr.mxu1 %v1613_v42  ;;  %2853 = vmatprep.subr.mxu0 %v1579_v58 }
 0x2b4   : > { %2888 = vmatpush3.msra.mxu1 %v1597_v21  ;;  %2854 = vmatpush3.msra.mxu0 %v1563_v48 }
 0x2b5   : > { %2889 = vmatprep.subr.mxu1 %v1612_v35  ;;  %2020 = vmatprep.subr.bf16.mxu0 %v4888_v22 }
 0x2b6   : > { %2890 = vmatpush3.msra.mxu1 %v1596_v6 }
 0x2b7   : > { %2891 = vmatprep.subr.mxu1 %v1611_v51 }
 0x2b8   : > { %2892 = vmatpush3.msra.mxu1 %v1595_v11 }
 0x355   : > { %v1503_v14 = vpop.f32.mrf.mxu0 }
 0x356   : > { %v4254_v3 = vadd.f32 %v1503_v14, %v1449_v10 }
 0x357   : > { %v1505_v1 = vpop.f32.mrf.mxu0 }
 0x358   : > { %v4262_v28 = vadd.f32 %v1505_v1, %v1449_v10  ;;  %v1555_v7 = vmax.f32 %v4254_v3, 0.0 }
 0x359   : > { %v1546_v19 = vpop.f32.mrf.mxu1  ;;  %v1507_v41 = vpop.f32.mrf.mxu0 }
 0x35a   : > { %v1556_v15 = vmax.f32 %v4262_v28, 0.0  ;;  %v4277_v57 = vadd.f32 %v1546_v19, %v1449_v10  ;;  %v4350_v53 = vadd.f32 %v1507_v41, %v1454_v38 }
 0x35b   : > { %v1548_v36 = vpop.f32.mrf.mxu1  ;;  %v1509_v26 = vpop.f32.mrf.mxu0 }
 0x35c   : > { %v4292_v13 = vadd.f32 %v1548_v36, %v1449_v10  ;;  %v3046_v37 = vpack.i.bf16 %v1556_v15, %v1555_v7  ;;  %v1557_v34 = vmax.f32 %v4277_v57, 0.0  ;;  %v4335_v18 = vadd.f32 %v1509_v26, %v1454_v38 }
 0x35d   : > { %v1550_v52 = vpop.f32.mrf.mxu1  ;;  %v1559_v61 = vmax.f32 %v4350_v53, 0.0 }
 0x35e   : > { %v1558_v29 = vmax.f32 %v4292_v13, 0.0  ;;  %3047 = vrot.lane.b32.xlu1 %v3046_v37, %s4822_s17  ;;  %v1560_v56 = vmax.f32 %v4335_v18, 0.0  ;;  %v4368_v23 = vadd.f32 %v1550_v52, %v1454_v38 }
 0x35f   : > { %v1552_v31 = vpop.f32.mrf.mxu1 }
 0x360   : > { %v3051_v63 = vpack.i.bf16 %v1558_v29, %v1557_v34  ;;  %v4356_v59 = vadd.f32 %v1552_v31, %v1454_v38  ;;  %v3076_v2 = vpack.i.bf16 %v1560_v56, %v1559_v61  ;;  %v1561_v46 = vmax.f32 %v4368_v23, 0.0 }
 0x362   : > { %3052 = vrot.lane.b32.xlu0 %v3051_v63, %s4822_s17  ;;  %3057 = vrot.lane.b32.xlu1 %v3046_v37, %s3183_s16  ;;  %v1562_v27 = vmax.f32 %v4356_v59, 0.0 }
 0x364   : > { %v3081_v62 = vpack.i.bf16 %v1562_v27, %v1561_v46 }
 0x366   : > { %3062 = vrot.lane.b32.xlu0 %v3051_v63, %s3183_s16  ;;  %3067 = vrot.lane.b32.xlu1 %v3046_v37, %s4850_s20 }
 0x36a   : > { %3072 = vrot.lane.b32.xlu0 %v3051_v63, %s4850_s20  ;;  %3077 = vrot.lane.b32.xlu1 %v3076_v2, %s4822_s17 }
 0x36e   : > { %3082 = vrot.lane.b32.xlu0 %v3081_v62, %s4822_s17  ;;  %3087 = vrot.lane.b32.xlu1 %v3076_v2, %s3183_s16 }
 0x372   : > { %3092 = vrot.lane.b32.xlu0 %v3081_v62, %s3183_s16  ;;  %3097 = vrot.lane.b32.xlu1 %v3076_v2, %s4850_s20  ;;  %s4824_s16 = smov 120  }
 0x376   : > { %3102 = vrot.lane.b32.xlu0 %v3081_v62, %s4850_s20  ;;  %s4820_s20 = smov 121  }
 0x3d0   : > { %v3048_v14 = vpop.permute.xlu1 %3047 }
 0x3d1   : > { %v3050_v50 = vunpack.i.h.bf16 %v3048_v14  ;;  %v3049_v32 = vunpack.i.l.bf16 %v3048_v14 }
 0x3d3   : > { %v1647_v39 = vsel %vm872_vm4, %v3049_v32, %v3050_v50 }
 0x3d4   : > { %v3053_v9 = vpop.permute.xlu0 %3052  ;;  %v3058_v33 = vpop.permute.xlu1 %3057  ;;  %v1651_v28 = vmax.f32 %v1555_v7, %v1647_v39 }
 0x3d5   : > { %v3054_v10 = vunpack.i.l.bf16 %v3053_v9  ;;  %v3055_v1 = vunpack.i.h.bf16 %v3053_v9  ;;  %v3060_v40 = vunpack.i.h.bf16 %v3058_v33  ;;  %v3059_v25 = vunpack.i.l.bf16 %v3058_v33 }
 0x3d7   : > { %v1645_v16 = vsel %vm872_vm4, %v3050_v50, %v3054_v10  ;;  %v1643_v36 = vsel %vm872_vm4, %v3054_v10, %v3055_v1  ;;  %v1649_v17 = vsel %vm872_vm4, %v3055_v1, %v3049_v32  ;;  %v1679_v45 = vsel %vm938_vm2, %v3059_v25, %v3060_v40 }
 0x3d8   : > { %v3063_v0 = vpop.permute.xlu0 %3062  ;;  %v3068_v55 = vpop.permute.xlu1 %3067  ;;  %v1652_v20 = vmax.f32 %v1556_v15, %v1645_v16  ;;  %v1654_v12 = vmax.f32 %v1558_v29, %v1649_v17  ;;  %v1653_v15 = vmax.f32 %v1557_v34, %v1643_v36 }
 0x3d9   : > { %v3065_v19 = vunpack.i.h.bf16 %v3063_v0  ;;  %v3064_v54 = vunpack.i.l.bf16 %v3063_v0  ;;  %v3070_v43 = vunpack.i.h.bf16 %v3068_v55  ;;  %v3069_v41 = vunpack.i.l.bf16 %v3068_v55 }
 0x3db   : > { %v1703_v49 = vsel %vm971_vm0, %v3069_v41, %v3070_v43  ;;  %v1675_v60 = vsel %vm938_vm2, %v3064_v54, %v3065_v19  ;;  %v1677_v26 = vsel %vm938_vm2, %v3060_v40, %v3064_v54  ;;  %v1681_v47 = vsel %vm938_vm2, %v3065_v19, %v3059_v25 }
 0x3dc   : > { %v3073_v4 = vpop.permute.xlu0 %3072  ;;  %v3078_v5 = vpop.permute.xlu1 %3077  ;;  %v1707_v30 = vmax.f32 %v1679_v45, %v1703_v49 }
 0x3dd   : > { %v3075_v52 = vunpack.i.h.bf16 %v3073_v4  ;;  %v3074_v37 = vunpack.i.l.bf16 %v3073_v4  ;;  %v3080_v11 = vunpack.i.h.bf16 %v3078_v5  ;;  %v3079_v14 = vunpack.i.l.bf16 %v3078_v5 }
 0x3de   : > { %v1715_v2 = vmax.f32 %v1651_v28, %v1707_v30 }
 0x3df   : > { %v1699_v42 = vsel %vm971_vm0, %v3074_v37, %v3075_v52  ;;  %v1701_v38 = vsel %vm971_vm0, %v3070_v43, %v3074_v37  ;;  %v1705_v63 = vsel %vm971_vm0, %v3075_v52, %v3069_v41  ;;  %v1648_v32 = vsel %vm872_vm4, %v3079_v14, %v3080_v11 }
 0x3e0   : > { %v1709_v21 = vmax.f32 %v1675_v60, %v1699_v42  ;;  %v3083_v24 = vpop.permute.xlu0 %3082  ;;  %v1708_v31 = vmax.f32 %v1677_v26, %v1701_v38  ;;  %v1710_v35 = vmax.f32 %v1681_v47, %v1705_v63  ;;  %v3088_v6 = vpop.permute.xlu1 %3087  ;;  %v1655_v59 = vmax.f32 %v1559_v61, %v1648_v32  ;;  %v4460_v42 = vld [vmem:[%s4760_s11] sm:$0xff]  ;;  %v4894_v32 = vld [vmem:[#allocation7_spill] sm:$0xff] }
 0x3e1   : > { %v3084_v44 = vunpack.i.l.bf16 %v3083_v24  ;;  %v3085_v48 = vunpack.i.h.bf16 %v3083_v24  ;;  %v3090_v3 = vunpack.i.h.bf16 %v3088_v6  ;;  %v3089_v7 = vunpack.i.l.bf16 %v3088_v6  ;;  %v1879_v6 = vld [vmem:[%s670_s22 + $0x10] sm:$0xff] }
 0x3e2   : > { %v1716_v58 = vmax.f32 %v1652_v20, %v1708_v31  ;;  %v1718_v51 = vmax.f32 %v1654_v12, %v1710_v35  ;;  %v1717_v62 = vmax.f32 %v1653_v15, %v1709_v21  ;;  %v4889_v31 = vld [vmem:[#allocation8_spill] sm:$0xff] }
 0x3e3   : > { %v1646_v13 = vsel %vm872_vm4, %v3080_v11, %v3084_v44  ;;  %v1650_v50 = vsel %vm872_vm4, %v3085_v48, %v3079_v14  ;;  %v1644_v1 = vsel %vm872_vm4, %v3084_v44, %v3085_v48  ;;  %v1680_v25 = vsel %vm938_vm2, %v3089_v7, %v3090_v3  ;;  %v1880_v11 = vld [vmem:[%s670_s22 + $0x18] sm:$0xff]  ;;  %v1878_v48 = vld [vmem:[%s670_s22 + $0x8] sm:$0xff]  ;;  %v4892_v14 = vld [vmem:[#allocation5_spill] sm:$0xff] }
 0x3e4   : > { %v3093_v9 = vpop.permute.xlu0 %3092  ;;  %1787 = vmatprep.mubr.f32.mxu0 %v1716_v58  ;;  %1862 = vmatprep.mubr.f32.mxu1 %v1718_v51  ;;  %v3098_v29 = vpop.permute.xlu1 %3097  ;;  %v1656_v54 = vmax.f32 %v1560_v56, %v1646_v13  ;;  %v1658_v39 = vmax.f32 %v1562_v27, %v1650_v50  ;;  %v1657_v45 = vmax.f32 %v1561_v46, %v1644_v1  ;;  %v1877_v58 = vld [vmem:[%s670_s22] sm:$0xff]  ;;  %s679_s22 = sld [smem:[#allocation3 + %s3285_s0]] }
 0x3e5   : > { %1788 = vmatmul.mubr.f32.vlgmr.msra.gmra.mxu0 %v1715_v2  ;;  %1863 = vmatmul.mubr.f32.vlgmr.msra.gmra.mxu1 %v1717_v62  ;;  %v3095_v57 = vunpack.i.h.bf16 %v3093_v9  ;;  %v3094_v34 = vunpack.i.l.bf16 %v3093_v9  ;;  %v3100_v33 = vunpack.i.h.bf16 %v3098_v29  ;;  %v3099_v10 = vunpack.i.l.bf16 %v3098_v29  ;;  %v4893_v29 = vld [vmem:[#allocation6_spill] sm:$0xff] }
 0x3e6   : > { %v4466_v12 = vrot.slane %v4460_v42, %v4889_v31  ;;  %v4502_v9 = vrot.slane %v4460_v42, %v4892_v14  ;;  %v4513_v1 = vrot.slane %v4460_v42, %v4894_v32 }
 0x3e7   : > { %v1704_v0 = vsel %vm971_vm0, %v3099_v10, %v3100_v33  ;;  %v1676_v43 = vsel %vm938_vm2, %v3094_v34, %v3095_v57  ;;  %v1678_v41 = vsel %vm938_vm2, %v3090_v3, %v3094_v34  ;;  %v1682_v16 = vsel %vm938_vm2, %v3095_v57, %v3089_v7 }
 0x3e8   : > { %v3103_v40 = vpop.permute.xlu0 %3102  ;;  %v1711_v56 = vmax.f32 %v1680_v25, %v1704_v0  ;;  %v4507_v57 = vrot.slane %v4460_v42, %v4893_v29 }
 0x3e9   : > { %v3105_v55 = vunpack.i.h.bf16 %v3103_v40  ;;  %v3104_v19 = vunpack.i.l.bf16 %v3103_v40 }
 0x3ea   : > { %v1719_v60 = vmax.f32 %v1655_v59, %v1711_v56  ;;  %p680_p2 = scmp.lt.s32.totalorder %s679_s22, 1 }
 0x3eb   : > { %v1700_v36 = vsel %vm971_vm0, %v3104_v19, %v3105_v55  ;;  %v1702_v49 = vsel %vm971_vm0, %v3100_v33, %v3104_v19  ;;  %v1706_v18 = vsel %vm971_vm0, %v3105_v55, %v3099_v10 }
 0x3ec   : > { %v1712_v4 = vmax.f32 %v1678_v41, %v1702_v49  ;;  %v1714_v17 = vmax.f32 %v1682_v16, %v1706_v18  ;;  %v1713_v52 = vmax.f32 %v1676_v43, %v1700_v36  ;;  %s4918_s22 = smov (!%p680_p2, %s679_s22), 1 }
 0x3ed   : > { %s2821_s0 = sshll.u32 %s4918_s22, 5 }
 0x3ee   : > { %v1720_v27 = vmax.f32 %v1656_v54, %v1712_v4  ;;  %v1722_v37 = vmax.f32 %v1658_v39, %v1714_v17  ;;  %v1721_v5 = vmax.f32 %v1657_v45, %v1713_v52  ;;  %v4895_v39 = vld [vmem:[#allocation10_spill] sm:$0xff]  ;;  %v4896_v4 = vld [vmem:[#allocation9_spill] sm:$0xff] }
 0x3ef   : > { %v4522_v36 = vrot.slane %v4460_v42, %v4895_v39  ;;  %v4529_v17 = vrot.slane %v4460_v42, %v4896_v4 }
 0x3f0   : > { %1792 = vmatprep.mubr.f32.mxu0 %v1720_v27  ;;  %1867 = vmatprep.mubr.f32.mxu1 %v1722_v37 }
 0x3f1   : > { %1793 = vmatmul.mubr.f32.gmra.mxu0 %v1719_v60  ;;  %1868 = vmatmul.mubr.f32.gmra.mxu1 %v1721_v5  ;;  %v4897_v5 = vld [vmem:[#allocation15_spill] sm:$0xff] }
 0x3f2   : > { %v4539_v60 = vrot.slane %v4460_v42, %v4897_v5 }
 0x4a5   : > { %v2855_v8 = vpop.f32.mrf.mxu0  ;;  %v2893_v26 = vpop.f32.mrf.mxu1 }
 0x4a7   : > { %v2856_v47 = vpop.f32.mrf.mxu0  ;;  %v2894_v20 = vpop.f32.mrf.mxu1 }
 0x4a8   : > { %v2857_v30 = vadd.f32 %v2856_v47, %v2855_v8  ;;  %v2895_v23 = vadd.f32 %v2894_v20, %v2893_v26 }
 0x4aa   : > { %v1865_v46 = vadd.f32 %v2895_v23, %v2857_v30  ;;  %v4898_v23 = vld [vmem:[#allocation14_spill] sm:$0xff] }
 0x4ac   : > { %1947 = vrot.lane.b32.xlu1 %v1865_v46, %s4824_s16  ;;  %v4471_v28 = vmul.f32 %v4466_v12, %v1865_v46 }
 0x4b0   : > { %1937 = vrot.lane.b32.xlu1 %v1865_v46, %s4820_s20 }
 0x4b1   : > { %v2858_v53 = vpop.f32.mrf.mxu0  ;;  %v2896_v61 = vpop.f32.mrf.mxu1 }
 0x4b3   : > { %v2859_v38 = vpop.f32.mrf.mxu0  ;;  %v2897_v63 = vpop.f32.mrf.mxu1 }
 0x4b4   : > { %v2860_v21 = vadd.f32 %v2859_v38, %v2858_v53  ;;  %v2898_v24 = vadd.f32 %v2897_v63, %v2896_v61  ;;  %1927 = vrot.lane.b32.xlu1 %v1865_v46, %s4822_s17 }
 0x4b6   : > { %v1870_v35 = vadd.f32 %v2898_v24, %v2860_v21  ;;  %v4554_v21 = vld [vmem:[%s4760_s11 + $0x8] ss:$0 sm:$0xff] }
 0x4b8   : > { %1949 = vrot.lane.b32.xlu0 %v1870_v35, %s4824_s16  ;;  %1911 = vrot.lane.b32.xlu1 %v1865_v46, %s4890_s30  ;;  %v4474_v15 = vmul.f32 %v4466_v12, %v1870_v35 }
 0x4ba   : > { %v1971_v44 = vpack.c.bf16 %v4474_v15, %v4471_v28 }
 0x4bc   : > { %1939 = vrot.lane.b32.xlu0 %v1870_v35, %s4820_s20  ;;  %1901 = vrot.lane.b32.xlu1 %v1865_v46, %s3192_s26  ;;  %s3195_s20 = smov 119  }
 0x4c0   : > { %1929 = vrot.lane.b32.xlu0 %v1870_v35, %s4822_s17  ;;  %1891 = vrot.lane.b32.xlu1 %v1865_v46, %s3193_s29 }
 0x4c4   : > { %1913 = vrot.lane.b32.xlu0 %v1870_v35, %s4890_s30  ;;  %1881 = vrot.lane.b32.xlu1 %v1865_v46, %s4826_s18  ;;  %s4494_s18 = scalar_lea.vmem %s4755_s6, %s2819_s21  ;;  %s4902_s21 = sshll.u32 %s3291_s24, 5 }
 0x4c5   : > { %v3142_v51 = vld [vmem:[%s4494_s18 + $0x4] ss:$8 sps:$4 sm:$0xff]   ;;  %v3140_v15 = vld [vmem:[%s4494_s18] ss:$8 sps:$4 sm:$0xff]  }
 0x4c6   : > { %2798 = vmatprep.mubr.msk.bf16.mxu0 %vm1465_vm10, %v3142_v51 }
 0x4c8   : > { %1903 = vrot.lane.b32.xlu0 %v1870_v35, %s3192_s26  ;;  %1957 = vrot.lane.b32.xlu1 %v1865_v46, %s3195_s20  ;;  %v4546_v46 = vrot.slane %v4460_v42, %v4898_v23 }
 0x4cc   : > { %1893 = vrot.lane.b32.xlu0 %v1870_v35, %s3193_s29  ;;  %1988 = vperm.xlu1 %3045, %v1879_v6   ;;  %v3145_v6 = vld [vmem:[%s4494_s18 + $0x10] ss:$8 sps:$4 sm:$0xff]  }
 0x4d0   : > { %1883 = vrot.lane.b32.xlu0 %v1870_v35, %s4891_s25  ;;  %1978 = vperm.xlu1 %3045, %v1877_v58  }
 0x4d4   : > { %1959 = vrot.lane.b32.xlu0 %v1870_v35, %s3195_s20 }
 0x4d8   : > { %1993 = vperm.xlu0 %3044, %v1880_v11  }
 0x4dc   : > { %1983 = vperm.xlu0 %3044, %v1878_v48  }
 0x51e   : > { %v1948_v2 = vpop.permute.xlu1 %1947 }
 0x51f   : > { %v1955_v7 = vmul.f32 %v4502_v9, %v1948_v2 }
 0x522   : > { %v1938_v62 = vpop.permute.xlu1 %1937 }
 0x523   : > { %v1945_v50 = vmul.f32 %v4507_v57, %v1938_v62 }
 0x526   : > { %v1928_v13 = vpop.permute.xlu1 %1927 }
 0x527   : > { %v1935_v19 = vmul.f32 %v4513_v1, %v1928_v13 }
 0x52a   : > { %v1950_v3 = vpop.permute.xlu0 %1949  ;;  %v1912_v40 = vpop.permute.xlu1 %1911 }
 0x52b   : > { %v1956_v34 = vmul.f32 %v4502_v9, %v1950_v3  ;;  %v1919_v56 = vmul.f32 %v4522_v36, %v1912_v40 }
 0x52d   : > { %v1974_v33 = vpack.c.bf16 %v1956_v34, %v1955_v7 }
 0x52e   : > { %v1940_v10 = vpop.permute.xlu0 %1939  ;;  %v1902_v41 = vpop.permute.xlu1 %1901 }
 0x52f   : > { %v1946_v0 = vmul.f32 %v4507_v57, %v1940_v10  ;;  %2021 = vmatpush1.bf16.msra.mxu0 %v1974_v33  ;;  %v1909_v37 = vmul.f32 %v4529_v17, %v1902_v41 }
 0x530   : > { %2022 = vmatprep.subr.bf16.mxu0 %v4888_v22 }
 0x531   : > { %v1973_v25 = vpack.c.bf16 %v1946_v0, %v1945_v50 }
 0x532   : > { %v1930_v55 = vpop.permute.xlu0 %1929  ;;  %v1892_v45 = vpop.permute.xlu1 %1891 }
 0x533   : > { %v1936_v54 = vmul.f32 %v4513_v1, %v1930_v55  ;;  %2023 = vmatpush1.bf16.msra.mxu0 %v1973_v25  ;;  %v1899_v30 = vmul.f32 %v4539_v60, %v1892_v45 }
 0x534   : > { %2024 = vmatprep.subr.bf16.mxu0 %v4888_v22 }
 0x535   : > { %v1972_v43 = vpack.c.bf16 %v1936_v54, %v1935_v19 }
 0x536   : > { %v1914_v16 = vpop.permute.xlu0 %1913  ;;  %v1882_v47 = vpop.permute.xlu1 %1881 }
 0x537   : > { %2025 = vmatpush1.bf16.msra.mxu0 %v1972_v43  ;;  %v1920_v49 = vmul.f32 %v4522_v36, %v1914_v16  ;;  %v1889_v63 = vmul.f32 %v4546_v46, %v1882_v47 }
 0x538   : > { %2026 = vmatprep.subr.bf16.mxu0 %v4888_v22 }
 0x539   : > { %v1970_v52 = vpack.c.bf16 %v1920_v49, %v1919_v56 }
 0x53a   : > { %v1904_v18 = vpop.permute.xlu0 %1903  ;;  %v1958_v42 = vpop.permute.xlu1 %1957 }
 0x53b   : > { %2027 = vmatpush1.bf16.msra.mxu0 %v1971_v44  ;;  %v1910_v59 = vmul.f32 %v4529_v17, %v1904_v18  ;;  %v1965_v35 = vmul.f32 %v4554_v21, %v1958_v42  ;;  %v3143_v44 = vld [vmem:[%s4494_s18 + $0x14] ss:$8 sps:$4 sm:$0xff]   ;;  %s4900_s18 = smov 121  }
 0x53c   : > { %2028 = vmatprep.subr.bf16.mxu0 %v4888_v22 }
 0x53d   : > { %v1969_v8 = vpack.c.bf16 %v1910_v59, %v1909_v37 }
 0x53e   : > { %v1894_v27 = vpop.permute.xlu0 %1893 }
 0x53f   : > { %2029 = vmatpush1.bf16.msra.mxu0 %v1970_v52  ;;  %v1900_v26 = vmul.f32 %v4539_v60, %v1894_v27 }
 0x540   : > { %2030 = vmatprep.subr.bf16.mxu0 %v4888_v22 }
 0x541   : > { %v1968_v53 = vpack.c.bf16 %v1900_v26, %v1899_v30 }
 0x542   : > { %v1884_v20 = vpop.permute.xlu0 %1883 }
 0x543   : > { %2031 = vmatpush1.bf16.msra.mxu0 %v1969_v8  ;;  %v1890_v61 = vmul.f32 %v4546_v46, %v1884_v20 }
 0x544   : > { %2032 = vmatprep.subr.bf16.mxu0 %v4888_v22 }
 0x545   : > { %v1967_v24 = vpack.c.bf16 %v1890_v61, %v1889_v63 }
 0x546   : > { %v1960_v38 = vpop.permute.xlu0 %1959 }
 0x547   : > { %2033 = vmatpush1.bf16.msra.mxu0 %v1968_v53  ;;  %v1966_v31 = vmul.f32 %v4554_v21, %v1960_v38  ;;  %v1989_v58 = vpop.permute.xlu1 %1988 }
 0x548   : > { %2034 = vmatprep.subr.bf16.mxu0 %v4888_v22 }
 0x549   : > { %v1975_v28 = vpack.c.bf16 %v1966_v31, %v1965_v35 }
 0x54b   : > { %2035 = vmatpush1.bf16.msra.mxu0 %v1967_v24  ;;  %v1979_v11 = vpop.permute.xlu1 %1978 }
 0x54c   : > { %2050 = vmatprep.subr.bf16.mxu0 %v4888_v22 }
 0x54f   : > { %2051 = vmatpush2.bf16.msra.mxu0 %v1975_v28 }
 0x552   : > { %2053 = vmatmul.mubr.bf16.vlgmr.msra.gmra.mxu0 %v3140_v15 }
 0x553   : > { %2799 = vmatprep.mubr.msk.bf16.mxu0 %vm1465_vm10, %v3143_v44  ;;  %v1994_v51 = vpop.permute.xlu0 %1993 }
 0x557   : > { %v1984_v13 = vpop.permute.xlu0 %1983 }
 0x55a   : > { %2061 = vmatmul.mubr.bf16.gmra.mxu0 %v3145_v6 }
 0x612   : > { %v2054_v48 = vpop.f32.mrf.mxu0 }
 0x613   : > { %v2055_v2 = vadd.f32 %v2054_v48, %v1979_v11 }
 0x614   : > { %v2056_v62 = vpop.f32.mrf.mxu0 }
 0x615   : > { %v2069_v14 = vmax.f32 %v2055_v2, 0.0 }
 0x616   : > { %v2057_v3 = vpop.f32.mrf.mxu0 }
 0x617   : > { %v2058_v7 = vadd.f32 %v2057_v3, %v1984_v13  ;;  %2161 = vrot.lane.b32.xlu1 %v2069_v14, %s4899_s28  ;;  %v4568_v10 = vmul.f32 %v2069_v14, %v4466_v12 }
 0x618   : > { %v2059_v22 = vpop.f32.mrf.mxu0 }
 0x619   : > { %v2070_v29 = vmax.f32 %v2058_v7, 0.0 }
 0x61a   : > { %v2062_v34 = vpop.f32.mrf.mxu0 }
 0x61b   : > { %v2063_v33 = vadd.f32 %v2062_v34, %v1989_v58  ;;  %2163 = vrot.lane.b32.xlu0 %v2070_v29, %s4899_s28  ;;  %2121 = vrot.lane.b32.xlu1 %v2069_v14, %s4890_s30  ;;  %v4571_v50 = vmul.f32 %v2070_v29, %v4466_v12 }
 0x61c   : > { %v2064_v32 = vpop.f32.mrf.mxu0 }
 0x61d   : > { %v2193_v0 = vpack.c.bf16 %v4571_v50, %v4568_v10  ;;  %v2071_v25 = vmax.f32 %v2063_v33, 0.0 }
 0x61e   : > { %v2065_v40 = vpop.f32.mrf.mxu0 }
 0x61f   : > { %v2066_v55 = vadd.f32 %v2065_v40, %v1994_v51  ;;  %2123 = vrot.lane.b32.xlu0 %v2070_v29, %s4890_s30  ;;  %2149 = vrot.lane.b32.xlu1 %v2069_v14, %s4900_s18  ;;  %v4580_v43 = vmul.f32 %v2071_v25, %v4466_v12 }
 0x620   : > { %v2067_v19 = vpop.f32.mrf.mxu0 }
 0x621   : > { %v2072_v54 = vmax.f32 %v2066_v55, 0.0 }
 0x623   : > { %2151 = vrot.lane.b32.xlu0 %v2070_v29, %s4900_s18  ;;  %2109 = vrot.lane.b32.xlu1 %v2069_v14, %s3192_s26  ;;  %v4583_v41 = vmul.f32 %v2072_v54, %v4466_v12 }
 0x625   : > { %v2194_v16 = vpack.c.bf16 %v4583_v41, %v4580_v43 }
 0x627   : > { %2111 = vrot.lane.b32.xlu0 %v2070_v29, %s3192_s26  ;;  %2137 = vrot.lane.b32.xlu1 %v2069_v14, %s4901_s27 }
 0x62b   : > { %2139 = vrot.lane.b32.xlu0 %v2070_v29, %s4901_s27  ;;  %2165 = vrot.lane.b32.xlu1 %v2071_v25, %s4899_s28 }
 0x62f   : > { %2167 = vrot.lane.b32.xlu0 %v2072_v54, %s4899_s28  ;;  %2125 = vrot.lane.b32.xlu1 %v2071_v25, %s4890_s30 }
 0x633   : > { %2127 = vrot.lane.b32.xlu0 %v2072_v54, %s4890_s30  ;;  %2153 = vrot.lane.b32.xlu1 %v2071_v25, %s4900_s18  ;;  %s3019_s30 = smul.u32 48, %s4916_s19  ;;  %s684_s19 = scalar_lea.vmem %s4758_s9, %s2821_s0 }
 0x634   : > { %v2081_v39 = vld [vmem:[%s684_s19] sm:$0xff]  ;;  %v2082_v49 = vld [vmem:[%s684_s19 + $0x8] sm:$0xff]  ;;  %v2083_v18 = vld [vmem:[%s684_s19 + $0x10] sm:$0xff] }
 0x635   : > { %s4608_s16 = scalar_lea.vmem %s4757_s8, %s3019_s30  ;;  %v2084_v56 = vld [vmem:[%s684_s19 + $0x18] sm:$0xff] }
 0x636   : > { %v3148_v12 = vld [vmem:[%s4608_s16 + $0x4] ss:$12 sps:$4 sm:$0xff]   ;;  %v3149_v41 = vld [vmem:[%s4608_s16 + $0x1c] ss:$12 sps:$4 sm:$0xff]  }
 0x637   : > { %2155 = vrot.lane.b32.xlu0 %v2072_v54, %s4900_s18  ;;  %2113 = vrot.lane.b32.xlu1 %v2071_v25, %s3192_s26 }
 0x638   : > { %2292 = vmatprep.mubr.bf16.mxu1 %v3148_v12 }
 0x63b   : > { %2115 = vrot.lane.b32.xlu0 %v2072_v54, %s3192_s26  ;;  %2141 = vrot.lane.b32.xlu1 %v2071_v25, %s4901_s27 }
 0x63f   : > { %2143 = vrot.lane.b32.xlu0 %v2072_v54, %s4901_s27  ;;  %2101 = vrot.lane.b32.xlu1 %v2071_v25, %s3193_s29 }
 0x643   : > { %2103 = vrot.lane.b32.xlu0 %v2072_v54, %s3193_s29  ;;  %2097 = vrot.lane.b32.xlu1 %v2069_v14, %s3193_s29 }
 0x647   : > { %2099 = vrot.lane.b32.xlu0 %v2070_v29, %s3193_s29  ;;  %2089 = vrot.lane.b32.xlu1 %v2071_v25, %s4891_s25 }
 0x64b   : > { %2091 = vrot.lane.b32.xlu0 %v2072_v54, %s4891_s25  ;;  %2085 = vrot.lane.b32.xlu1 %v2069_v14, %s4891_s25 }
 0x64f   : > { %2087 = vrot.lane.b32.xlu0 %v2070_v29, %s4891_s25  ;;  %2177 = vrot.lane.b32.xlu1 %v2071_v25, %s3195_s20 }
 0x653   : > { %2179 = vrot.lane.b32.xlu0 %v2072_v54, %s3195_s20  ;;  %2173 = vrot.lane.b32.xlu1 %v2069_v14, %s3195_s20 }
 0x657   : > { %2175 = vrot.lane.b32.xlu0 %v2070_v29, %s3195_s20  ;;  %2205 = vperm.xlu1 %3045, %v2081_v39  }
 0x65b   : > { %2210 = vperm.xlu0 %3044, %v2082_v49   ;;  %2215 = vperm.xlu1 %3045, %v2083_v18  }
 0x65f   : > { %2220 = vperm.xlu0 %3044, %v2084_v56  }
 0x689   : > { %v2162_v4 = vpop.permute.xlu1 %2161 }
 0x68a   : > { %v2169_v28 = vmul.f32 %v2162_v4, %v4502_v9 }
 0x68d   : > { %v2164_v45 = vpop.permute.xlu0 %2163  ;;  %v2122_v52 = vpop.permute.xlu1 %2121 }
 0x68e   : > { %v2170_v63 = vmul.f32 %v2164_v45, %v4502_v9  ;;  %v2129_v11 = vmul.f32 %v2122_v52, %v4522_v36 }
 0x690   : > { %v2199_v6 = vpack.c.bf16 %v2170_v63, %v2169_v28  ;;  %v3146_v63 = vld [vmem:[%s4608_s16] ss:$12 sps:$4 sm:$0xff]  }
 0x691   : > { %v2124_v59 = vpop.permute.xlu0 %2123  ;;  %v2150_v27 = vpop.permute.xlu1 %2149  ;;  %v3153_v28 = vld [vmem:[%s4608_s16 + $0x20] ss:$12 sps:$4 sm:$0xff]  }
 0x692   : > { %v2130_v15 = vmul.f32 %v2124_v59, %v4522_v36  ;;  %v2157_v29 = vmul.f32 %v2150_v27, %v4507_v57 }
 0x694   : > { %v2191_v62 = vpack.c.bf16 %v2130_v15, %v2129_v11  ;;  %v2377_v15 = vld [vmem:[%s4762_s13 + $0x78] sm:$0xff]  ;;  %v2371_v11 = vld [vmem:[%s4762_s13 + $0x48] sm:$0xff] }
 0x695   : > { %v2152_v37 = vpop.permute.xlu0 %2151  ;;  %v2110_v5 = vpop.permute.xlu1 %2109  ;;  %2967 = vmatprep.subr.mxu0 %v2377_v15 }
 0x696   : > { %v2158_v13 = vmul.f32 %v2152_v37, %v4507_v57  ;;  %v2117_v25 = vmul.f32 %v2110_v5, %v4529_v17  ;;  %2968 = vmatpush3.msra.mxu0 %v2377_v15 }
 0x698   : > { %v2197_v33 = vpack.c.bf16 %v2158_v13, %v2157_v29 }
 0x699   : > { %v2112_v8 = vpop.permute.xlu0 %2111  ;;  %v2138_v26 = vpop.permute.xlu1 %2137 }
 0x69a   : > { %v2145_v4 = vmul.f32 %v2138_v26, %v4513_v1 }
 0x69d   : > { %v2140_v47 = vpop.permute.xlu0 %2139  ;;  %v2166_v20 = vpop.permute.xlu1 %2165 }
 0x69e   : > { %v2171_v53 = vmul.f32 %v2166_v20, %v4502_v9  ;;  %v2146_v39 = vmul.f32 %v2140_v47, %v4513_v1 }
 0x6a0   : > { %v2195_v45 = vpack.c.bf16 %v2146_v39, %v2145_v4 }
 0x6a1   : > { %v2168_v30 = vpop.permute.xlu0 %2167  ;;  %v2126_v23 = vpop.permute.xlu1 %2125 }
 0x6a2   : > { %v2172_v61 = vmul.f32 %v2168_v30, %v4502_v9  ;;  %v2131_v31 = vmul.f32 %v2126_v23, %v4522_v36 }
 0x6a4   : > { %v2200_v38 = vpack.c.bf16 %v2172_v61, %v2171_v53 }
 0x6a5   : > { %v2128_v42 = vpop.permute.xlu0 %2127  ;;  %v2154_v24 = vpop.permute.xlu1 %2153 }
 0x6a6   : > { %v2132_v35 = vmul.f32 %v2128_v42, %v4522_v36  ;;  %2899 = vmatprep.subr.bf16.mxu1 %v2200_v38  ;;  %v2159_v48 = vmul.f32 %v2154_v24, %v4507_v57  ;;  %v2118_v36 = vmul.f32 %v2112_v8, %v4529_v17 }
 0x6a8   : > { %v2192_v44 = vpack.c.bf16 %v2132_v35, %v2131_v31  ;;  %v2189_v54 = vpack.c.bf16 %v2118_v36, %v2117_v25  ;;  %v3152_v35 = vld [vmem:[%s4608_s16 + $0x8] ss:$12 sps:$4 sm:$0xff]  }
 0x6a9   : > { %v2156_v58 = vpop.permute.xlu0 %2155  ;;  %v2114_v51 = vpop.permute.xlu1 %2113 }
 0x6aa   : > { %v2160_v2 = vmul.f32 %v2156_v58, %v4507_v57  ;;  %2900 = vmatpush3.bf16.msra.mxu1 %v2192_v44  ;;  %v2119_v7 = vmul.f32 %v2114_v51, %v4529_v17  ;;  %v2375_v44 = vld [vmem:[%s4762_s13 + $0x68] sm:$0xff]  ;;  %v2373_v58 = vld [vmem:[%s4762_s13 + $0x58] sm:$0xff]  ;;  %v2372_v51 = vld [vmem:[%s4762_s13 + $0x50] sm:$0xff] }
 0x6ab   : > { %2901 = vmatprep.subr.bf16.mxu1 %v2199_v6  ;;  %v2374_v6 = vld [vmem:[%s4762_s13 + $0x60] sm:$0xff] }
 0x6ac   : > { %v2198_v14 = vpack.c.bf16 %v2160_v2, %v2159_v48  ;;  %v2370_v48 = vld [vmem:[%s4762_s13 + $0x40] sm:$0xff]  ;;  %v2369_v2 = vld [vmem:[%s4762_s13 + $0x38] sm:$0xff] }
 0x6ad   : > { %v2116_v3 = vpop.permute.xlu0 %2115  ;;  %v2142_v9 = vpop.permute.xlu1 %2141 }
 0x6ae   : > { %v2120_v22 = vmul.f32 %v2116_v3, %v4529_v17  ;;  %2902 = vmatpush3.bf16.msra.mxu1 %v2191_v62  ;;  %v2147_v55 = vmul.f32 %v2142_v9, %v4513_v1  ;;  %v2368_v62 = vld [vmem:[%s4762_s13 + $0x30] sm:$0xff] }
 0x6af   : > { %2903 = vmatprep.subr.bf16.mxu1 %v2198_v14 }
 0x6b0   : > { %v2190_v34 = vpack.c.bf16 %v2120_v22, %v2119_v7 }
 0x6b1   : > { %v2144_v32 = vpop.permute.xlu0 %2143  ;;  %v2102_v40 = vpop.permute.xlu1 %2101 }
 0x6b2   : > { %v2148_v19 = vmul.f32 %v2144_v32, %v4513_v1  ;;  %2904 = vmatpush3.bf16.msra.mxu1 %v2190_v34  ;;  %v2107_v18 = vmul.f32 %v2102_v40, %v4539_v60 }
 0x6b3   : > { %2905 = vmatprep.subr.bf16.mxu1 %v2197_v33 }
 0x6b4   : > { %v2196_v12 = vpack.c.bf16 %v2148_v19, %v2147_v55  ;;  %v2367_v55 = vld [vmem:[%s4762_s13 + $0x28] sm:$0xff] }
 0x6b5   : > { %v2104_v57 = vpop.permute.xlu0 %2103  ;;  %v2098_v49 = vpop.permute.xlu1 %2097 }
 0x6b6   : > { %v2108_v56 = vmul.f32 %v2104_v57, %v4539_v60  ;;  %2906 = vmatpush3.bf16.msra.mxu1 %v2189_v54  ;;  %v2105_v27 = vmul.f32 %v2098_v49, %v4539_v60  ;;  %v2366_v57 = vld [vmem:[%s4762_s13 + $0x20] sm:$0xff] }
 0x6b7   : > { %2907 = vmatprep.subr.bf16.mxu1 %v2196_v12 }
 0x6b8   : > { %v2188_v17 = vpack.c.bf16 %v2108_v56, %v2107_v18  ;;  %v2365_v56 = vld [vmem:[%s4762_s13 + $0x18] sm:$0xff] }
 0x6b9   : > { %v2100_v52 = vpop.permute.xlu0 %2099  ;;  %v2090_v59 = vpop.permute.xlu1 %2089 }
 0x6ba   : > { %v2106_v37 = vmul.f32 %v2100_v52, %v4539_v60  ;;  %2908 = vmatpush3.bf16.msra.mxu1 %v2188_v17  ;;  %v2095_v20 = vmul.f32 %v2090_v59, %v4546_v46 }
 0x6bb   : > { %2909 = vmatprep.subr.bf16.mxu1 %v2195_v45 }
 0x6bc   : > { %v2187_v5 = vpack.c.bf16 %v2106_v37, %v2105_v27 }
 0x6bd   : > { %v2092_v8 = vpop.permute.xlu0 %2091  ;;  %v2086_v47 = vpop.permute.xlu1 %2085 }
 0x6be   : > { %v2096_v30 = vmul.f32 %v2092_v8, %v4546_v46  ;;  %2910 = vmatpush3.bf16.msra.mxu1 %v2187_v5  ;;  %v2093_v60 = vmul.f32 %v2086_v47, %v4546_v46  ;;  %v2364_v5 = vld [vmem:[%s4762_s13 + $0x10] sm:$0xff] }
 0x6bf   : > { %2911 = vmatprep.subr.bf16.mxu1 %v2194_v16 }
 0x6c0   : > { %v2186_v1 = vpack.c.bf16 %v2096_v30, %v2095_v20 }
 0x6c1   : > { %v2088_v26 = vpop.permute.xlu0 %2087  ;;  %v2178_v23 = vpop.permute.xlu1 %2177 }
 0x6c2   : > { %v2094_v53 = vmul.f32 %v2088_v26, %v4546_v46  ;;  %2912 = vmatpush3.bf16.msra.mxu1 %v2186_v1  ;;  %v2183_v42 = vmul.f32 %v4554_v21, %v2178_v23  ;;  %v2363_v1 = vld [vmem:[%s4762_s13 + $0x8] sm:$0xff] }
 0x6c3   : > { %2913 = vmatprep.subr.bf16.mxu1 %v2193_v0  ;;  %v3151_v0 = vld [vmem:[%s4608_s16 + $0x18] ss:$12 sps:$4 sm:$0xff]   ;;  %s690_s16 = scalar_lea.vmem %s4764_s15, %s4902_s21 }
 0x6c4   : > { %v2185_v61 = vpack.c.bf16 %v2094_v53, %v2093_v60  ;;  %v2362_v53 = vld [vmem:[%s4762_s13] sm:$0xff] }
 0x6c5   : > { %v2180_v38 = vpop.permute.xlu0 %2179  ;;  %v2174_v16 = vpop.permute.xlu1 %2173 }
 0x6c6   : > { %v2184_v43 = vmul.f32 %v4554_v21, %v2180_v38  ;;  %2914 = vmatpush3.bf16.msra.mxu1 %v2185_v61  ;;  %v2181_v31 = vmul.f32 %v4554_v21, %v2174_v16  ;;  %v2502_v38 = vld [vmem:[%s4763_s14 + $0x18] sm:$0xff] }
 0x6c8   : > { %v2202_v24 = vpack.c.bf16 %v2184_v43, %v2183_v42 }
 0x6c9   : > { %v2176_v46 = vpop.permute.xlu0 %2175  ;;  %2293 = vmatmul.mubr.bf16.vlgmr.msra.gmra.mxu1 %v3146_v63  ;;  %v2501_v63 = vld [vmem:[%s4763_s14 + $0x10] sm:$0xff] }
 0x6ca   : > { %v2182_v10 = vmul.f32 %v4554_v21, %v2176_v46  ;;  %2959 = vmatprep.subr.bf16.mxu1 %v2202_v24  ;;  %2300 = vmatprep.mubr.bf16.mxu1 %v3149_v41  ;;  %v2376_v21 = vld [vmem:[%s4762_s13 + $0x70] sm:$0xff] }
 0x6cb   : > { %2960 = vmatpush3.bf16.msra.mxu1 %v2202_v24  ;;  %2969 = vmatprep.subr.mxu0 %v2376_v21 }
 0x6cc   : > { %v2201_v50 = vpack.c.bf16 %v2182_v10, %v2181_v31  ;;  %2970 = vmatpush3.msra.mxu0 %v2376_v21 }
 0x6cd   : > { %2971 = vmatprep.subr.mxu0 %v2375_v44 }
 0x6ce   : > { %2961 = vmatprep.subr.bf16.mxu1 %v2201_v50  ;;  %2972 = vmatpush3.msra.mxu0 %v2375_v44 }
 0x6cf   : > { %2962 = vmatpush3.bf16.msra.mxu1 %v2201_v50  ;;  %2973 = vmatprep.subr.mxu0 %v2374_v6 }
 0x6d0   : > { %2974 = vmatpush3.msra.mxu0 %v2374_v6  ;;  %3005 = vmatprep.subr.mxu1 %v2502_v38 }
 0x6d1   : > { %2301 = vmatmul.mubr.bf16.gmra.mxu1 %v3151_v0  ;;  %2975 = vmatprep.subr.mxu0 %v2373_v58 }
 0x6d2   : > { %2963 = vmatprep.mubr.msk.bf16.mxu1 %vm2253_vm11, %v3152_v35  ;;  %2976 = vmatpush3.msra.mxu0 %v2373_v58  ;;  %v2206_v22 = vpop.permute.xlu1 %2205 }
 0x6d3   : > { %2977 = vmatprep.subr.mxu0 %v2372_v51 }
 0x6d4   : > { %2978 = vmatpush3.msra.mxu0 %v2372_v51 }
 0x6d5   : > { %2979 = vmatprep.subr.mxu0 %v2371_v11 }
 0x6d6   : > { %2980 = vmatpush3.msra.mxu0 %v2371_v11  ;;  %v2211_v36 = vpop.permute.xlu0 %2210  ;;  %v2216_v19 = vpop.permute.xlu1 %2215 }
 0x6d7   : > { %2981 = vmatprep.subr.mxu0 %v2370_v48 }
 0x6d8   : > { %2982 = vmatpush3.msra.mxu0 %v2370_v48 }
 0x6d9   : > { %2964 = vmatmul.mubr.msk.bf16.vlgmr.msra.gmra.mxu1 %vm2253_vm11, %v3153_v28  ;;  %2983 = vmatprep.subr.mxu0 %v2369_v2 }
 0x6da   : > { %2984 = vmatpush3.msra.mxu0 %v2369_v2  ;;  %v2221_v49 = vpop.permute.xlu0 %2220  ;;  %3006 = vmatpush3.msra.mxu1 %v2502_v38 }
 0x6db   : > { %2985 = vmatprep.subr.mxu0 %v2368_v62  ;;  %3007 = vmatprep.subr.mxu1 %v2501_v63 }
 0x6dc   : > { %2986 = vmatpush3.msra.mxu0 %v2368_v62  ;;  %3008 = vmatpush3.msra.mxu1 %v2501_v63 }
 0x6dd   : > { %2987 = vmatprep.subr.mxu0 %v2367_v55 }
 0x6de   : > { %2988 = vmatpush3.msra.mxu0 %v2367_v55 }
 0x6df   : > { %2989 = vmatprep.subr.mxu0 %v2366_v57 }
 0x6e0   : > { %2990 = vmatpush3.msra.mxu0 %v2366_v57 }
 0x6e1   : > { %2991 = vmatprep.subr.mxu0 %v2365_v56 }
 0x6e2   : > { %2992 = vmatpush3.msra.mxu0 %v2365_v56 }
 0x6e3   : > { %2993 = vmatprep.subr.mxu0 %v2364_v5 }
 0x6e4   : > { %2994 = vmatpush3.msra.mxu0 %v2364_v5 }
 0x6e5   : > { %2995 = vmatprep.subr.mxu0 %v2363_v1 }
 0x6e6   : > { %2996 = vmatpush3.msra.mxu0 %v2363_v1 }
 0x6e7   : > { %2997 = vmatprep.subr.mxu0 %v2362_v53 }
 0x6e8   : > { %2998 = vmatpush3.msra.mxu0 %v2362_v53 }
 0x789   : > { %v2915_v14 = vpop.f32.mrf.mxu1 }
 0x78b   : > { %v2916_v13 = vpop.f32.mrf.mxu1 }
 0x78c   : > { %v2917_v40 = vadd.f32 %v2916_v13, %v2915_v14 }
 0x78d   : > { %v2918_v3 = vpop.f32.mrf.mxu1 }
 0x78e   : > { %v2295_v17 = vadd.f32 %v2917_v40, %v2206_v22 }
 0x78f   : > { %v2919_v9 = vpop.f32.mrf.mxu1 }
 0x790   : > { %v2920_v12 = vadd.f32 %v2919_v9, %v2918_v3 }
 0x791   : > { %v2921_v7 = vpop.f32.mrf.mxu1 }
 0x792   : > { %v2298_v37 = vadd.f32 %v2920_v12, %v2211_v36 }
 0x793   : > { %v2922_v29 = vpop.f32.mrf.mxu1 }
 0x794   : > { %v2923_v33 = vadd.f32 %v2922_v29, %v2921_v7 }
 0x795   : > { %v2924_v34 = vpop.f32.mrf.mxu1 }
 0x796   : > { %v2303_v39 = vadd.f32 %v2923_v33, %v2216_v19  ;;  %v2499_v33 = vld [vmem:[%s4763_s14] sm:$0xff] }
 0x797   : > { %v2925_v32 = vpop.f32.mrf.mxu1 }
 0x798   : > { %v2926_v25 = vadd.f32 %v2925_v32, %v2924_v34  ;;  %v2500_v34 = vld [vmem:[%s4763_s14 + $0x8] sm:$0xff] }
 0x799   : > { %v2965_v54 = vpop.f32.mrf.mxu1  ;;  %3009 = vmatprep.subr.mxu1 %v2500_v34 }
 0x79a   : > { %v4707_v4 = vadd.f32 %v2965_v54, %v2303_v39  ;;  %v2306_v45 = vadd.f32 %v2926_v25, %v2221_v49  ;;  %3010 = vmatpush3.msra.mxu1 %v2500_v34 }
 0x79b   : > { %v2343_v18 = vpop.f32.mrf.mxu1  ;;  %3011 = vmatprep.subr.mxu1 %v2499_v33 }
 0x79c   : > { %v2344_v59 = vadd.f32 %v2343_v18, %v2295_v17  ;;  %v2360_v47 = vmax.f32 %v4707_v4, 0.0  ;;  %3012 = vmatpush3.msra.mxu1 %v2499_v33 }
 0x79d   : > { %v2966_v52 = vpop.f32.mrf.mxu1 }
 0x79e   : > { %v2355_v27 = vadd.f32 %v2966_v52, %v2306_v45  ;;  %v2358_v26 = vmax.f32 %v2344_v59, 0.0 }
 0x79f   : > { %v2346_v8 = vpop.f32.mrf.mxu1 }
 0x7a0   : > { %v2361_v20 = vmax.f32 %v2355_v27, 0.0  ;;  %v2347_v30 = vadd.f32 %v2346_v8, %v2298_v37 }
 0x7a2   : > { %v2359_v23 = vmax.f32 %v2347_v30, 0.0  ;;  %v3106_v60 = vpack.i.bf16 %v2361_v20, %v2360_v47 }
 0x7a4   : > { %3107 = vrot.lane.b32.xlu0 %v3106_v60, %s4901_s27  ;;  %v3111_v61 = vpack.i.bf16 %v2359_v23, %v2358_v26 }
 0x7a6   : > { %3112 = vrot.lane.b32.xlu1 %v3111_v61, %s4901_s27 }
 0x7a8   : > { %3117 = vrot.lane.b32.xlu0 %v3111_v61, %s4899_s28 }
 0x7aa   : > { %3122 = vrot.lane.b32.xlu1 %v3111_v61, %s3195_s20 }
 0x7ac   : > { %3132 = vrot.lane.b32.xlu0 %v3106_v60, %s3195_s20 }
 0x7ae   : > { %3127 = vrot.lane.b32.xlu1 %v3106_v60, %s4899_s28 }
 0x816   : > { %v3108_v42 = vpop.permute.xlu0 %3107 }
 0x817   : > { %v3110_v35 = vunpack.i.h.bf16 %v3108_v42  ;;  %v3109_v28 = vunpack.i.l.bf16 %v3108_v42 }
 0x818   : > { %v3113_v43 = vpop.permute.xlu1 %3112 }
 0x819   : > { %v3115_v16 = vunpack.i.h.bf16 %v3113_v43  ;;  %v3114_v24 = vunpack.i.l.bf16 %v3113_v43  ;;  %v2389_v3 = vmax.f32 %v2361_v20, %v3110_v35  ;;  %v2388_v9 = vmax.f32 %v2360_v47, %v3109_v28 }
 0x81a   : > { %v3118_v41 = vpop.permute.xlu0 %3117 }
 0x81b   : > { %v3120_v31 = vunpack.i.h.bf16 %v3118_v41  ;;  %v3119_v10 = vunpack.i.l.bf16 %v3118_v41  ;;  %v2387_v21 = vmax.f32 %v2359_v23, %v3115_v16  ;;  %v2386_v44 = vmax.f32 %v2358_v26, %v3114_v24 }
 0x81c   : > { %v3123_v46 = vpop.permute.xlu1 %3122 }
 0x81d   : > { %v3125_v50 = vunpack.i.h.bf16 %v3123_v46  ;;  %v3124_v0 = vunpack.i.l.bf16 %v3123_v46 }
 0x81e   : > { %v3133_v15 = vpop.permute.xlu0 %3132 }
 0x81f   : > { %v2407_v6 = vmax.f32 %v3120_v31, %v3125_v50  ;;  %v2406_v58 = vmax.f32 %v3119_v10, %v3124_v0  ;;  %v3135_v51 = vunpack.i.h.bf16 %v3133_v15  ;;  %v3134_v11 = vunpack.i.l.bf16 %v3133_v15 }
 0x820   : > { %v3128_v48 = vpop.permute.xlu1 %3127 }
 0x821   : > { %v2411_v2 = vmax.f32 %v2387_v21, %v2407_v6  ;;  %v3130_v62 = vunpack.i.h.bf16 %v3128_v48  ;;  %v3129_v14 = vunpack.i.l.bf16 %v3128_v48  ;;  %v2410_v13 = vmax.f32 %v2386_v44, %v2406_v58 }
 0x823   : > { %v2409_v7 = vmax.f32 %v3130_v62, %v3135_v51  ;;  %v2408_v22 = vmax.f32 %v3129_v14, %v3134_v11  ;;  %2999 = vmatprep.mubr.f32.mxu0 %v2410_v13 }
 0x824   : > { %3000 = vmatmul.mubr.f32.vlgmr.msra.gmra.mxu0 %v2411_v2 }
 0x825   : > { %v2412_v29 = vmax.f32 %v2388_v9, %v2408_v22  ;;  %v2413_v36 = vmax.f32 %v2389_v3, %v2409_v7 }
 0x827   : > { %3002 = vmatprep.mubr.f32.mxu0 %v2412_v29 }
 0x828   : > { %3003 = vmatmul.mubr.f32.gmra.mxu0 %v2413_v36 }
 0x8e4   : > { %v3001_v32 = vpop.f32.mrf.mxu0 }
 0x8e6   : > { %v2480_v40 = vpop.f32.mrf.mxu0 }
 0x8e7   : > { %3013 = vmatprep.mubr.msk.f32.mxu1 %vm2253_vm11, %v2480_v40 }
 0x8e8   : > { %v3004_v25 = vpop.f32.mrf.mxu0  ;;  %3014 = vmatmul.mubr.msk.f32.vlgmr.msra.gmra.mxu1 %vm2253_vm11, %v3001_v32 }
 0x8ea   : > { %v2490_v55 = vpop.f32.mrf.mxu0 }
 0x8eb   : > { %3016 = vmatprep.mubr.msk.f32.mxu1 %vm2253_vm11, %v2490_v55 }
 0x8ec   : > { %3017 = vmatmul.mubr.msk.f32.gmra.mxu1 %vm2253_vm11, %v3004_v25 }
 0x9a8   : > { %v3015_v19 = vpop.f32.mrf.mxu1 }
 0x9a9   : > { %2602 = vst.msk [vmem:[%s690_s16 + $0x8] sm:$0xff] %vm2600_vm12, %v3015_v19 }
 0x9aa   : > { %v2581_v54 = vpop.f32.mrf.mxu1 }
 0x9ab   : > { %2601 = vst.msk [vmem:[%s690_s16] sm:$0xff] %vm2600_vm12, %v2581_v54 }
 0x9ac   : > { %v3018_v12 = vpop.f32.mrf.mxu1 }
 0x9ad   : > { %2604 = vst.msk [vmem:[%s690_s16 + $0x18] sm:$0xff] %vm2600_vm12, %v3018_v12 }
 0x9ae   : > { %v2591_v39 = vpop.f32.mrf.mxu1 }
 0x9af   : > { %2603 = vst.msk [vmem:[%s690_s16 + $0x10] sm:$0xff] %vm2600_vm12, %v2591_v39 }
 0x9b0 PF: > { %s31_s23 = sadd.s32 1, %s3178_s23  }
 0x9b1   : > { %p28_p3 = scmp.ge.s32.totalorder %s31_s23, 5  }
 0x9b3   :  { %30 = sbr.rel (!%p28_p3) target bundleno = 16 (0x10), region = 130 }

</bundles_post_ra>
